<compile_context>
chip_gen: v6e
topology: v6e:2x2x1
jax: 0.10.0
libtpu: 0.0.40
codegen_flags: <defaults>
</compile_context>

<pallas_src>
import jax
import jax.numpy as jnp
from jax.experimental import pallas as pl
from jax.experimental.pallas import tpu as pltpu


# ----------------------------- fused forward kernel -------------------------
def fused_bigru_fc(x, layers, fc_w, fc_b, H):
    """x: (S, B_pad, E) f32.  layers[l]: dict with
         wih (IN_l, 6H) bf16  gate-interleaved columns (r_f|r_b|z_f|z_b|n_f|n_b)
         whh (2H, 6H)  bf16  block-diagonal (rows 0:H fwd, H:2H bwd), same cols
         bx  (1, 6H)   f32   folded bias (b_ih + b_hh for r/z, b_ih for n)
         bhn (1, 2H)   f32   [b_hh_n fwd | b_hh_n bwd]
       fc_w: (2H, L) bf16, fc_b: (1, L) f32.
       Returns (S, B_pad, L) f32 logits."""
    S, B_pad, E = x.shape
    L = fc_w.shape[1]
    num_layers = len(layers)
    G = 6 * H
    H2 = 2 * H
    SB = S * B_pad
    unroll = True if S <= 16 else 8

    def kernel(*refs):
        x_ref = refs[0]
        lrefs = refs[1:1 + 4 * num_layers]
        fcw_ref = refs[1 + 4 * num_layers]
        fcb_ref = refs[2 + 4 * num_layers]
        out_ref = refs[3 + 4 * num_layers]
        gx_ref, of_ref, ob_ref = refs[4 + 4 * num_layers:]

        # Columns of the fused 6H gate axis belonging to the forward direction
        # (layout r_f|r_b|z_f|z_b|n_f|n_b).  Built once, comparisons only.
        col = jax.lax.broadcasted_iota(jnp.int32, (B_pad, G), 1)
        fwd_cols = ((col < H)
                    | ((col >= 2 * H) & (col < 3 * H))
                    | ((col >= 4 * H) & (col < 5 * H)))

        for l in range(num_layers):
            wih = lrefs[4 * l][...]        # (IN_l, 6H) bf16
            whh = lrefs[4 * l + 1][...]    # (2H, 6H)  bf16, block-diagonal
            bx = lrefs[4 * l + 2][...]     # (1, 6H)   f32
            bhn = lrefs[4 * l + 3][...]    # (1, 2H)   f32

            # Hoisted input projection for all timesteps & both directions:
            # bf16 x bf16 -> f32 MXU matmul(s), bias folded in, stored
            # t-indexed / sublane-aligned for the recurrence.
            if l == 0:
                xin = x_ref[...].reshape(SB, E).astype(jnp.bfloat16)
                proj = jnp.dot(xin, wih, preferred_element_type=jnp.float32)
            else:
                # Previous layer's output lives in of/ob scratch; split-K
                # matmul avoids an in-kernel lane concatenation.
                hf = of_ref[...].reshape(SB, H).astype(jnp.bfloat16)
                hb = ob_ref[...].reshape(SB, H).astype(jnp.bfloat16)
                proj = (jnp.dot(hf, wih[:H], preferred_element_type=jnp.float32)
                        + jnp.dot(hb, wih[H:], preferred_element_type=jnp.float32))
            gx_ref[...] = (proj + bx).reshape(S, B_pad, G)

            # Hoist the b_hh_n broadcast out of the recurrence.
            bhn_b = jnp.broadcast_to(bhn, (B_pad, H2))

            def step(t, h):
                tb = S - 1 - t
                # fwd gate inputs come from time t, bwd from time S-1-t.
                gi = jnp.where(fwd_cols, gx_ref[t], gx_ref[tb])   # (B_pad, 6H)
                # Single fused recurrent matmul for both directions.
                gh = jnp.dot(h.astype(jnp.bfloat16), whh,
                             preferred_element_type=jnp.float32)  # (B_pad, 6H)
                r = jax.nn.sigmoid(gi[:, :H2] + gh[:, :H2])
                z = jax.nn.sigmoid(gi[:, H2:2 * H2] + gh[:, H2:2 * H2])
                n = jnp.tanh(gi[:, 2 * H2:] + r * (gh[:, 2 * H2:] + bhn_b))
                h = (1.0 - z) * n + z * h                         # (B_pad, 2H)
                of_ref[t] = h[:, :H]        # fwd hidden at position t
                ob_ref[tb] = h[:, H:]       # bwd hidden at position S-1-t
                return h

            h0 = jnp.zeros((B_pad, H2), jnp.float32)
            jax.lax.fori_loop(0, S, step, h0, unroll=unroll)

        # Final Linear fused into the same kernel (no HBM round trip); split-K
        # over the fwd/bwd halves, bf16 activations on the MXU.
        hf = of_ref[...].reshape(SB, H).astype(jnp.bfloat16)
        hb = ob_ref[...].reshape(SB, H).astype(jnp.bfloat16)
        fcw = fcw_ref[...]
        logits = (jnp.dot(hf, fcw[:H], preferred_element_type=jnp.float32)
                  + jnp.dot(hb, fcw[H:], preferred_element_type=jnp.float32)
                  + fcb_ref[...])
        out_ref[...] = logits.reshape(S, B_pad, L)

    flat_inputs = [x]
    for lyr in layers:
        flat_inputs += [lyr["wih"], lyr["whh"], lyr["bx"], lyr["bhn"]]
    flat_inputs += [fc_w, fc_b]

    def _full_spec(shape):
        return pl.BlockSpec(shape, lambda i, _n=len(shape): (0,) * _n)

    # Explicit VMEM budget: 2x double-buffered in/out blocks + scratch + slack,
    # clamped so it also fits v7x's 64 MiB per-core VMEM.
    io_bytes = (sum(a.size * a.dtype.itemsize for a in flat_inputs)
                + S * B_pad * L * 4)
    scratch_bytes = 4 * S * B_pad * (G + 2 * H)
    vmem_limit = int(min(64 * 1024 * 1024,
                         max(8 * 1024 * 1024,
                             2 * io_bytes + scratch_bytes + (2 << 20))))

    return pl.pallas_call(
        kernel,
        out_shape=jax.ShapeDtypeStruct((S, B_pad, L), jnp.float32),
        grid=(1,),
        in_specs=[_full_spec(a.shape) for a in flat_inputs],
        out_specs=_full_spec((S, B_pad, L)),
        scratch_shapes=[
            pltpu.VMEM((S, B_pad, G), jnp.float32),  # hoisted gate inputs
            pltpu.VMEM((S, B_pad, H), jnp.float32),  # per-position fwd hidden
            pltpu.VMEM((S, B_pad, H), jnp.float32),  # per-position bwd hidden
        ],
        compiler_params=pltpu.CompilerParams(
            dimension_semantics=("arbitrary",),
            vmem_limit_bytes=vmem_limit),
    )(*flat_inputs)


# ----------------------------- full forward pass ----------------------------
def bigru_crf_forward(text, params):
    S, B = text.shape
    H = params["H"]
    B_pad = max(8, ((B + 7) // 8) * 8)
    # Embedding lookup stays in XLA (TODO(synk) above: fuse if sizes grow).
    x = jnp.take(params["embedding"], text, axis=0)            # (S, B, E) f32
    # Pad batch to a full sublane group; pad rows are zeros, never mix into the
    # real rows (all ops are batch-row independent) and are sliced off below.
    x = jnp.pad(x, ((0, 0), (0, B_pad - B), (0, 0)))
    logits = fused_bigru_fc(x, params["packed_gru_layers"],
                            params["fc_w"], params["fc_b"], H)  # (S, B_pad, L)
    return logits[:, :B, :]


# ------------------------------ parameter packing ---------------------------
def _normal(key, shape, scale=0.1, dtype=jnp.float32):
    return (scale * jax.random.normal(key, shape)).astype(dtype)


def _interleave_gates(f, b, H):
    """f, b: (..., 3H) per-direction fused (r|z|n) ->
       (..., 6H) gate-interleaved (r_f|r_b|z_f|z_b|n_f|n_b)."""
    parts = []
    for g in range(3):
        parts.append(f[..., g * H:(g + 1) * H])
        parts.append(b[..., g * H:(g + 1) * H])
    return jnp.concatenate(parts, axis=-1)


def pack_gru_layers(raw_layers, H):
    """Map per-direction torch-style GRU tensors to the fused kernel layout."""
    packed = []
    for lyr in raw_layers:
        f, b = lyr["fwd"], lyr["bwd"]

        def fold_bias(d):
            # b_ih (all gates) + b_hh (r, z only); b_hh_n stays inside r*(.)
            return d["bih"] + jnp.concatenate(
                [d["bhh"][:, :2 * H], jnp.zeros_like(d["bhh"][:, 2 * H:])],
                axis=-1)

        zeros_f = jnp.zeros_like(f["whh"])
        zeros_b = jnp.zeros_like(b["whh"])
        packed.append({
            "wih": _interleave_gates(f["wih"], b["wih"], H),
            "whh": _interleave_gates(
                jnp.concatenate([f["whh"], zeros_b], axis=0),   # fwd cols
                jnp.concatenate([zeros_f, b["whh"]], axis=0),   # bwd cols
                H),
            "bx": _interleave_gates(fold_bias(f), fold_bias(b), H),
            "bhn": jnp.concatenate([f["bhh"][:, 2 * H:], b["bhh"][:, 2 * H:]],
                                   axis=-1),
        })
    return packed


def init_params(key, vocab_size, E, H, L, num_layers):
    n_keys = 1 + num_layers * 8 + 2
    keys = iter(jax.random.split(key, n_keys))
    embedding = _normal(next(keys), (vocab_size, E))
    raw_layers = []
    for layer_idx in range(num_layers):
        in_size = E if layer_idx == 0 else 2 * H

        def make_dir():
            # Transposed torch tensors: wih = weight_ih^T, whh = weight_hh^T,
            # gate order (r|z|n) fused on the last axis; weights kept bf16.
            return {
                "wih": _normal(next(keys), (in_size, 3 * H), dtype=jnp.bfloat16),
                "whh": _normal(next(keys), (H, 3 * H), dtype=jnp.bfloat16),
                "bih": _normal(next(keys), (1, 3 * H)),
                "bhh": _normal(next(keys), (1, 3 * H)),
            }

        raw_layers.append({"fwd": make_dir(), "bwd": make_dir()})
    fc_w = _normal(next(keys), (2 * H, L), dtype=jnp.bfloat16)
    fc_b = _normal(next(keys), (1, L))
    return {
        "embedding": embedding,
        "raw_gru_layers": raw_layers,
        "packed_gru_layers": pack_gru_layers(raw_layers, H),
        "fc_w": fc_w,
        "fc_b": fc_b,
        "H": H,
    }


# ------------------------------ pure-JAX reference --------------------------
def _gru_dir_ref(x, p, H):
    """Single-direction PyTorch-semantics GRU on the raw per-direction params.
    Activations are cast to bf16 before each dot to mirror the kernel's
    native-MXU bf16 path (weights are bf16 in both paths)."""
    S, B, IN = x.shape
    wih, whh, bih, bhh = p["wih"], p["whh"], p["bih"], p["bhh"]
    gx = (jnp.dot(x.reshape(S * B, IN).astype(jnp.bfloat16), wih,
                  preferred_element_type=jnp.float32).reshape(S, B, 3 * H)
          + bih)
    h = jnp.zeros((B, H), jnp.float32)
    outs = []
    for t in range(S):
        gh = jnp.dot(h.astype(jnp.bfloat16), whh,
                     preferred_element_type=jnp.float32)           # (B, 3H)
        r = jax.nn.sigmoid(gx[t, :, :H] + gh[:, :H] + bhh[:, :H])
        z = jax.nn.sigmoid(gx[t, :, H:2 * H] + gh[:, H:2 * H] + bhh[:, H:2 * H])
        n = jnp.tanh(gx[t, :, 2 * H:] + r * (gh[:, 2 * H:] + bhh[:, 2 * H:]))
        h = (1.0 - z) * n + z * h
        outs.append(h)
    return jnp.stack(outs)                                          # (S, B, H)


def forward_ref(text, params):
    H = params["H"]
    x = jnp.take(params["embedding"], text, axis=0)
    for lyr in params["raw_gru_layers"]:
        f = _gru_dir_ref(x, lyr["fwd"], H)
        b = _gru_dir_ref(jnp.flip(x, 0), lyr["bwd"], H)
        x = jnp.concatenate([f, jnp.flip(b, 0)], axis=-1)
    S, B, H2 = x.shape
    out = (jnp.dot(x.reshape(S * B, H2).astype(jnp.bfloat16), params["fc_w"],
                   preferred_element_type=jnp.float32) + params["fc_b"])
    return out.reshape(S, B, -1)


if __name__ == "__main__":
    vocab_size, embedding_dim, hidden_dim, labels_dim, num_layers = 50, 16, 32, 8, 2
    seq_len, batch = 8, 2

    key = jax.random.PRNGKey(0)
    pkey, tkey = jax.random.split(key)
    params = init_params(pkey, vocab_size, embedding_dim, hidden_dim,
                         labels_dim, num_layers)
    text = jax.random.randint(tkey, (seq_len, batch), 0, vocab_size,
                              dtype=jnp.int32)

    out = jax.block_until_ready(bigru_crf_forward(text, params))
    assert out.shape == (seq_len, batch, labels_dim), out.shape

    ref = jax.block_until_ready(forward_ref(text, params))
    err = float(jnp.max(jnp.abs(out - ref)))
    assert jnp.allclose(out, ref, atol=5e-3, rtol=5e-3), err
    print("KERNEL_OK")
</pallas_src>

<mosaic_0001>
module attributes {stable_mosaic.version = 11 : i64} {
  func.func @kernel(%arg0: i32, %arg1: memref<8x8x16xf32, #tpu.memory_space<vmem>>, %arg2: memref<16x192xbf16, #tpu.memory_space<vmem>>, %arg3: memref<64x192xbf16, #tpu.memory_space<vmem>>, %arg4: memref<1x192xf32, #tpu.memory_space<vmem>>, %arg5: memref<1x64xf32, #tpu.memory_space<vmem>>, %arg6: memref<64x192xbf16, #tpu.memory_space<vmem>>, %arg7: memref<64x192xbf16, #tpu.memory_space<vmem>>, %arg8: memref<1x192xf32, #tpu.memory_space<vmem>>, %arg9: memref<1x64xf32, #tpu.memory_space<vmem>>, %arg10: memref<64x8xbf16, #tpu.memory_space<vmem>>, %arg11: memref<1x8xf32, #tpu.memory_space<vmem>>, %arg12: memref<8x8x8xf32, #tpu.memory_space<vmem>>, %arg13: memref<8x8x192xf32, #tpu.memory_space<vmem>>, %arg14: memref<8x8x32xf32, #tpu.memory_space<vmem>>, %arg15: memref<8x8x32xf32, #tpu.memory_space<vmem>>) attributes {dimension_semantics = [#tpu.dimension_semantics<arbitrary>], iteration_bounds = array<i64: 1>, scalar_prefetch = 0 : i64, scratch_operands = 3 : i64, tpu.core_type = #tpu.core_type<tc>, window_params = [{pipeline_mode = #tpu.pipeline_mode<synchronous>, transform_indices = @transform_0, window_bounds = array<i64: 8, 8, 16>}, {pipeline_mode = #tpu.pipeline_mode<synchronous>, transform_indices = @transform_1, window_bounds = array<i64: 16, 192>}, {pipeline_mode = #tpu.pipeline_mode<synchronous>, transform_indices = @transform_2, window_bounds = array<i64: 64, 192>}, {pipeline_mode = #tpu.pipeline_mode<synchronous>, transform_indices = @transform_3, window_bounds = array<i64: 1, 192>}, {pipeline_mode = #tpu.pipeline_mode<synchronous>, transform_indices = @transform_4, window_bounds = array<i64: 1, 64>}, {pipeline_mode = #tpu.pipeline_mode<synchronous>, transform_indices = @transform_5, window_bounds = array<i64: 64, 192>}, {pipeline_mode = #tpu.pipeline_mode<synchronous>, transform_indices = @transform_6, window_bounds = array<i64: 64, 192>}, {pipeline_mode = #tpu.pipeline_mode<synchronous>, transform_indices = @transform_7, window_bounds = array<i64: 1, 192>}, {pipeline_mode = #tpu.pipeline_mode<synchronous>, transform_indices = @transform_8, window_bounds = array<i64: 1, 64>}, {pipeline_mode = #tpu.pipeline_mode<synchronous>, transform_indices = @transform_9, window_bounds = array<i64: 64, 8>}, {pipeline_mode = #tpu.pipeline_mode<synchronous>, transform_indices = @transform_10, window_bounds = array<i64: 1, 8>}, {pipeline_mode = #tpu.pipeline_mode<synchronous>, transform_indices = @transform_11, window_bounds = array<i64: 8, 8, 8>}]} {
    %0 = tpu.iota {dimensions = array<i32: 1>} : vector<8x192xi32>
    %c32_i32 = arith.constant 32 : i32
    %1 = vector.broadcast %c32_i32 : i32 to vector<8x192xi32>
    %2 = arith.cmpi slt, %0, %1 : vector<8x192xi32>
    %c64_i32 = arith.constant 64 : i32
    %3 = vector.broadcast %c64_i32 : i32 to vector<8x192xi32>
    %4 = arith.cmpi sge, %0, %3 : vector<8x192xi32>
    %c96_i32 = arith.constant 96 : i32
    %5 = vector.broadcast %c96_i32 : i32 to vector<8x192xi32>
    %6 = arith.cmpi slt, %0, %5 : vector<8x192xi32>
    %7 = arith.andi %4, %6 : vector<8x192xi1>
    %8 = arith.ori %2, %7 : vector<8x192xi1>
    %c128_i32 = arith.constant 128 : i32
    %9 = vector.broadcast %c128_i32 : i32 to vector<8x192xi32>
    %10 = arith.cmpi sge, %0, %9 : vector<8x192xi32>
    %c160_i32 = arith.constant 160 : i32
    %11 = vector.broadcast %c160_i32 : i32 to vector<8x192xi32>
    %12 = arith.cmpi slt, %0, %11 : vector<8x192xi32>
    %13 = arith.andi %10, %12 : vector<8x192xi1>
    %14 = arith.ori %8, %13 : vector<8x192xi1>
    %c0 = arith.constant 0 : index
    %c0_0 = arith.constant 0 : index
    %15 = vector.load %arg2[%c0, %c0_0] : memref<16x192xbf16, #tpu.memory_space<vmem>>, vector<16x192xbf16>
    %c0_1 = arith.constant 0 : index
    %c0_2 = arith.constant 0 : index
    %16 = vector.load %arg3[%c0_1, %c0_2] : memref<64x192xbf16, #tpu.memory_space<vmem>>, vector<64x192xbf16>
    %c0_3 = arith.constant 0 : index
    %c0_4 = arith.constant 0 : index
    %17 = vector.load %arg4[%c0_3, %c0_4] : memref<1x192xf32, #tpu.memory_space<vmem>>, vector<1x192xf32>
    %c0_5 = arith.constant 0 : index
    %c0_6 = arith.constant 0 : index
    %18 = vector.load %arg5[%c0_5, %c0_6] : memref<1x64xf32, #tpu.memory_space<vmem>>, vector<1x64xf32>
    %c0_7 = arith.constant 0 : index
    %c0_8 = arith.constant 0 : index
    %c0_9 = arith.constant 0 : index
    %19 = vector.load %arg1[%c0_7, %c0_8, %c0_9] : memref<8x8x16xf32, #tpu.memory_space<vmem>>, vector<8x8x16xf32>
    %20 = vector.shape_cast %19 : vector<8x8x16xf32> to vector<64x16xf32>
    %21 = arith.truncf %20 : vector<64x16xf32> to vector<64x16xbf16>
    %cst = arith.constant dense<0.000000e+00> : vector<64x192xf32>
    %22 = tpu.matmul %21, %15, %cst {dimension_numbers = #tpu.dot_dimension_numbers<[1], [0], [0], [1], [0, 0, 1, 1], [], []>} : vector<64x16xbf16>, vector<16x192xbf16>, vector<64x192xf32> -> vector<64x192xf32>
    %23 = vector.broadcast %17 : vector<1x192xf32> to vector<64x192xf32>
    %24 = arith.addf %22, %23 : vector<64x192xf32>
    %25 = vector.shape_cast %24 : vector<64x192xf32> to vector<8x8x192xf32>
    %c0_10 = arith.constant 0 : index
    %c0_11 = arith.constant 0 : index
    %c0_12 = arith.constant 0 : index
    %26 = vector.load %arg13[%c0_10, %c0_11, %c0_12] : memref<8x8x192xf32, #tpu.memory_space<vmem>>, vector<8x8x192xf32>
    tpu.vector_store %arg13[%c0_10, %c0_11, %c0_12], %25 {strides = array<i32>} : memref<8x8x192xf32, #tpu.memory_space<vmem>>, vector<8x8x192xf32>,
    %27 = vector.shape_cast %18 : vector<1x64xf32> to vector<1x64xf32>
    %28 = vector.broadcast %27 : vector<1x64xf32> to vector<8x64xf32>
    %cst_13 = arith.constant 0.000000e+00 : f32
    %29 = vector.broadcast %cst_13 : f32 to vector<8x64xf32>
    %c0_i32 = arith.constant 0 : i32
    %c7_i32 = arith.constant 7 : i32
    %30 = arith.subi %c7_i32, %c0_i32 : i32
    %31 = arith.index_cast %c0_i32 : i32 to index
    %c0_14 = arith.constant 0 : index
    %c0_15 = arith.constant 0 : index
    %32 = vector.load %arg13[%31, %c0_14, %c0_15] : memref<8x8x192xf32, #tpu.memory_space<vmem>>, vector<1x8x192xf32>
    %33 = vector.shape_cast %32 : vector<1x8x192xf32> to vector<8x192xf32>
    %34 = arith.index_cast %30 : i32 to index
    %c0_16 = arith.constant 0 : index
    %c0_17 = arith.constant 0 : index
    %35 = vector.load %arg13[%34, %c0_16, %c0_17] : memref<8x8x192xf32, #tpu.memory_space<vmem>>, vector<1x8x192xf32>
    %36 = vector.shape_cast %35 : vector<1x8x192xf32> to vector<8x192xf32>
    %37 = arith.select %14, %33, %36 : vector<8x192xi1>, vector<8x192xf32>
    %38 = arith.truncf %29 : vector<8x64xf32> to vector<8x64xbf16>
    %cst_18 = arith.constant dense<0.000000e+00> : vector<8x192xf32>
    %39 = tpu.matmul %38, %16, %cst_18 {dimension_numbers = #tpu.dot_dimension_numbers<[1], [0], [0], [1], [0, 0, 1, 1], [], []>} : vector<8x64xbf16>, vector<64x192xbf16>, vector<8x192xf32> -> vector<8x192xf32>
    %40 = vector.extract_strided_slice %37 {offsets = [0, 0], sizes = [8, 64], strides = [1, 1]} : vector<8x192xf32> to vector<8x64xf32>
    %41 = vector.extract_strided_slice %39 {offsets = [0, 0], sizes = [8, 64], strides = [1, 1]} : vector<8x192xf32> to vector<8x64xf32>
    %42 = arith.addf %40, %41 : vector<8x64xf32>
    %43 = arith.negf %42 : vector<8x64xf32>
    %44 = math.exp %43 : vector<8x64xf32>
    %cst_19 = arith.constant 1.000000e+00 : f32
    %45 = vector.broadcast %cst_19 : f32 to vector<8x64xf32>
    %46 = arith.addf %45, %44 : vector<8x64xf32>
    %47 = arith.divf %45, %46 : vector<8x64xf32>
    %48 = vector.extract_strided_slice %37 {offsets = [0, 64], sizes = [8, 64], strides = [1, 1]} : vector<8x192xf32> to vector<8x64xf32>
    %49 = vector.extract_strided_slice %39 {offsets = [0, 64], sizes = [8, 64], strides = [1, 1]} : vector<8x192xf32> to vector<8x64xf32>
    %50 = arith.addf %48, %49 : vector<8x64xf32>
    %51 = arith.negf %50 : vector<8x64xf32>
    %52 = math.exp %51 : vector<8x64xf32>
    %cst_20 = arith.constant 1.000000e+00 : f32
    %53 = vector.broadcast %cst_20 : f32 to vector<8x64xf32>
    %54 = arith.addf %53, %52 : vector<8x64xf32>
    %55 = arith.divf %53, %54 : vector<8x64xf32>
    %56 = vector.extract_strided_slice %37 {offsets = [0, 128], sizes = [8, 64], strides = [1, 1]} : vector<8x192xf32> to vector<8x64xf32>
    %57 = vector.extract_strided_slice %39 {offsets = [0, 128], sizes = [8, 64], strides = [1, 1]} : vector<8x192xf32> to vector<8x64xf32>
    %58 = arith.addf %57, %28 : vector<8x64xf32>
    %59 = arith.mulf %47, %58 : vector<8x64xf32>
    %60 = arith.addf %56, %59 : vector<8x64xf32>
    %61 = math.tanh %60 : vector<8x64xf32>
    %cst_21 = arith.constant 1.000000e+00 : f32
    %62 = vector.broadcast %cst_21 : f32 to vector<8x64xf32>
    %63 = arith.subf %62, %55 : vector<8x64xf32>
    %64 = arith.mulf %63, %61 : vector<8x64xf32>
    %65 = arith.mulf %55, %29 : vector<8x64xf32>
    %66 = arith.addf %64, %65 : vector<8x64xf32>
    %67 = vector.extract_strided_slice %66 {offsets = [0, 0], sizes = [8, 32], strides = [1, 1]} : vector<8x64xf32> to vector<8x32xf32>
    %68 = arith.index_cast %c0_i32 : i32 to index
    %c0_22 = arith.constant 0 : index
    %c0_23 = arith.constant 0 : index
    %69 = vector.load %arg14[%68, %c0_22, %c0_23] : memref<8x8x32xf32, #tpu.memory_space<vmem>>, vector<1x8x32xf32>
    %70 = vector.shape_cast %69 : vector<1x8x32xf32> to vector<8x32xf32>
    %71 = vector.shape_cast %67 : vector<8x32xf32> to vector<1x8x32xf32>
    tpu.vector_store %arg14[%68, %c0_22, %c0_23], %71 {strides = array<i32>} : memref<8x8x32xf32, #tpu.memory_space<vmem>>, vector<1x8x32xf32>,
    %72 = vector.extract_strided_slice %66 {offsets = [0, 32], sizes = [8, 32], strides = [1, 1]} : vector<8x64xf32> to vector<8x32xf32>
    %73 = arith.index_cast %30 : i32 to index
    %c0_24 = arith.constant 0 : index
    %c0_25 = arith.constant 0 : index
    %74 = vector.load %arg15[%73, %c0_24, %c0_25] : memref<8x8x32xf32, #tpu.memory_space<vmem>>, vector<1x8x32xf32>
    %75 = vector.shape_cast %74 : vector<1x8x32xf32> to vector<8x32xf32>
    %76 = vector.shape_cast %72 : vector<8x32xf32> to vector<1x8x32xf32>
    tpu.vector_store %arg15[%73, %c0_24, %c0_25], %76 {strides = array<i32>} : memref<8x8x32xf32, #tpu.memory_space<vmem>>, vector<1x8x32xf32>,
    %c1_i32 = arith.constant 1 : i32
    %c7_i32_26 = arith.constant 7 : i32
    %77 = arith.subi %c7_i32_26, %c1_i32 : i32
    %78 = arith.index_cast %c1_i32 : i32 to index
    %c0_27 = arith.constant 0 : index
    %c0_28 = arith.constant 0 : index
    %79 = vector.load %arg13[%78, %c0_27, %c0_28] : memref<8x8x192xf32, #tpu.memory_space<vmem>>, vector<1x8x192xf32>
    %80 = vector.shape_cast %79 : vector<1x8x192xf32> to vector<8x192xf32>
    %81 = arith.index_cast %77 : i32 to index
    %c0_29 = arith.constant 0 : index
    %c0_30 = arith.constant 0 : index
    %82 = vector.load %arg13[%81, %c0_29, %c0_30] : memref<8x8x192xf32, #tpu.memory_space<vmem>>, vector<1x8x192xf32>
    %83 = vector.shape_cast %82 : vector<1x8x192xf32> to vector<8x192xf32>
    %84 = arith.select %14, %80, %83 : vector<8x192xi1>, vector<8x192xf32>
    %85 = arith.truncf %66 : vector<8x64xf32> to vector<8x64xbf16>
    %cst_31 = arith.constant dense<0.000000e+00> : vector<8x192xf32>
    %86 = tpu.matmul %85, %16, %cst_31 {dimension_numbers = #tpu.dot_dimension_numbers<[1], [0], [0], [1], [0, 0, 1, 1], [], []>} : vector<8x64xbf16>, vector<64x192xbf16>, vector<8x192xf32> -> vector<8x192xf32>
    %87 = vector.extract_strided_slice %84 {offsets = [0, 0], sizes = [8, 64], strides = [1, 1]} : vector<8x192xf32> to vector<8x64xf32>
    %88 = vector.extract_strided_slice %86 {offsets = [0, 0], sizes = [8, 64], strides = [1, 1]} : vector<8x192xf32> to vector<8x64xf32>
    %89 = arith.addf %87, %88 : vector<8x64xf32>
    %90 = arith.negf %89 : vector<8x64xf32>
    %91 = math.exp %90 : vector<8x64xf32>
    %cst_32 = arith.constant 1.000000e+00 : f32
    %92 = vector.broadcast %cst_32 : f32 to vector<8x64xf32>
    %93 = arith.addf %92, %91 : vector<8x64xf32>
    %94 = arith.divf %92, %93 : vector<8x64xf32>
    %95 = vector.extract_strided_slice %84 {offsets = [0, 64], sizes = [8, 64], strides = [1, 1]} : vector<8x192xf32> to vector<8x64xf32>
    %96 = vector.extract_strided_slice %86 {offsets = [0, 64], sizes = [8, 64], strides = [1, 1]} : vector<8x192xf32> to vector<8x64xf32>
    %97 = arith.addf %95, %96 : vector<8x64xf32>
    %98 = arith.negf %97 : vector<8x64xf32>
    %99 = math.exp %98 : vector<8x64xf32>
    %cst_33 = arith.constant 1.000000e+00 : f32
    %100 = vector.broadcast %cst_33 : f32 to vector<8x64xf32>
    %101 = arith.addf %100, %99 : vector<8x64xf32>
    %102 = arith.divf %100, %101 : vector<8x64xf32>
    %103 = vector.extract_strided_slice %84 {offsets = [0, 128], sizes = [8, 64], strides = [1, 1]} : vector<8x192xf32> to vector<8x64xf32>
    %104 = vector.extract_strided_slice %86 {offsets = [0, 128], sizes = [8, 64], strides = [1, 1]} : vector<8x192xf32> to vector<8x64xf32>
    %105 = arith.addf %104, %28 : vector<8x64xf32>
    %106 = arith.mulf %94, %105 : vector<8x64xf32>
    %107 = arith.addf %103, %106 : vector<8x64xf32>
    %108 = math.tanh %107 : vector<8x64xf32>
    %cst_34 = arith.constant 1.000000e+00 : f32
    %109 = vector.broadcast %cst_34 : f32 to vector<8x64xf32>
    %110 = arith.subf %109, %102 : vector<8x64xf32>
    %111 = arith.mulf %110, %108 : vector<8x64xf32>
    %112 = arith.mulf %102, %66 : vector<8x64xf32>
    %113 = arith.addf %111, %112 : vector<8x64xf32>
    %114 = vector.extract_strided_slice %113 {offsets = [0, 0], sizes = [8, 32], strides = [1, 1]} : vector<8x64xf32> to vector<8x32xf32>
    %115 = arith.index_cast %c1_i32 : i32 to index
    %c0_35 = arith.constant 0 : index
    %c0_36 = arith.constant 0 : index
    %116 = vector.load %arg14[%115, %c0_35, %c0_36] : memref<8x8x32xf32, #tpu.memory_space<vmem>>, vector<1x8x32xf32>
    %117 = vector.shape_cast %116 : vector<1x8x32xf32> to vector<8x32xf32>
    %118 = vector.shape_cast %114 : vector<8x32xf32> to vector<1x8x32xf32>
    tpu.vector_store %arg14[%115, %c0_35, %c0_36], %118 {strides = array<i32>} : memref<8x8x32xf32, #tpu.memory_space<vmem>>, vector<1x8x32xf32>,
    %119 = vector.extract_strided_slice %113 {offsets = [0, 32], sizes = [8, 32], strides = [1, 1]} : vector<8x64xf32> to vector<8x32xf32>
    %120 = arith.index_cast %77 : i32 to index
    %c0_37 = arith.constant 0 : index
    %c0_38 = arith.constant 0 : index
    %121 = vector.load %arg15[%120, %c0_37, %c0_38] : memref<8x8x32xf32, #tpu.memory_space<vmem>>, vector<1x8x32xf32>
    %122 = vector.shape_cast %121 : vector<1x8x32xf32> to vector<8x32xf32>
    %123 = vector.shape_cast %119 : vector<8x32xf32> to vector<1x8x32xf32>
    tpu.vector_store %arg15[%120, %c0_37, %c0_38], %123 {strides = array<i32>} : memref<8x8x32xf32, #tpu.memory_space<vmem>>, vector<1x8x32xf32>,
    %c2_i32 = arith.constant 2 : i32
    %c7_i32_39 = arith.constant 7 : i32
    %124 = arith.subi %c7_i32_39, %c2_i32 : i32
    %125 = arith.index_cast %c2_i32 : i32 to index
    %c0_40 = arith.constant 0 : index
    %c0_41 = arith.constant 0 : index
    %126 = vector.load %arg13[%125, %c0_40, %c0_41] : memref<8x8x192xf32, #tpu.memory_space<vmem>>, vector<1x8x192xf32>
    %127 = vector.shape_cast %126 : vector<1x8x192xf32> to vector<8x192xf32>
    %128 = arith.index_cast %124 : i32 to index
    %c0_42 = arith.constant 0 : index
    %c0_43 = arith.constant 0 : index
    %129 = vector.load %arg13[%128, %c0_42, %c0_43] : memref<8x8x192xf32, #tpu.memory_space<vmem>>, vector<1x8x192xf32>
    %130 = vector.shape_cast %129 : vector<1x8x192xf32> to vector<8x192xf32>
    %131 = arith.select %14, %127, %130 : vector<8x192xi1>, vector<8x192xf32>
    %132 = arith.truncf %113 : vector<8x64xf32> to vector<8x64xbf16>
    %cst_44 = arith.constant dense<0.000000e+00> : vector<8x192xf32>
    %133 = tpu.matmul %132, %16, %cst_44 {dimension_numbers = #tpu.dot_dimension_numbers<[1], [0], [0], [1], [0, 0, 1, 1], [], []>} : vector<8x64xbf16>, vector<64x192xbf16>, vector<8x192xf32> -> vector<8x192xf32>
    %134 = vector.extract_strided_slice %131 {offsets = [0, 0], sizes = [8, 64], strides = [1, 1]} : vector<8x192xf32> to vector<8x64xf32>
    %135 = vector.extract_strided_slice %133 {offsets = [0, 0], sizes = [8, 64], strides = [1, 1]} : vector<8x192xf32> to vector<8x64xf32>
    %136 = arith.addf %134, %135 : vector<8x64xf32>
    %137 = arith.negf %136 : vector<8x64xf32>
    %138 = math.exp %137 : vector<8x64xf32>
    %cst_45 = arith.constant 1.000000e+00 : f32
    %139 = vector.broadcast %cst_45 : f32 to vector<8x64xf32>
    %140 = arith.addf %139, %138 : vector<8x64xf32>
    %141 = arith.divf %139, %140 : vector<8x64xf32>
    %142 = vector.extract_strided_slice %131 {offsets = [0, 64], sizes = [8, 64], strides = [1, 1]} : vector<8x192xf32> to vector<8x64xf32>
    %143 = vector.extract_strided_slice %133 {offsets = [0, 64], sizes = [8, 64], strides = [1, 1]} : vector<8x192xf32> to vector<8x64xf32>
    %144 = arith.addf %142, %143 : vector<8x64xf32>
    %145 = arith.negf %144 : vector<8x64xf32>
    %146 = math.exp %145 : vector<8x64xf32>
    %cst_46 = arith.constant 1.000000e+00 : f32
    %147 = vector.broadcast %cst_46 : f32 to vector<8x64xf32>
    %148 = arith.addf %147, %146 : vector<8x64xf32>
    %149 = arith.divf %147, %148 : vector<8x64xf32>
    %150 = vector.extract_strided_slice %131 {offsets = [0, 128], sizes = [8, 64], strides = [1, 1]} : vector<8x192xf32> to vector<8x64xf32>
    %151 = vector.extract_strided_slice %133 {offsets = [0, 128], sizes = [8, 64], strides = [1, 1]} : vector<8x192xf32> to vector<8x64xf32>
    %152 = arith.addf %151, %28 : vector<8x64xf32>
    %153 = arith.mulf %141, %152 : vector<8x64xf32>
    %154 = arith.addf %150, %153 : vector<8x64xf32>
    %155 = math.tanh %154 : vector<8x64xf32>
    %cst_47 = arith.constant 1.000000e+00 : f32
    %156 = vector.broadcast %cst_47 : f32 to vector<8x64xf32>
    %157 = arith.subf %156, %149 : vector<8x64xf32>
    %158 = arith.mulf %157, %155 : vector<8x64xf32>
    %159 = arith.mulf %149, %113 : vector<8x64xf32>
    %160 = arith.addf %158, %159 : vector<8x64xf32>
    %161 = vector.extract_strided_slice %160 {offsets = [0, 0], sizes = [8, 32], strides = [1, 1]} : vector<8x64xf32> to vector<8x32xf32>
    %162 = arith.index_cast %c2_i32 : i32 to index
    %c0_48 = arith.constant 0 : index
    %c0_49 = arith.constant 0 : index
    %163 = vector.load %arg14[%162, %c0_48, %c0_49] : memref<8x8x32xf32, #tpu.memory_space<vmem>>, vector<1x8x32xf32>
    %164 = vector.shape_cast %163 : vector<1x8x32xf32> to vector<8x32xf32>
    %165 = vector.shape_cast %161 : vector<8x32xf32> to vector<1x8x32xf32>
    tpu.vector_store %arg14[%162, %c0_48, %c0_49], %165 {strides = array<i32>} : memref<8x8x32xf32, #tpu.memory_space<vmem>>, vector<1x8x32xf32>,
    %166 = vector.extract_strided_slice %160 {offsets = [0, 32], sizes = [8, 32], strides = [1, 1]} : vector<8x64xf32> to vector<8x32xf32>
    %167 = arith.index_cast %124 : i32 to index
    %c0_50 = arith.constant 0 : index
    %c0_51 = arith.constant 0 : index
    %168 = vector.load %arg15[%167, %c0_50, %c0_51] : memref<8x8x32xf32, #tpu.memory_space<vmem>>, vector<1x8x32xf32>
    %169 = vector.shape_cast %168 : vector<1x8x32xf32> to vector<8x32xf32>
    %170 = vector.shape_cast %166 : vector<8x32xf32> to vector<1x8x32xf32>
    tpu.vector_store %arg15[%167, %c0_50, %c0_51], %170 {strides = array<i32>} : memref<8x8x32xf32, #tpu.memory_space<vmem>>, vector<1x8x32xf32>,
    %c3_i32 = arith.constant 3 : i32
    %c7_i32_52 = arith.constant 7 : i32
    %171 = arith.subi %c7_i32_52, %c3_i32 : i32
    %172 = arith.index_cast %c3_i32 : i32 to index
    %c0_53 = arith.constant 0 : index
    %c0_54 = arith.constant 0 : index
    %173 = vector.load %arg13[%172, %c0_53, %c0_54] : memref<8x8x192xf32, #tpu.memory_space<vmem>>, vector<1x8x192xf32>
    %174 = vector.shape_cast %173 : vector<1x8x192xf32> to vector<8x192xf32>
    %175 = arith.index_cast %171 : i32 to index
    %c0_55 = arith.constant 0 : index
    %c0_56 = arith.constant 0 : index
    %176 = vector.load %arg13[%175, %c0_55, %c0_56] : memref<8x8x192xf32, #tpu.memory_space<vmem>>, vector<1x8x192xf32>
    %177 = vector.shape_cast %176 : vector<1x8x192xf32> to vector<8x192xf32>
    %178 = arith.select %14, %174, %177 : vector<8x192xi1>, vector<8x192xf32>
    %179 = arith.truncf %160 : vector<8x64xf32> to vector<8x64xbf16>
    %cst_57 = arith.constant dense<0.000000e+00> : vector<8x192xf32>
    %180 = tpu.matmul %179, %16, %cst_57 {dimension_numbers = #tpu.dot_dimension_numbers<[1], [0], [0], [1], [0, 0, 1, 1], [], []>} : vector<8x64xbf16>, vector<64x192xbf16>, vector<8x192xf32> -> vector<8x192xf32>
    %181 = vector.extract_strided_slice %178 {offsets = [0, 0], sizes = [8, 64], strides = [1, 1]} : vector<8x192xf32> to vector<8x64xf32>
    %182 = vector.extract_strided_slice %180 {offsets = [0, 0], sizes = [8, 64], strides = [1, 1]} : vector<8x192xf32> to vector<8x64xf32>
    %183 = arith.addf %181, %182 : vector<8x64xf32>
    %184 = arith.negf %183 : vector<8x64xf32>
    %185 = math.exp %184 : vector<8x64xf32>
    %cst_58 = arith.constant 1.000000e+00 : f32
    %186 = vector.broadcast %cst_58 : f32 to vector<8x64xf32>
    %187 = arith.addf %186, %185 : vector<8x64xf32>
    %188 = arith.divf %186, %187 : vector<8x64xf32>
    %189 = vector.extract_strided_slice %178 {offsets = [0, 64], sizes = [8, 64], strides = [1, 1]} : vector<8x192xf32> to vector<8x64xf32>
    %190 = vector.extract_strided_slice %180 {offsets = [0, 64], sizes = [8, 64], strides = [1, 1]} : vector<8x192xf32> to vector<8x64xf32>
    %191 = arith.addf %189, %190 : vector<8x64xf32>
    %192 = arith.negf %191 : vector<8x64xf32>
    %193 = math.exp %192 : vector<8x64xf32>
    %cst_59 = arith.constant 1.000000e+00 : f32
    %194 = vector.broadcast %cst_59 : f32 to vector<8x64xf32>
    %195 = arith.addf %194, %193 : vector<8x64xf32>
    %196 = arith.divf %194, %195 : vector<8x64xf32>
    %197 = vector.extract_strided_slice %178 {offsets = [0, 128], sizes = [8, 64], strides = [1, 1]} : vector<8x192xf32> to vector<8x64xf32>
    %198 = vector.extract_strided_slice %180 {offsets = [0, 128], sizes = [8, 64], strides = [1, 1]} : vector<8x192xf32> to vector<8x64xf32>
    %199 = arith.addf %198, %28 : vector<8x64xf32>
    %200 = arith.mulf %188, %199 : vector<8x64xf32>
    %201 = arith.addf %197, %200 : vector<8x64xf32>
    %202 = math.tanh %201 : vector<8x64xf32>
    %cst_60 = arith.constant 1.000000e+00 : f32
    %203 = vector.broadcast %cst_60 : f32 to vector<8x64xf32>
    %204 = arith.subf %203, %196 : vector<8x64xf32>
    %205 = arith.mulf %204, %202 : vector<8x64xf32>
    %206 = arith.mulf %196, %160 : vector<8x64xf32>
    %207 = arith.addf %205, %206 : vector<8x64xf32>
    %208 = vector.extract_strided_slice %207 {offsets = [0, 0], sizes = [8, 32], strides = [1, 1]} : vector<8x64xf32> to vector<8x32xf32>
    %209 = arith.index_cast %c3_i32 : i32 to index
    %c0_61 = arith.constant 0 : index
    %c0_62 = arith.constant 0 : index
    %210 = vector.load %arg14[%209, %c0_61, %c0_62] : memref<8x8x32xf32, #tpu.memory_space<vmem>>, vector<1x8x32xf32>
    %211 = vector.shape_cast %210 : vector<1x8x32xf32> to vector<8x32xf32>
    %212 = vector.shape_cast %208 : vector<8x32xf32> to vector<1x8x32xf32>
    tpu.vector_store %arg14[%209, %c0_61, %c0_62], %212 {strides = array<i32>} : memref<8x8x32xf32, #tpu.memory_space<vmem>>, vector<1x8x32xf32>,
    %213 = vector.extract_strided_slice %207 {offsets = [0, 32], sizes = [8, 32], strides = [1, 1]} : vector<8x64xf32> to vector<8x32xf32>
    %214 = arith.index_cast %171 : i32 to index
    %c0_63 = arith.constant 0 : index
    %c0_64 = arith.constant 0 : index
    %215 = vector.load %arg15[%214, %c0_63, %c0_64] : memref<8x8x32xf32, #tpu.memory_space<vmem>>, vector<1x8x32xf32>
    %216 = vector.shape_cast %215 : vector<1x8x32xf32> to vector<8x32xf32>
    %217 = vector.shape_cast %213 : vector<8x32xf32> to vector<1x8x32xf32>
    tpu.vector_store %arg15[%214, %c0_63, %c0_64], %217 {strides = array<i32>} : memref<8x8x32xf32, #tpu.memory_space<vmem>>, vector<1x8x32xf32>,
    %c4_i32 = arith.constant 4 : i32
    %c7_i32_65 = arith.constant 7 : i32
    %218 = arith.subi %c7_i32_65, %c4_i32 : i32
    %219 = arith.index_cast %c4_i32 : i32 to index
    %c0_66 = arith.constant 0 : index
    %c0_67 = arith.constant 0 : index
    %220 = vector.load %arg13[%219, %c0_66, %c0_67] : memref<8x8x192xf32, #tpu.memory_space<vmem>>, vector<1x8x192xf32>
    %221 = vector.shape_cast %220 : vector<1x8x192xf32> to vector<8x192xf32>
    %222 = arith.index_cast %218 : i32 to index
    %c0_68 = arith.constant 0 : index
    %c0_69 = arith.constant 0 : index
    %223 = vector.load %arg13[%222, %c0_68, %c0_69] : memref<8x8x192xf32, #tpu.memory_space<vmem>>, vector<1x8x192xf32>
    %224 = vector.shape_cast %223 : vector<1x8x192xf32> to vector<8x192xf32>
    %225 = arith.select %14, %221, %224 : vector<8x192xi1>, vector<8x192xf32>
    %226 = arith.truncf %207 : vector<8x64xf32> to vector<8x64xbf16>
    %cst_70 = arith.constant dense<0.000000e+00> : vector<8x192xf32>
    %227 = tpu.matmul %226, %16, %cst_70 {dimension_numbers = #tpu.dot_dimension_numbers<[1], [0], [0], [1], [0, 0, 1, 1], [], []>} : vector<8x64xbf16>, vector<64x192xbf16>, vector<8x192xf32> -> vector<8x192xf32>
    %228 = vector.extract_strided_slice %225 {offsets = [0, 0], sizes = [8, 64], strides = [1, 1]} : vector<8x192xf32> to vector<8x64xf32>
    %229 = vector.extract_strided_slice %227 {offsets = [0, 0], sizes = [8, 64], strides = [1, 1]} : vector<8x192xf32> to vector<8x64xf32>
    %230 = arith.addf %228, %229 : vector<8x64xf32>
    %231 = arith.negf %230 : vector<8x64xf32>
    %232 = math.exp %231 : vector<8x64xf32>
    %cst_71 = arith.constant 1.000000e+00 : f32
    %233 = vector.broadcast %cst_71 : f32 to vector<8x64xf32>
    %234 = arith.addf %233, %232 : vector<8x64xf32>
    %235 = arith.divf %233, %234 : vector<8x64xf32>
    %236 = vector.extract_strided_slice %225 {offsets = [0, 64], sizes = [8, 64], strides = [1, 1]} : vector<8x192xf32> to vector<8x64xf32>
    %237 = vector.extract_strided_slice %227 {offsets = [0, 64], sizes = [8, 64], strides = [1, 1]} : vector<8x192xf32> to vector<8x64xf32>
    %238 = arith.addf %236, %237 : vector<8x64xf32>
    %239 = arith.negf %238 : vector<8x64xf32>
    %240 = math.exp %239 : vector<8x64xf32>
    %cst_72 = arith.constant 1.000000e+00 : f32
    %241 = vector.broadcast %cst_72 : f32 to vector<8x64xf32>
    %242 = arith.addf %241, %240 : vector<8x64xf32>
    %243 = arith.divf %241, %242 : vector<8x64xf32>
    %244 = vector.extract_strided_slice %225 {offsets = [0, 128], sizes = [8, 64], strides = [1, 1]} : vector<8x192xf32> to vector<8x64xf32>
    %245 = vector.extract_strided_slice %227 {offsets = [0, 128], sizes = [8, 64], strides = [1, 1]} : vector<8x192xf32> to vector<8x64xf32>
    %246 = arith.addf %245, %28 : vector<8x64xf32>
    %247 = arith.mulf %235, %246 : vector<8x64xf32>
    %248 = arith.addf %244, %247 : vector<8x64xf32>
    %249 = math.tanh %248 : vector<8x64xf32>
    %cst_73 = arith.constant 1.000000e+00 : f32
    %250 = vector.broadcast %cst_73 : f32 to vector<8x64xf32>
    %251 = arith.subf %250, %243 : vector<8x64xf32>
    %252 = arith.mulf %251, %249 : vector<8x64xf32>
    %253 = arith.mulf %243, %207 : vector<8x64xf32>
    %254 = arith.addf %252, %253 : vector<8x64xf32>
    %255 = vector.extract_strided_slice %254 {offsets = [0, 0], sizes = [8, 32], strides = [1, 1]} : vector<8x64xf32> to vector<8x32xf32>
    %256 = arith.index_cast %c4_i32 : i32 to index
    %c0_74 = arith.constant 0 : index
    %c0_75 = arith.constant 0 : index
    %257 = vector.load %arg14[%256, %c0_74, %c0_75] : memref<8x8x32xf32, #tpu.memory_space<vmem>>, vector<1x8x32xf32>
    %258 = vector.shape_cast %257 : vector<1x8x32xf32> to vector<8x32xf32>
    %259 = vector.shape_cast %255 : vector<8x32xf32> to vector<1x8x32xf32>
    tpu.vector_store %arg14[%256, %c0_74, %c0_75], %259 {strides = array<i32>} : memref<8x8x32xf32, #tpu.memory_space<vmem>>, vector<1x8x32xf32>,
    %260 = vector.extract_strided_slice %254 {offsets = [0, 32], sizes = [8, 32], strides = [1, 1]} : vector<8x64xf32> to vector<8x32xf32>
    %261 = arith.index_cast %218 : i32 to index
    %c0_76 = arith.constant 0 : index
    %c0_77 = arith.constant 0 : index
    %262 = vector.load %arg15[%261, %c0_76, %c0_77] : memref<8x8x32xf32, #tpu.memory_space<vmem>>, vector<1x8x32xf32>
    %263 = vector.shape_cast %262 : vector<1x8x32xf32> to vector<8x32xf32>
    %264 = vector.shape_cast %260 : vector<8x32xf32> to vector<1x8x32xf32>
    tpu.vector_store %arg15[%261, %c0_76, %c0_77], %264 {strides = array<i32>} : memref<8x8x32xf32, #tpu.memory_space<vmem>>, vector<1x8x32xf32>,
    %c5_i32 = arith.constant 5 : i32
    %c7_i32_78 = arith.constant 7 : i32
    %265 = arith.subi %c7_i32_78, %c5_i32 : i32
    %266 = arith.index_cast %c5_i32 : i32 to index
    %c0_79 = arith.constant 0 : index
    %c0_80 = arith.constant 0 : index
    %267 = vector.load %arg13[%266, %c0_79, %c0_80] : memref<8x8x192xf32, #tpu.memory_space<vmem>>, vector<1x8x192xf32>
    %268 = vector.shape_cast %267 : vector<1x8x192xf32> to vector<8x192xf32>
    %269 = arith.index_cast %265 : i32 to index
    %c0_81 = arith.constant 0 : index
    %c0_82 = arith.constant 0 : index
    %270 = vector.load %arg13[%269, %c0_81, %c0_82] : memref<8x8x192xf32, #tpu.memory_space<vmem>>, vector<1x8x192xf32>
    %271 = vector.shape_cast %270 : vector<1x8x192xf32> to vector<8x192xf32>
    %272 = arith.select %14, %268, %271 : vector<8x192xi1>, vector<8x192xf32>
    %273 = arith.truncf %254 : vector<8x64xf32> to vector<8x64xbf16>
    %cst_83 = arith.constant dense<0.000000e+00> : vector<8x192xf32>
    %274 = tpu.matmul %273, %16, %cst_83 {dimension_numbers = #tpu.dot_dimension_numbers<[1], [0], [0], [1], [0, 0, 1, 1], [], []>} : vector<8x64xbf16>, vector<64x192xbf16>, vector<8x192xf32> -> vector<8x192xf32>
    %275 = vector.extract_strided_slice %272 {offsets = [0, 0], sizes = [8, 64], strides = [1, 1]} : vector<8x192xf32> to vector<8x64xf32>
    %276 = vector.extract_strided_slice %274 {offsets = [0, 0], sizes = [8, 64], strides = [1, 1]} : vector<8x192xf32> to vector<8x64xf32>
    %277 = arith.addf %275, %276 : vector<8x64xf32>
    %278 = arith.negf %277 : vector<8x64xf32>
    %279 = math.exp %278 : vector<8x64xf32>
    %cst_84 = arith.constant 1.000000e+00 : f32
    %280 = vector.broadcast %cst_84 : f32 to vector<8x64xf32>
    %281 = arith.addf %280, %279 : vector<8x64xf32>
    %282 = arith.divf %280, %281 : vector<8x64xf32>
    %283 = vector.extract_strided_slice %272 {offsets = [0, 64], sizes = [8, 64], strides = [1, 1]} : vector<8x192xf32> to vector<8x64xf32>
    %284 = vector.extract_strided_slice %274 {offsets = [0, 64], sizes = [8, 64], strides = [1, 1]} : vector<8x192xf32> to vector<8x64xf32>
    %285 = arith.addf %283, %284 : vector<8x64xf32>
    %286 = arith.negf %285 : vector<8x64xf32>
    %287 = math.exp %286 : vector<8x64xf32>
    %cst_85 = arith.constant 1.000000e+00 : f32
    %288 = vector.broadcast %cst_85 : f32 to vector<8x64xf32>
    %289 = arith.addf %288, %287 : vector<8x64xf32>
    %290 = arith.divf %288, %289 : vector<8x64xf32>
    %291 = vector.extract_strided_slice %272 {offsets = [0, 128], sizes = [8, 64], strides = [1, 1]} : vector<8x192xf32> to vector<8x64xf32>
    %292 = vector.extract_strided_slice %274 {offsets = [0, 128], sizes = [8, 64], strides = [1, 1]} : vector<8x192xf32> to vector<8x64xf32>
    %293 = arith.addf %292, %28 : vector<8x64xf32>
    %294 = arith.mulf %282, %293 : vector<8x64xf32>
    %295 = arith.addf %291, %294 : vector<8x64xf32>
    %296 = math.tanh %295 : vector<8x64xf32>
    %cst_86 = arith.constant 1.000000e+00 : f32
    %297 = vector.broadcast %cst_86 : f32 to vector<8x64xf32>
    %298 = arith.subf %297, %290 : vector<8x64xf32>
    %299 = arith.mulf %298, %296 : vector<8x64xf32>
    %300 = arith.mulf %290, %254 : vector<8x64xf32>
    %301 = arith.addf %299, %300 : vector<8x64xf32>
    %302 = vector.extract_strided_slice %301 {offsets = [0, 0], sizes = [8, 32], strides = [1, 1]} : vector<8x64xf32> to vector<8x32xf32>
    %303 = arith.index_cast %c5_i32 : i32 to index
    %c0_87 = arith.constant 0 : index
    %c0_88 = arith.constant 0 : index
    %304 = vector.load %arg14[%303, %c0_87, %c0_88] : memref<8x8x32xf32, #tpu.memory_space<vmem>>, vector<1x8x32xf32>
    %305 = vector.shape_cast %304 : vector<1x8x32xf32> to vector<8x32xf32>
    %306 = vector.shape_cast %302 : vector<8x32xf32> to vector<1x8x32xf32>
    tpu.vector_store %arg14[%303, %c0_87, %c0_88], %306 {strides = array<i32>} : memref<8x8x32xf32, #tpu.memory_space<vmem>>, vector<1x8x32xf32>,
    %307 = vector.extract_strided_slice %301 {offsets = [0, 32], sizes = [8, 32], strides = [1, 1]} : vector<8x64xf32> to vector<8x32xf32>
    %308 = arith.index_cast %265 : i32 to index
    %c0_89 = arith.constant 0 : index
    %c0_90 = arith.constant 0 : index
    %309 = vector.load %arg15[%308, %c0_89, %c0_90] : memref<8x8x32xf32, #tpu.memory_space<vmem>>, vector<1x8x32xf32>
    %310 = vector.shape_cast %309 : vector<1x8x32xf32> to vector<8x32xf32>
    %311 = vector.shape_cast %307 : vector<8x32xf32> to vector<1x8x32xf32>
    tpu.vector_store %arg15[%308, %c0_89, %c0_90], %311 {strides = array<i32>} : memref<8x8x32xf32, #tpu.memory_space<vmem>>, vector<1x8x32xf32>,
    %c6_i32 = arith.constant 6 : i32
    %c7_i32_91 = arith.constant 7 : i32
    %312 = arith.subi %c7_i32_91, %c6_i32 : i32
    %313 = arith.index_cast %c6_i32 : i32 to index
    %c0_92 = arith.constant 0 : index
    %c0_93 = arith.constant 0 : index
    %314 = vector.load %arg13[%313, %c0_92, %c0_93] : memref<8x8x192xf32, #tpu.memory_space<vmem>>, vector<1x8x192xf32>
    %315 = vector.shape_cast %314 : vector<1x8x192xf32> to vector<8x192xf32>
    %316 = arith.index_cast %312 : i32 to index
    %c0_94 = arith.constant 0 : index
    %c0_95 = arith.constant 0 : index
    %317 = vector.load %arg13[%316, %c0_94, %c0_95] : memref<8x8x192xf32, #tpu.memory_space<vmem>>, vector<1x8x192xf32>
    %318 = vector.shape_cast %317 : vector<1x8x192xf32> to vector<8x192xf32>
    %319 = arith.select %14, %315, %318 : vector<8x192xi1>, vector<8x192xf32>
    %320 = arith.truncf %301 : vector<8x64xf32> to vector<8x64xbf16>
    %cst_96 = arith.constant dense<0.000000e+00> : vector<8x192xf32>
    %321 = tpu.matmul %320, %16, %cst_96 {dimension_numbers = #tpu.dot_dimension_numbers<[1], [0], [0], [1], [0, 0, 1, 1], [], []>} : vector<8x64xbf16>, vector<64x192xbf16>, vector<8x192xf32> -> vector<8x192xf32>
    %322 = vector.extract_strided_slice %319 {offsets = [0, 0], sizes = [8, 64], strides = [1, 1]} : vector<8x192xf32> to vector<8x64xf32>
    %323 = vector.extract_strided_slice %321 {offsets = [0, 0], sizes = [8, 64], strides = [1, 1]} : vector<8x192xf32> to vector<8x64xf32>
    %324 = arith.addf %322, %323 : vector<8x64xf32>
    %325 = arith.negf %324 : vector<8x64xf32>
    %326 = math.exp %325 : vector<8x64xf32>
    %cst_97 = arith.constant 1.000000e+00 : f32
    %327 = vector.broadcast %cst_97 : f32 to vector<8x64xf32>
    %328 = arith.addf %327, %326 : vector<8x64xf32>
    %329 = arith.divf %327, %328 : vector<8x64xf32>
    %330 = vector.extract_strided_slice %319 {offsets = [0, 64], sizes = [8, 64], strides = [1, 1]} : vector<8x192xf32> to vector<8x64xf32>
    %331 = vector.extract_strided_slice %321 {offsets = [0, 64], sizes = [8, 64], strides = [1, 1]} : vector<8x192xf32> to vector<8x64xf32>
    %332 = arith.addf %330, %331 : vector<8x64xf32>
    %333 = arith.negf %332 : vector<8x64xf32>
    %334 = math.exp %333 : vector<8x64xf32>
    %cst_98 = arith.constant 1.000000e+00 : f32
    %335 = vector.broadcast %cst_98 : f32 to vector<8x64xf32>
    %336 = arith.addf %335, %334 : vector<8x64xf32>
    %337 = arith.divf %335, %336 : vector<8x64xf32>
    %338 = vector.extract_strided_slice %319 {offsets = [0, 128], sizes = [8, 64], strides = [1, 1]} : vector<8x192xf32> to vector<8x64xf32>
    %339 = vector.extract_strided_slice %321 {offsets = [0, 128], sizes = [8, 64], strides = [1, 1]} : vector<8x192xf32> to vector<8x64xf32>
    %340 = arith.addf %339, %28 : vector<8x64xf32>
    %341 = arith.mulf %329, %340 : vector<8x64xf32>
    %342 = arith.addf %338, %341 : vector<8x64xf32>
    %343 = math.tanh %342 : vector<8x64xf32>
    %cst_99 = arith.constant 1.000000e+00 : f32
    %344 = vector.broadcast %cst_99 : f32 to vector<8x64xf32>
    %345 = arith.subf %344, %337 : vector<8x64xf32>
    %346 = arith.mulf %345, %343 : vector<8x64xf32>
    %347 = arith.mulf %337, %301 : vector<8x64xf32>
    %348 = arith.addf %346, %347 : vector<8x64xf32>
    %349 = vector.extract_strided_slice %348 {offsets = [0, 0], sizes = [8, 32], strides = [1, 1]} : vector<8x64xf32> to vector<8x32xf32>
    %350 = arith.index_cast %c6_i32 : i32 to index
    %c0_100 = arith.constant 0 : index
    %c0_101 = arith.constant 0 : index
    %351 = vector.load %arg14[%350, %c0_100, %c0_101] : memref<8x8x32xf32, #tpu.memory_space<vmem>>, vector<1x8x32xf32>
    %352 = vector.shape_cast %351 : vector<1x8x32xf32> to vector<8x32xf32>
    %353 = vector.shape_cast %349 : vector<8x32xf32> to vector<1x8x32xf32>
    tpu.vector_store %arg14[%350, %c0_100, %c0_101], %353 {strides = array<i32>} : memref<8x8x32xf32, #tpu.memory_space<vmem>>, vector<1x8x32xf32>,
    %354 = vector.extract_strided_slice %348 {offsets = [0, 32], sizes = [8, 32], strides = [1, 1]} : vector<8x64xf32> to vector<8x32xf32>
    %355 = arith.index_cast %312 : i32 to index
    %c0_102 = arith.constant 0 : index
    %c0_103 = arith.constant 0 : index
    %356 = vector.load %arg15[%355, %c0_102, %c0_103] : memref<8x8x32xf32, #tpu.memory_space<vmem>>, vector<1x8x32xf32>
    %357 = vector.shape_cast %356 : vector<1x8x32xf32> to vector<8x32xf32>
    %358 = vector.shape_cast %354 : vector<8x32xf32> to vector<1x8x32xf32>
    tpu.vector_store %arg15[%355, %c0_102, %c0_103], %358 {strides = array<i32>} : memref<8x8x32xf32, #tpu.memory_space<vmem>>, vector<1x8x32xf32>,
    %c7_i32_104 = arith.constant 7 : i32
    %c7_i32_105 = arith.constant 7 : i32
    %359 = arith.subi %c7_i32_105, %c7_i32_104 : i32
    %360 = arith.index_cast %c7_i32_104 : i32 to index
    %c0_106 = arith.constant 0 : index
    %c0_107 = arith.constant 0 : index
    %361 = vector.load %arg13[%360, %c0_106, %c0_107] : memref<8x8x192xf32, #tpu.memory_space<vmem>>, vector<1x8x192xf32>
    %362 = vector.shape_cast %361 : vector<1x8x192xf32> to vector<8x192xf32>
    %363 = arith.index_cast %359 : i32 to index
    %c0_108 = arith.constant 0 : index
    %c0_109 = arith.constant 0 : index
    %364 = vector.load %arg13[%363, %c0_108, %c0_109] : memref<8x8x192xf32, #tpu.memory_space<vmem>>, vector<1x8x192xf32>
    %365 = vector.shape_cast %364 : vector<1x8x192xf32> to vector<8x192xf32>
    %366 = arith.select %14, %362, %365 : vector<8x192xi1>, vector<8x192xf32>
    %367 = arith.truncf %348 : vector<8x64xf32> to vector<8x64xbf16>
    %cst_110 = arith.constant dense<0.000000e+00> : vector<8x192xf32>
    %368 = tpu.matmul %367, %16, %cst_110 {dimension_numbers = #tpu.dot_dimension_numbers<[1], [0], [0], [1], [0, 0, 1, 1], [], []>} : vector<8x64xbf16>, vector<64x192xbf16>, vector<8x192xf32> -> vector<8x192xf32>
    %369 = vector.extract_strided_slice %366 {offsets = [0, 0], sizes = [8, 64], strides = [1, 1]} : vector<8x192xf32> to vector<8x64xf32>
    %370 = vector.extract_strided_slice %368 {offsets = [0, 0], sizes = [8, 64], strides = [1, 1]} : vector<8x192xf32> to vector<8x64xf32>
    %371 = arith.addf %369, %370 : vector<8x64xf32>
    %372 = arith.negf %371 : vector<8x64xf32>
    %373 = math.exp %372 : vector<8x64xf32>
    %cst_111 = arith.constant 1.000000e+00 : f32
    %374 = vector.broadcast %cst_111 : f32 to vector<8x64xf32>
    %375 = arith.addf %374, %373 : vector<8x64xf32>
    %376 = arith.divf %374, %375 : vector<8x64xf32>
    %377 = vector.extract_strided_slice %366 {offsets = [0, 64], sizes = [8, 64], strides = [1, 1]} : vector<8x192xf32> to vector<8x64xf32>
    %378 = vector.extract_strided_slice %368 {offsets = [0, 64], sizes = [8, 64], strides = [1, 1]} : vector<8x192xf32> to vector<8x64xf32>
    %379 = arith.addf %377, %378 : vector<8x64xf32>
    %380 = arith.negf %379 : vector<8x64xf32>
    %381 = math.exp %380 : vector<8x64xf32>
    %cst_112 = arith.constant 1.000000e+00 : f32
    %382 = vector.broadcast %cst_112 : f32 to vector<8x64xf32>
    %383 = arith.addf %382, %381 : vector<8x64xf32>
    %384 = arith.divf %382, %383 : vector<8x64xf32>
    %385 = vector.extract_strided_slice %366 {offsets = [0, 128], sizes = [8, 64], strides = [1, 1]} : vector<8x192xf32> to vector<8x64xf32>
    %386 = vector.extract_strided_slice %368 {offsets = [0, 128], sizes = [8, 64], strides = [1, 1]} : vector<8x192xf32> to vector<8x64xf32>
    %387 = arith.addf %386, %28 : vector<8x64xf32>
    %388 = arith.mulf %376, %387 : vector<8x64xf32>
    %389 = arith.addf %385, %388 : vector<8x64xf32>
    %390 = math.tanh %389 : vector<8x64xf32>
    %cst_113 = arith.constant 1.000000e+00 : f32
    %391 = vector.broadcast %cst_113 : f32 to vector<8x64xf32>
    %392 = arith.subf %391, %384 : vector<8x64xf32>
    %393 = arith.mulf %392, %390 : vector<8x64xf32>
    %394 = arith.mulf %384, %348 : vector<8x64xf32>
    %395 = arith.addf %393, %394 : vector<8x64xf32>
    %396 = vector.extract_strided_slice %395 {offsets = [0, 0], sizes = [8, 32], strides = [1, 1]} : vector<8x64xf32> to vector<8x32xf32>
    %397 = arith.index_cast %c7_i32_104 : i32 to index
    %c0_114 = arith.constant 0 : index
    %c0_115 = arith.constant 0 : index
    %398 = vector.load %arg14[%397, %c0_114, %c0_115] : memref<8x8x32xf32, #tpu.memory_space<vmem>>, vector<1x8x32xf32>
    %399 = vector.shape_cast %398 : vector<1x8x32xf32> to vector<8x32xf32>
    %400 = vector.shape_cast %396 : vector<8x32xf32> to vector<1x8x32xf32>
    tpu.vector_store %arg14[%397, %c0_114, %c0_115], %400 {strides = array<i32>} : memref<8x8x32xf32, #tpu.memory_space<vmem>>, vector<1x8x32xf32>,
    %401 = vector.extract_strided_slice %395 {offsets = [0, 32], sizes = [8, 32], strides = [1, 1]} : vector<8x64xf32> to vector<8x32xf32>
    %402 = arith.index_cast %359 : i32 to index
    %c0_116 = arith.constant 0 : index
    %c0_117 = arith.constant 0 : index
    %403 = vector.load %arg15[%402, %c0_116, %c0_117] : memref<8x8x32xf32, #tpu.memory_space<vmem>>, vector<1x8x32xf32>
    %404 = vector.shape_cast %403 : vector<1x8x32xf32> to vector<8x32xf32>
    %405 = vector.shape_cast %401 : vector<8x32xf32> to vector<1x8x32xf32>
    tpu.vector_store %arg15[%402, %c0_116, %c0_117], %405 {strides = array<i32>} : memref<8x8x32xf32, #tpu.memory_space<vmem>>, vector<1x8x32xf32>,
    %c8_i32 = arith.constant 8 : i32
    %c0_118 = arith.constant 0 : index
    %c0_119 = arith.constant 0 : index
    %406 = vector.load %arg6[%c0_118, %c0_119] : memref<64x192xbf16, #tpu.memory_space<vmem>>, vector<64x192xbf16>
    %c0_120 = arith.constant 0 : index
    %c0_121 = arith.constant 0 : index
    %407 = vector.load %arg7[%c0_120, %c0_121] : memref<64x192xbf16, #tpu.memory_space<vmem>>, vector<64x192xbf16>
    %c0_122 = arith.constant 0 : index
    %c0_123 = arith.constant 0 : index
    %408 = vector.load %arg8[%c0_122, %c0_123] : memref<1x192xf32, #tpu.memory_space<vmem>>, vector<1x192xf32>
    %c0_124 = arith.constant 0 : index
    %c0_125 = arith.constant 0 : index
    %409 = vector.load %arg9[%c0_124, %c0_125] : memref<1x64xf32, #tpu.memory_space<vmem>>, vector<1x64xf32>
    %c0_126 = arith.constant 0 : index
    %c0_127 = arith.constant 0 : index
    %c0_128 = arith.constant 0 : index
    %410 = vector.load %arg14[%c0_126, %c0_127, %c0_128] : memref<8x8x32xf32, #tpu.memory_space<vmem>>, vector<8x8x32xf32>
    %411 = vector.shape_cast %410 : vector<8x8x32xf32> to vector<64x32xf32>
    %412 = arith.truncf %411 : vector<64x32xf32> to vector<64x32xbf16>
    %c0_129 = arith.constant 0 : index
    %c0_130 = arith.constant 0 : index
    %c0_131 = arith.constant 0 : index
    %413 = vector.load %arg15[%c0_129, %c0_130, %c0_131] : memref<8x8x32xf32, #tpu.memory_space<vmem>>, vector<8x8x32xf32>
    %414 = vector.shape_cast %413 : vector<8x8x32xf32> to vector<64x32xf32>
    %415 = arith.truncf %414 : vector<64x32xf32> to vector<64x32xbf16>
    %416 = vector.extract_strided_slice %406 {offsets = [0, 0], sizes = [32, 192], strides = [1, 1]} : vector<64x192xbf16> to vector<32x192xbf16>
    %cst_132 = arith.constant dense<0.000000e+00> : vector<64x192xf32>
    %417 = tpu.matmul %412, %416, %cst_132 {dimension_numbers = #tpu.dot_dimension_numbers<[1], [0], [0], [1], [0, 0, 1, 1], [], []>} : vector<64x32xbf16>, vector<32x192xbf16>, vector<64x192xf32> -> vector<64x192xf32>
    %418 = vector.extract_strided_slice %406 {offsets = [32, 0], sizes = [32, 192], strides = [1, 1]} : vector<64x192xbf16> to vector<32x192xbf16>
    %cst_133 = arith.constant dense<0.000000e+00> : vector<64x192xf32>
    %419 = tpu.matmul %415, %418, %cst_133 {dimension_numbers = #tpu.dot_dimension_numbers<[1], [0], [0], [1], [0, 0, 1, 1], [], []>} : vector<64x32xbf16>, vector<32x192xbf16>, vector<64x192xf32> -> vector<64x192xf32>
    %420 = arith.addf %417, %419 : vector<64x192xf32>
    %421 = vector.broadcast %408 : vector<1x192xf32> to vector<64x192xf32>
    %422 = arith.addf %420, %421 : vector<64x192xf32>
    %423 = vector.shape_cast %422 : vector<64x192xf32> to vector<8x8x192xf32>
    %c0_134 = arith.constant 0 : index
    %c0_135 = arith.constant 0 : index
    %c0_136 = arith.constant 0 : index
    %424 = vector.load %arg13[%c0_134, %c0_135, %c0_136] : memref<8x8x192xf32, #tpu.memory_space<vmem>>, vector<8x8x192xf32>
    tpu.vector_store %arg13[%c0_134, %c0_135, %c0_136], %423 {strides = array<i32>} : memref<8x8x192xf32, #tpu.memory_space<vmem>>, vector<8x8x192xf32>,
    %425 = vector.shape_cast %409 : vector<1x64xf32> to vector<1x64xf32>
    %426 = vector.broadcast %425 : vector<1x64xf32> to vector<8x64xf32>
    %cst_137 = arith.constant 0.000000e+00 : f32
    %427 = vector.broadcast %cst_137 : f32 to vector<8x64xf32>
    %c0_i32_138 = arith.constant 0 : i32
    %c7_i32_139 = arith.constant 7 : i32
    %428 = arith.subi %c7_i32_139, %c0_i32_138 : i32
    %429 = arith.index_cast %c0_i32_138 : i32 to index
    %c0_140 = arith.constant 0 : index
    %c0_141 = arith.constant 0 : index
    %430 = vector.load %arg13[%429, %c0_140, %c0_141] : memref<8x8x192xf32, #tpu.memory_space<vmem>>, vector<1x8x192xf32>
    %431 = vector.shape_cast %430 : vector<1x8x192xf32> to vector<8x192xf32>
    %432 = arith.index_cast %428 : i32 to index
    %c0_142 = arith.constant 0 : index
    %c0_143 = arith.constant 0 : index
    %433 = vector.load %arg13[%432, %c0_142, %c0_143] : memref<8x8x192xf32, #tpu.memory_space<vmem>>, vector<1x8x192xf32>
    %434 = vector.shape_cast %433 : vector<1x8x192xf32> to vector<8x192xf32>
    %435 = arith.select %14, %431, %434 : vector<8x192xi1>, vector<8x192xf32>
    %436 = arith.truncf %427 : vector<8x64xf32> to vector<8x64xbf16>
    %cst_144 = arith.constant dense<0.000000e+00> : vector<8x192xf32>
    %437 = tpu.matmul %436, %407, %cst_144 {dimension_numbers = #tpu.dot_dimension_numbers<[1], [0], [0], [1], [0, 0, 1, 1], [], []>} : vector<8x64xbf16>, vector<64x192xbf16>, vector<8x192xf32> -> vector<8x192xf32>
    %438 = vector.extract_strided_slice %435 {offsets = [0, 0], sizes = [8, 64], strides = [1, 1]} : vector<8x192xf32> to vector<8x64xf32>
    %439 = vector.extract_strided_slice %437 {offsets = [0, 0], sizes = [8, 64], strides = [1, 1]} : vector<8x192xf32> to vector<8x64xf32>
    %440 = arith.addf %438, %439 : vector<8x64xf32>
    %441 = arith.negf %440 : vector<8x64xf32>
    %442 = math.exp %441 : vector<8x64xf32>
    %cst_145 = arith.constant 1.000000e+00 : f32
    %443 = vector.broadcast %cst_145 : f32 to vector<8x64xf32>
    %444 = arith.addf %443, %442 : vector<8x64xf32>
    %445 = arith.divf %443, %444 : vector<8x64xf32>
    %446 = vector.extract_strided_slice %435 {offsets = [0, 64], sizes = [8, 64], strides = [1, 1]} : vector<8x192xf32> to vector<8x64xf32>
    %447 = vector.extract_strided_slice %437 {offsets = [0, 64], sizes = [8, 64], strides = [1, 1]} : vector<8x192xf32> to vector<8x64xf32>
    %448 = arith.addf %446, %447 : vector<8x64xf32>
    %449 = arith.negf %448 : vector<8x64xf32>
    %450 = math.exp %449 : vector<8x64xf32>
    %cst_146 = arith.constant 1.000000e+00 : f32
    %451 = vector.broadcast %cst_146 : f32 to vector<8x64xf32>
    %452 = arith.addf %451, %450 : vector<8x64xf32>
    %453 = arith.divf %451, %452 : vector<8x64xf32>
    %454 = vector.extract_strided_slice %435 {offsets = [0, 128], sizes = [8, 64], strides = [1, 1]} : vector<8x192xf32> to vector<8x64xf32>
    %455 = vector.extract_strided_slice %437 {offsets = [0, 128], sizes = [8, 64], strides = [1, 1]} : vector<8x192xf32> to vector<8x64xf32>
    %456 = arith.addf %455, %426 : vector<8x64xf32>
    %457 = arith.mulf %445, %456 : vector<8x64xf32>
    %458 = arith.addf %454, %457 : vector<8x64xf32>
    %459 = math.tanh %458 : vector<8x64xf32>
    %cst_147 = arith.constant 1.000000e+00 : f32
    %460 = vector.broadcast %cst_147 : f32 to vector<8x64xf32>
    %461 = arith.subf %460, %453 : vector<8x64xf32>
    %462 = arith.mulf %461, %459 : vector<8x64xf32>
    %463 = arith.mulf %453, %427 : vector<8x64xf32>
    %464 = arith.addf %462, %463 : vector<8x64xf32>
    %465 = vector.extract_strided_slice %464 {offsets = [0, 0], sizes = [8, 32], strides = [1, 1]} : vector<8x64xf32> to vector<8x32xf32>
    %466 = arith.index_cast %c0_i32_138 : i32 to index
    %c0_148 = arith.constant 0 : index
    %c0_149 = arith.constant 0 : index
    %467 = vector.load %arg14[%466, %c0_148, %c0_149] : memref<8x8x32xf32, #tpu.memory_space<vmem>>, vector<1x8x32xf32>
    %468 = vector.shape_cast %467 : vector<1x8x32xf32> to vector<8x32xf32>
    %469 = vector.shape_cast %465 : vector<8x32xf32> to vector<1x8x32xf32>
    tpu.vector_store %arg14[%466, %c0_148, %c0_149], %469 {strides = array<i32>} : memref<8x8x32xf32, #tpu.memory_space<vmem>>, vector<1x8x32xf32>,
    %470 = vector.extract_strided_slice %464 {offsets = [0, 32], sizes = [8, 32], strides = [1, 1]} : vector<8x64xf32> to vector<8x32xf32>
    %471 = arith.index_cast %428 : i32 to index
    %c0_150 = arith.constant 0 : index
    %c0_151 = arith.constant 0 : index
    %472 = vector.load %arg15[%471, %c0_150, %c0_151] : memref<8x8x32xf32, #tpu.memory_space<vmem>>, vector<1x8x32xf32>
    %473 = vector.shape_cast %472 : vector<1x8x32xf32> to vector<8x32xf32>
    %474 = vector.shape_cast %470 : vector<8x32xf32> to vector<1x8x32xf32>
    tpu.vector_store %arg15[%471, %c0_150, %c0_151], %474 {strides = array<i32>} : memref<8x8x32xf32, #tpu.memory_space<vmem>>, vector<1x8x32xf32>,
    %c1_i32_152 = arith.constant 1 : i32
    %c7_i32_153 = arith.constant 7 : i32
    %475 = arith.subi %c7_i32_153, %c1_i32_152 : i32
    %476 = arith.index_cast %c1_i32_152 : i32 to index
    %c0_154 = arith.constant 0 : index
    %c0_155 = arith.constant 0 : index
    %477 = vector.load %arg13[%476, %c0_154, %c0_155] : memref<8x8x192xf32, #tpu.memory_space<vmem>>, vector<1x8x192xf32>
    %478 = vector.shape_cast %477 : vector<1x8x192xf32> to vector<8x192xf32>
    %479 = arith.index_cast %475 : i32 to index
    %c0_156 = arith.constant 0 : index
    %c0_157 = arith.constant 0 : index
    %480 = vector.load %arg13[%479, %c0_156, %c0_157] : memref<8x8x192xf32, #tpu.memory_space<vmem>>, vector<1x8x192xf32>
    %481 = vector.shape_cast %480 : vector<1x8x192xf32> to vector<8x192xf32>
    %482 = arith.select %14, %478, %481 : vector<8x192xi1>, vector<8x192xf32>
    %483 = arith.truncf %464 : vector<8x64xf32> to vector<8x64xbf16>
    %cst_158 = arith.constant dense<0.000000e+00> : vector<8x192xf32>
    %484 = tpu.matmul %483, %407, %cst_158 {dimension_numbers = #tpu.dot_dimension_numbers<[1], [0], [0], [1], [0, 0, 1, 1], [], []>} : vector<8x64xbf16>, vector<64x192xbf16>, vector<8x192xf32> -> vector<8x192xf32>
    %485 = vector.extract_strided_slice %482 {offsets = [0, 0], sizes = [8, 64], strides = [1, 1]} : vector<8x192xf32> to vector<8x64xf32>
    %486 = vector.extract_strided_slice %484 {offsets = [0, 0], sizes = [8, 64], strides = [1, 1]} : vector<8x192xf32> to vector<8x64xf32>
    %487 = arith.addf %485, %486 : vector<8x64xf32>
    %488 = arith.negf %487 : vector<8x64xf32>
    %489 = math.exp %488 : vector<8x64xf32>
    %cst_159 = arith.constant 1.000000e+00 : f32
    %490 = vector.broadcast %cst_159 : f32 to vector<8x64xf32>
    %491 = arith.addf %490, %489 : vector<8x64xf32>
    %492 = arith.divf %490, %491 : vector<8x64xf32>
    %493 = vector.extract_strided_slice %482 {offsets = [0, 64], sizes = [8, 64], strides = [1, 1]} : vector<8x192xf32> to vector<8x64xf32>
    %494 = vector.extract_strided_slice %484 {offsets = [0, 64], sizes = [8, 64], strides = [1, 1]} : vector<8x192xf32> to vector<8x64xf32>
    %495 = arith.addf %493, %494 : vector<8x64xf32>
    %496 = arith.negf %495 : vector<8x64xf32>
    %497 = math.exp %496 : vector<8x64xf32>
    %cst_160 = arith.constant 1.000000e+00 : f32
    %498 = vector.broadcast %cst_160 : f32 to vector<8x64xf32>
    %499 = arith.addf %498, %497 : vector<8x64xf32>
    %500 = arith.divf %498, %499 : vector<8x64xf32>
    %501 = vector.extract_strided_slice %482 {offsets = [0, 128], sizes = [8, 64], strides = [1, 1]} : vector<8x192xf32> to vector<8x64xf32>
    %502 = vector.extract_strided_slice %484 {offsets = [0, 128], sizes = [8, 64], strides = [1, 1]} : vector<8x192xf32> to vector<8x64xf32>
    %503 = arith.addf %502, %426 : vector<8x64xf32>
    %504 = arith.mulf %492, %503 : vector<8x64xf32>
    %505 = arith.addf %501, %504 : vector<8x64xf32>
    %506 = math.tanh %505 : vector<8x64xf32>
    %cst_161 = arith.constant 1.000000e+00 : f32
    %507 = vector.broadcast %cst_161 : f32 to vector<8x64xf32>
    %508 = arith.subf %507, %500 : vector<8x64xf32>
    %509 = arith.mulf %508, %506 : vector<8x64xf32>
    %510 = arith.mulf %500, %464 : vector<8x64xf32>
    %511 = arith.addf %509, %510 : vector<8x64xf32>
    %512 = vector.extract_strided_slice %511 {offsets = [0, 0], sizes = [8, 32], strides = [1, 1]} : vector<8x64xf32> to vector<8x32xf32>
    %513 = arith.index_cast %c1_i32_152 : i32 to index
    %c0_162 = arith.constant 0 : index
    %c0_163 = arith.constant 0 : index
    %514 = vector.load %arg14[%513, %c0_162, %c0_163] : memref<8x8x32xf32, #tpu.memory_space<vmem>>, vector<1x8x32xf32>
    %515 = vector.shape_cast %514 : vector<1x8x32xf32> to vector<8x32xf32>
    %516 = vector.shape_cast %512 : vector<8x32xf32> to vector<1x8x32xf32>
    tpu.vector_store %arg14[%513, %c0_162, %c0_163], %516 {strides = array<i32>} : memref<8x8x32xf32, #tpu.memory_space<vmem>>, vector<1x8x32xf32>,
    %517 = vector.extract_strided_slice %511 {offsets = [0, 32], sizes = [8, 32], strides = [1, 1]} : vector<8x64xf32> to vector<8x32xf32>
    %518 = arith.index_cast %475 : i32 to index
    %c0_164 = arith.constant 0 : index
    %c0_165 = arith.constant 0 : index
    %519 = vector.load %arg15[%518, %c0_164, %c0_165] : memref<8x8x32xf32, #tpu.memory_space<vmem>>, vector<1x8x32xf32>
    %520 = vector.shape_cast %519 : vector<1x8x32xf32> to vector<8x32xf32>
    %521 = vector.shape_cast %517 : vector<8x32xf32> to vector<1x8x32xf32>
    tpu.vector_store %arg15[%518, %c0_164, %c0_165], %521 {strides = array<i32>} : memref<8x8x32xf32, #tpu.memory_space<vmem>>, vector<1x8x32xf32>,
    %c2_i32_166 = arith.constant 2 : i32
    %c7_i32_167 = arith.constant 7 : i32
    %522 = arith.subi %c7_i32_167, %c2_i32_166 : i32
    %523 = arith.index_cast %c2_i32_166 : i32 to index
    %c0_168 = arith.constant 0 : index
    %c0_169 = arith.constant 0 : index
    %524 = vector.load %arg13[%523, %c0_168, %c0_169] : memref<8x8x192xf32, #tpu.memory_space<vmem>>, vector<1x8x192xf32>
    %525 = vector.shape_cast %524 : vector<1x8x192xf32> to vector<8x192xf32>
    %526 = arith.index_cast %522 : i32 to index
    %c0_170 = arith.constant 0 : index
    %c0_171 = arith.constant 0 : index
    %527 = vector.load %arg13[%526, %c0_170, %c0_171] : memref<8x8x192xf32, #tpu.memory_space<vmem>>, vector<1x8x192xf32>
    %528 = vector.shape_cast %527 : vector<1x8x192xf32> to vector<8x192xf32>
    %529 = arith.select %14, %525, %528 : vector<8x192xi1>, vector<8x192xf32>
    %530 = arith.truncf %511 : vector<8x64xf32> to vector<8x64xbf16>
    %cst_172 = arith.constant dense<0.000000e+00> : vector<8x192xf32>
    %531 = tpu.matmul %530, %407, %cst_172 {dimension_numbers = #tpu.dot_dimension_numbers<[1], [0], [0], [1], [0, 0, 1, 1], [], []>} : vector<8x64xbf16>, vector<64x192xbf16>, vector<8x192xf32> -> vector<8x192xf32>
    %532 = vector.extract_strided_slice %529 {offsets = [0, 0], sizes = [8, 64], strides = [1, 1]} : vector<8x192xf32> to vector<8x64xf32>
    %533 = vector.extract_strided_slice %531 {offsets = [0, 0], sizes = [8, 64], strides = [1, 1]} : vector<8x192xf32> to vector<8x64xf32>
    %534 = arith.addf %532, %533 : vector<8x64xf32>
    %535 = arith.negf %534 : vector<8x64xf32>
    %536 = math.exp %535 : vector<8x64xf32>
    %cst_173 = arith.constant 1.000000e+00 : f32
    %537 = vector.broadcast %cst_173 : f32 to vector<8x64xf32>
    %538 = arith.addf %537, %536 : vector<8x64xf32>
    %539 = arith.divf %537, %538 : vector<8x64xf32>
    %540 = vector.extract_strided_slice %529 {offsets = [0, 64], sizes = [8, 64], strides = [1, 1]} : vector<8x192xf32> to vector<8x64xf32>
    %541 = vector.extract_strided_slice %531 {offsets = [0, 64], sizes = [8, 64], strides = [1, 1]} : vector<8x192xf32> to vector<8x64xf32>
    %542 = arith.addf %540, %541 : vector<8x64xf32>
    %543 = arith.negf %542 : vector<8x64xf32>
    %544 = math.exp %543 : vector<8x64xf32>
    %cst_174 = arith.constant 1.000000e+00 : f32
    %545 = vector.broadcast %cst_174 : f32 to vector<8x64xf32>
    %546 = arith.addf %545, %544 : vector<8x64xf32>
    %547 = arith.divf %545, %546 : vector<8x64xf32>
    %548 = vector.extract_strided_slice %529 {offsets = [0, 128], sizes = [8, 64], strides = [1, 1]} : vector<8x192xf32> to vector<8x64xf32>
    %549 = vector.extract_strided_slice %531 {offsets = [0, 128], sizes = [8, 64], strides = [1, 1]} : vector<8x192xf32> to vector<8x64xf32>
    %550 = arith.addf %549, %426 : vector<8x64xf32>
    %551 = arith.mulf %539, %550 : vector<8x64xf32>
    %552 = arith.addf %548, %551 : vector<8x64xf32>
    %553 = math.tanh %552 : vector<8x64xf32>
    %cst_175 = arith.constant 1.000000e+00 : f32
    %554 = vector.broadcast %cst_175 : f32 to vector<8x64xf32>
    %555 = arith.subf %554, %547 : vector<8x64xf32>
    %556 = arith.mulf %555, %553 : vector<8x64xf32>
    %557 = arith.mulf %547, %511 : vector<8x64xf32>
    %558 = arith.addf %556, %557 : vector<8x64xf32>
    %559 = vector.extract_strided_slice %558 {offsets = [0, 0], sizes = [8, 32], strides = [1, 1]} : vector<8x64xf32> to vector<8x32xf32>
    %560 = arith.index_cast %c2_i32_166 : i32 to index
    %c0_176 = arith.constant 0 : index
    %c0_177 = arith.constant 0 : index
    %561 = vector.load %arg14[%560, %c0_176, %c0_177] : memref<8x8x32xf32, #tpu.memory_space<vmem>>, vector<1x8x32xf32>
    %562 = vector.shape_cast %561 : vector<1x8x32xf32> to vector<8x32xf32>
    %563 = vector.shape_cast %559 : vector<8x32xf32> to vector<1x8x32xf32>
    tpu.vector_store %arg14[%560, %c0_176, %c0_177], %563 {strides = array<i32>} : memref<8x8x32xf32, #tpu.memory_space<vmem>>, vector<1x8x32xf32>,
    %564 = vector.extract_strided_slice %558 {offsets = [0, 32], sizes = [8, 32], strides = [1, 1]} : vector<8x64xf32> to vector<8x32xf32>
    %565 = arith.index_cast %522 : i32 to index
    %c0_178 = arith.constant 0 : index
    %c0_179 = arith.constant 0 : index
    %566 = vector.load %arg15[%565, %c0_178, %c0_179] : memref<8x8x32xf32, #tpu.memory_space<vmem>>, vector<1x8x32xf32>
    %567 = vector.shape_cast %566 : vector<1x8x32xf32> to vector<8x32xf32>
    %568 = vector.shape_cast %564 : vector<8x32xf32> to vector<1x8x32xf32>
    tpu.vector_store %arg15[%565, %c0_178, %c0_179], %568 {strides = array<i32>} : memref<8x8x32xf32, #tpu.memory_space<vmem>>, vector<1x8x32xf32>,
    %c3_i32_180 = arith.constant 3 : i32
    %c7_i32_181 = arith.constant 7 : i32
    %569 = arith.subi %c7_i32_181, %c3_i32_180 : i32
    %570 = arith.index_cast %c3_i32_180 : i32 to index
    %c0_182 = arith.constant 0 : index
    %c0_183 = arith.constant 0 : index
    %571 = vector.load %arg13[%570, %c0_182, %c0_183] : memref<8x8x192xf32, #tpu.memory_space<vmem>>, vector<1x8x192xf32>
    %572 = vector.shape_cast %571 : vector<1x8x192xf32> to vector<8x192xf32>
    %573 = arith.index_cast %569 : i32 to index
    %c0_184 = arith.constant 0 : index
    %c0_185 = arith.constant 0 : index
    %574 = vector.load %arg13[%573, %c0_184, %c0_185] : memref<8x8x192xf32, #tpu.memory_space<vmem>>, vector<1x8x192xf32>
    %575 = vector.shape_cast %574 : vector<1x8x192xf32> to vector<8x192xf32>
    %576 = arith.select %14, %572, %575 : vector<8x192xi1>, vector<8x192xf32>
    %577 = arith.truncf %558 : vector<8x64xf32> to vector<8x64xbf16>
    %cst_186 = arith.constant dense<0.000000e+00> : vector<8x192xf32>
    %578 = tpu.matmul %577, %407, %cst_186 {dimension_numbers = #tpu.dot_dimension_numbers<[1], [0], [0], [1], [0, 0, 1, 1], [], []>} : vector<8x64xbf16>, vector<64x192xbf16>, vector<8x192xf32> -> vector<8x192xf32>
    %579 = vector.extract_strided_slice %576 {offsets = [0, 0], sizes = [8, 64], strides = [1, 1]} : vector<8x192xf32> to vector<8x64xf32>
    %580 = vector.extract_strided_slice %578 {offsets = [0, 0], sizes = [8, 64], strides = [1, 1]} : vector<8x192xf32> to vector<8x64xf32>
    %581 = arith.addf %579, %580 : vector<8x64xf32>
    %582 = arith.negf %581 : vector<8x64xf32>
    %583 = math.exp %582 : vector<8x64xf32>
    %cst_187 = arith.constant 1.000000e+00 : f32
    %584 = vector.broadcast %cst_187 : f32 to vector<8x64xf32>
    %585 = arith.addf %584, %583 : vector<8x64xf32>
    %586 = arith.divf %584, %585 : vector<8x64xf32>
    %587 = vector.extract_strided_slice %576 {offsets = [0, 64], sizes = [8, 64], strides = [1, 1]} : vector<8x192xf32> to vector<8x64xf32>
    %588 = vector.extract_strided_slice %578 {offsets = [0, 64], sizes = [8, 64], strides = [1, 1]} : vector<8x192xf32> to vector<8x64xf32>
    %589 = arith.addf %587, %588 : vector<8x64xf32>
    %590 = arith.negf %589 : vector<8x64xf32>
    %591 = math.exp %590 : vector<8x64xf32>
    %cst_188 = arith.constant 1.000000e+00 : f32
    %592 = vector.broadcast %cst_188 : f32 to vector<8x64xf32>
    %593 = arith.addf %592, %591 : vector<8x64xf32>
    %594 = arith.divf %592, %593 : vector<8x64xf32>
    %595 = vector.extract_strided_slice %576 {offsets = [0, 128], sizes = [8, 64], strides = [1, 1]} : vector<8x192xf32> to vector<8x64xf32>
    %596 = vector.extract_strided_slice %578 {offsets = [0, 128], sizes = [8, 64], strides = [1, 1]} : vector<8x192xf32> to vector<8x64xf32>
    %597 = arith.addf %596, %426 : vector<8x64xf32>
    %598 = arith.mulf %586, %597 : vector<8x64xf32>
    %599 = arith.addf %595, %598 : vector<8x64xf32>
    %600 = math.tanh %599 : vector<8x64xf32>
    %cst_189 = arith.constant 1.000000e+00 : f32
    %601 = vector.broadcast %cst_189 : f32 to vector<8x64xf32>
    %602 = arith.subf %601, %594 : vector<8x64xf32>
    %603 = arith.mulf %602, %600 : vector<8x64xf32>
    %604 = arith.mulf %594, %558 : vector<8x64xf32>
    %605 = arith.addf %603, %604 : vector<8x64xf32>
    %606 = vector.extract_strided_slice %605 {offsets = [0, 0], sizes = [8, 32], strides = [1, 1]} : vector<8x64xf32> to vector<8x32xf32>
    %607 = arith.index_cast %c3_i32_180 : i32 to index
    %c0_190 = arith.constant 0 : index
    %c0_191 = arith.constant 0 : index
    %608 = vector.load %arg14[%607, %c0_190, %c0_191] : memref<8x8x32xf32, #tpu.memory_space<vmem>>, vector<1x8x32xf32>
    %609 = vector.shape_cast %608 : vector<1x8x32xf32> to vector<8x32xf32>
    %610 = vector.shape_cast %606 : vector<8x32xf32> to vector<1x8x32xf32>
    tpu.vector_store %arg14[%607, %c0_190, %c0_191], %610 {strides = array<i32>} : memref<8x8x32xf32, #tpu.memory_space<vmem>>, vector<1x8x32xf32>,
    %611 = vector.extract_strided_slice %605 {offsets = [0, 32], sizes = [8, 32], strides = [1, 1]} : vector<8x64xf32> to vector<8x32xf32>
    %612 = arith.index_cast %569 : i32 to index
    %c0_192 = arith.constant 0 : index
    %c0_193 = arith.constant 0 : index
    %613 = vector.load %arg15[%612, %c0_192, %c0_193] : memref<8x8x32xf32, #tpu.memory_space<vmem>>, vector<1x8x32xf32>
    %614 = vector.shape_cast %613 : vector<1x8x32xf32> to vector<8x32xf32>
    %615 = vector.shape_cast %611 : vector<8x32xf32> to vector<1x8x32xf32>
    tpu.vector_store %arg15[%612, %c0_192, %c0_193], %615 {strides = array<i32>} : memref<8x8x32xf32, #tpu.memory_space<vmem>>, vector<1x8x32xf32>,
    %c4_i32_194 = arith.constant 4 : i32
    %c7_i32_195 = arith.constant 7 : i32
    %616 = arith.subi %c7_i32_195, %c4_i32_194 : i32
    %617 = arith.index_cast %c4_i32_194 : i32 to index
    %c0_196 = arith.constant 0 : index
    %c0_197 = arith.constant 0 : index
    %618 = vector.load %arg13[%617, %c0_196, %c0_197] : memref<8x8x192xf32, #tpu.memory_space<vmem>>, vector<1x8x192xf32>
    %619 = vector.shape_cast %618 : vector<1x8x192xf32> to vector<8x192xf32>
    %620 = arith.index_cast %616 : i32 to index
    %c0_198 = arith.constant 0 : index
    %c0_199 = arith.constant 0 : index
    %621 = vector.load %arg13[%620, %c0_198, %c0_199] : memref<8x8x192xf32, #tpu.memory_space<vmem>>, vector<1x8x192xf32>
    %622 = vector.shape_cast %621 : vector<1x8x192xf32> to vector<8x192xf32>
    %623 = arith.select %14, %619, %622 : vector<8x192xi1>, vector<8x192xf32>
    %624 = arith.truncf %605 : vector<8x64xf32> to vector<8x64xbf16>
    %cst_200 = arith.constant dense<0.000000e+00> : vector<8x192xf32>
    %625 = tpu.matmul %624, %407, %cst_200 {dimension_numbers = #tpu.dot_dimension_numbers<[1], [0], [0], [1], [0, 0, 1, 1], [], []>} : vector<8x64xbf16>, vector<64x192xbf16>, vector<8x192xf32> -> vector<8x192xf32>
    %626 = vector.extract_strided_slice %623 {offsets = [0, 0], sizes = [8, 64], strides = [1, 1]} : vector<8x192xf32> to vector<8x64xf32>
    %627 = vector.extract_strided_slice %625 {offsets = [0, 0], sizes = [8, 64], strides = [1, 1]} : vector<8x192xf32> to vector<8x64xf32>
    %628 = arith.addf %626, %627 : vector<8x64xf32>
    %629 = arith.negf %628 : vector<8x64xf32>
    %630 = math.exp %629 : vector<8x64xf32>
    %cst_201 = arith.constant 1.000000e+00 : f32
    %631 = vector.broadcast %cst_201 : f32 to vector<8x64xf32>
    %632 = arith.addf %631, %630 : vector<8x64xf32>
    %633 = arith.divf %631, %632 : vector<8x64xf32>
    %634 = vector.extract_strided_slice %623 {offsets = [0, 64], sizes = [8, 64], strides = [1, 1]} : vector<8x192xf32> to vector<8x64xf32>
    %635 = vector.extract_strided_slice %625 {offsets = [0, 64], sizes = [8, 64], strides = [1, 1]} : vector<8x192xf32> to vector<8x64xf32>
    %636 = arith.addf %634, %635 : vector<8x64xf32>
    %637 = arith.negf %636 : vector<8x64xf32>
    %638 = math.exp %637 : vector<8x64xf32>
    %cst_202 = arith.constant 1.000000e+00 : f32
    %639 = vector.broadcast %cst_202 : f32 to vector<8x64xf32>
    %640 = arith.addf %639, %638 : vector<8x64xf32>
    %641 = arith.divf %639, %640 : vector<8x64xf32>
    %642 = vector.extract_strided_slice %623 {offsets = [0, 128], sizes = [8, 64], strides = [1, 1]} : vector<8x192xf32> to vector<8x64xf32>
    %643 = vector.extract_strided_slice %625 {offsets = [0, 128], sizes = [8, 64], strides = [1, 1]} : vector<8x192xf32> to vector<8x64xf32>
    %644 = arith.addf %643, %426 : vector<8x64xf32>
    %645 = arith.mulf %633, %644 : vector<8x64xf32>
    %646 = arith.addf %642, %645 : vector<8x64xf32>
    %647 = math.tanh %646 : vector<8x64xf32>
    %cst_203 = arith.constant 1.000000e+00 : f32
    %648 = vector.broadcast %cst_203 : f32 to vector<8x64xf32>
    %649 = arith.subf %648, %641 : vector<8x64xf32>
    %650 = arith.mulf %649, %647 : vector<8x64xf32>
    %651 = arith.mulf %641, %605 : vector<8x64xf32>
    %652 = arith.addf %650, %651 : vector<8x64xf32>
    %653 = vector.extract_strided_slice %652 {offsets = [0, 0], sizes = [8, 32], strides = [1, 1]} : vector<8x64xf32> to vector<8x32xf32>
    %654 = arith.index_cast %c4_i32_194 : i32 to index
    %c0_204 = arith.constant 0 : index
    %c0_205 = arith.constant 0 : index
    %655 = vector.load %arg14[%654, %c0_204, %c0_205] : memref<8x8x32xf32, #tpu.memory_space<vmem>>, vector<1x8x32xf32>
    %656 = vector.shape_cast %655 : vector<1x8x32xf32> to vector<8x32xf32>
    %657 = vector.shape_cast %653 : vector<8x32xf32> to vector<1x8x32xf32>
    tpu.vector_store %arg14[%654, %c0_204, %c0_205], %657 {strides = array<i32>} : memref<8x8x32xf32, #tpu.memory_space<vmem>>, vector<1x8x32xf32>,
    %658 = vector.extract_strided_slice %652 {offsets = [0, 32], sizes = [8, 32], strides = [1, 1]} : vector<8x64xf32> to vector<8x32xf32>
    %659 = arith.index_cast %616 : i32 to index
    %c0_206 = arith.constant 0 : index
    %c0_207 = arith.constant 0 : index
    %660 = vector.load %arg15[%659, %c0_206, %c0_207] : memref<8x8x32xf32, #tpu.memory_space<vmem>>, vector<1x8x32xf32>
    %661 = vector.shape_cast %660 : vector<1x8x32xf32> to vector<8x32xf32>
    %662 = vector.shape_cast %658 : vector<8x32xf32> to vector<1x8x32xf32>
    tpu.vector_store %arg15[%659, %c0_206, %c0_207], %662 {strides = array<i32>} : memref<8x8x32xf32, #tpu.memory_space<vmem>>, vector<1x8x32xf32>,
    %c5_i32_208 = arith.constant 5 : i32
    %c7_i32_209 = arith.constant 7 : i32
    %663 = arith.subi %c7_i32_209, %c5_i32_208 : i32
    %664 = arith.index_cast %c5_i32_208 : i32 to index
    %c0_210 = arith.constant 0 : index
    %c0_211 = arith.constant 0 : index
    %665 = vector.load %arg13[%664, %c0_210, %c0_211] : memref<8x8x192xf32, #tpu.memory_space<vmem>>, vector<1x8x192xf32>
    %666 = vector.shape_cast %665 : vector<1x8x192xf32> to vector<8x192xf32>
    %667 = arith.index_cast %663 : i32 to index
    %c0_212 = arith.constant 0 : index
    %c0_213 = arith.constant 0 : index
    %668 = vector.load %arg13[%667, %c0_212, %c0_213] : memref<8x8x192xf32, #tpu.memory_space<vmem>>, vector<1x8x192xf32>
    %669 = vector.shape_cast %668 : vector<1x8x192xf32> to vector<8x192xf32>
    %670 = arith.select %14, %666, %669 : vector<8x192xi1>, vector<8x192xf32>
    %671 = arith.truncf %652 : vector<8x64xf32> to vector<8x64xbf16>
    %cst_214 = arith.constant dense<0.000000e+00> : vector<8x192xf32>
    %672 = tpu.matmul %671, %407, %cst_214 {dimension_numbers = #tpu.dot_dimension_numbers<[1], [0], [0], [1], [0, 0, 1, 1], [], []>} : vector<8x64xbf16>, vector<64x192xbf16>, vector<8x192xf32> -> vector<8x192xf32>
    %673 = vector.extract_strided_slice %670 {offsets = [0, 0], sizes = [8, 64], strides = [1, 1]} : vector<8x192xf32> to vector<8x64xf32>
    %674 = vector.extract_strided_slice %672 {offsets = [0, 0], sizes = [8, 64], strides = [1, 1]} : vector<8x192xf32> to vector<8x64xf32>
    %675 = arith.addf %673, %674 : vector<8x64xf32>
    %676 = arith.negf %675 : vector<8x64xf32>
    %677 = math.exp %676 : vector<8x64xf32>
    %cst_215 = arith.constant 1.000000e+00 : f32
    %678 = vector.broadcast %cst_215 : f32 to vector<8x64xf32>
    %679 = arith.addf %678, %677 : vector<8x64xf32>
    %680 = arith.divf %678, %679 : vector<8x64xf32>
    %681 = vector.extract_strided_slice %670 {offsets = [0, 64], sizes = [8, 64], strides = [1, 1]} : vector<8x192xf32> to vector<8x64xf32>
    %682 = vector.extract_strided_slice %672 {offsets = [0, 64], sizes = [8, 64], strides = [1, 1]} : vector<8x192xf32> to vector<8x64xf32>
    %683 = arith.addf %681, %682 : vector<8x64xf32>
    %684 = arith.negf %683 : vector<8x64xf32>
    %685 = math.exp %684 : vector<8x64xf32>
    %cst_216 = arith.constant 1.000000e+00 : f32
    %686 = vector.broadcast %cst_216 : f32 to vector<8x64xf32>
    %687 = arith.addf %686, %685 : vector<8x64xf32>
    %688 = arith.divf %686, %687 : vector<8x64xf32>
    %689 = vector.extract_strided_slice %670 {offsets = [0, 128], sizes = [8, 64], strides = [1, 1]} : vector<8x192xf32> to vector<8x64xf32>
    %690 = vector.extract_strided_slice %672 {offsets = [0, 128], sizes = [8, 64], strides = [1, 1]} : vector<8x192xf32> to vector<8x64xf32>
    %691 = arith.addf %690, %426 : vector<8x64xf32>
    %692 = arith.mulf %680, %691 : vector<8x64xf32>
    %693 = arith.addf %689, %692 : vector<8x64xf32>
    %694 = math.tanh %693 : vector<8x64xf32>
    %cst_217 = arith.constant 1.000000e+00 : f32
    %695 = vector.broadcast %cst_217 : f32 to vector<8x64xf32>
    %696 = arith.subf %695, %688 : vector<8x64xf32>
    %697 = arith.mulf %696, %694 : vector<8x64xf32>
    %698 = arith.mulf %688, %652 : vector<8x64xf32>
    %699 = arith.addf %697, %698 : vector<8x64xf32>
    %700 = vector.extract_strided_slice %699 {offsets = [0, 0], sizes = [8, 32], strides = [1, 1]} : vector<8x64xf32> to vector<8x32xf32>
    %701 = arith.index_cast %c5_i32_208 : i32 to index
    %c0_218 = arith.constant 0 : index
    %c0_219 = arith.constant 0 : index
    %702 = vector.load %arg14[%701, %c0_218, %c0_219] : memref<8x8x32xf32, #tpu.memory_space<vmem>>, vector<1x8x32xf32>
    %703 = vector.shape_cast %702 : vector<1x8x32xf32> to vector<8x32xf32>
    %704 = vector.shape_cast %700 : vector<8x32xf32> to vector<1x8x32xf32>
    tpu.vector_store %arg14[%701, %c0_218, %c0_219], %704 {strides = array<i32>} : memref<8x8x32xf32, #tpu.memory_space<vmem>>, vector<1x8x32xf32>,
    %705 = vector.extract_strided_slice %699 {offsets = [0, 32], sizes = [8, 32], strides = [1, 1]} : vector<8x64xf32> to vector<8x32xf32>
    %706 = arith.index_cast %663 : i32 to index
    %c0_220 = arith.constant 0 : index
    %c0_221 = arith.constant 0 : index
    %707 = vector.load %arg15[%706, %c0_220, %c0_221] : memref<8x8x32xf32, #tpu.memory_space<vmem>>, vector<1x8x32xf32>
    %708 = vector.shape_cast %707 : vector<1x8x32xf32> to vector<8x32xf32>
    %709 = vector.shape_cast %705 : vector<8x32xf32> to vector<1x8x32xf32>
    tpu.vector_store %arg15[%706, %c0_220, %c0_221], %709 {strides = array<i32>} : memref<8x8x32xf32, #tpu.memory_space<vmem>>, vector<1x8x32xf32>,
    %c6_i32_222 = arith.constant 6 : i32
    %c7_i32_223 = arith.constant 7 : i32
    %710 = arith.subi %c7_i32_223, %c6_i32_222 : i32
    %711 = arith.index_cast %c6_i32_222 : i32 to index
    %c0_224 = arith.constant 0 : index
    %c0_225 = arith.constant 0 : index
    %712 = vector.load %arg13[%711, %c0_224, %c0_225] : memref<8x8x192xf32, #tpu.memory_space<vmem>>, vector<1x8x192xf32>
    %713 = vector.shape_cast %712 : vector<1x8x192xf32> to vector<8x192xf32>
    %714 = arith.index_cast %710 : i32 to index
    %c0_226 = arith.constant 0 : index
    %c0_227 = arith.constant 0 : index
    %715 = vector.load %arg13[%714, %c0_226, %c0_227] : memref<8x8x192xf32, #tpu.memory_space<vmem>>, vector<1x8x192xf32>
    %716 = vector.shape_cast %715 : vector<1x8x192xf32> to vector<8x192xf32>
    %717 = arith.select %14, %713, %716 : vector<8x192xi1>, vector<8x192xf32>
    %718 = arith.truncf %699 : vector<8x64xf32> to vector<8x64xbf16>
    %cst_228 = arith.constant dense<0.000000e+00> : vector<8x192xf32>
    %719 = tpu.matmul %718, %407, %cst_228 {dimension_numbers = #tpu.dot_dimension_numbers<[1], [0], [0], [1], [0, 0, 1, 1], [], []>} : vector<8x64xbf16>, vector<64x192xbf16>, vector<8x192xf32> -> vector<8x192xf32>
    %720 = vector.extract_strided_slice %717 {offsets = [0, 0], sizes = [8, 64], strides = [1, 1]} : vector<8x192xf32> to vector<8x64xf32>
    %721 = vector.extract_strided_slice %719 {offsets = [0, 0], sizes = [8, 64], strides = [1, 1]} : vector<8x192xf32> to vector<8x64xf32>
    %722 = arith.addf %720, %721 : vector<8x64xf32>
    %723 = arith.negf %722 : vector<8x64xf32>
    %724 = math.exp %723 : vector<8x64xf32>
    %cst_229 = arith.constant 1.000000e+00 : f32
    %725 = vector.broadcast %cst_229 : f32 to vector<8x64xf32>
    %726 = arith.addf %725, %724 : vector<8x64xf32>
    %727 = arith.divf %725, %726 : vector<8x64xf32>
    %728 = vector.extract_strided_slice %717 {offsets = [0, 64], sizes = [8, 64], strides = [1, 1]} : vector<8x192xf32> to vector<8x64xf32>
    %729 = vector.extract_strided_slice %719 {offsets = [0, 64], sizes = [8, 64], strides = [1, 1]} : vector<8x192xf32> to vector<8x64xf32>
    %730 = arith.addf %728, %729 : vector<8x64xf32>
    %731 = arith.negf %730 : vector<8x64xf32>
    %732 = math.exp %731 : vector<8x64xf32>
    %cst_230 = arith.constant 1.000000e+00 : f32
    %733 = vector.broadcast %cst_230 : f32 to vector<8x64xf32>
    %734 = arith.addf %733, %732 : vector<8x64xf32>
    %735 = arith.divf %733, %734 : vector<8x64xf32>
    %736 = vector.extract_strided_slice %717 {offsets = [0, 128], sizes = [8, 64], strides = [1, 1]} : vector<8x192xf32> to vector<8x64xf32>
    %737 = vector.extract_strided_slice %719 {offsets = [0, 128], sizes = [8, 64], strides = [1, 1]} : vector<8x192xf32> to vector<8x64xf32>
    %738 = arith.addf %737, %426 : vector<8x64xf32>
    %739 = arith.mulf %727, %738 : vector<8x64xf32>
    %740 = arith.addf %736, %739 : vector<8x64xf32>
    %741 = math.tanh %740 : vector<8x64xf32>
    %cst_231 = arith.constant 1.000000e+00 : f32
    %742 = vector.broadcast %cst_231 : f32 to vector<8x64xf32>
    %743 = arith.subf %742, %735 : vector<8x64xf32>
    %744 = arith.mulf %743, %741 : vector<8x64xf32>
    %745 = arith.mulf %735, %699 : vector<8x64xf32>
    %746 = arith.addf %744, %745 : vector<8x64xf32>
    %747 = vector.extract_strided_slice %746 {offsets = [0, 0], sizes = [8, 32], strides = [1, 1]} : vector<8x64xf32> to vector<8x32xf32>
    %748 = arith.index_cast %c6_i32_222 : i32 to index
    %c0_232 = arith.constant 0 : index
    %c0_233 = arith.constant 0 : index
    %749 = vector.load %arg14[%748, %c0_232, %c0_233] : memref<8x8x32xf32, #tpu.memory_space<vmem>>, vector<1x8x32xf32>
    %750 = vector.shape_cast %749 : vector<1x8x32xf32> to vector<8x32xf32>
    %751 = vector.shape_cast %747 : vector<8x32xf32> to vector<1x8x32xf32>
    tpu.vector_store %arg14[%748, %c0_232, %c0_233], %751 {strides = array<i32>} : memref<8x8x32xf32, #tpu.memory_space<vmem>>, vector<1x8x32xf32>,
    %752 = vector.extract_strided_slice %746 {offsets = [0, 32], sizes = [8, 32], strides = [1, 1]} : vector<8x64xf32> to vector<8x32xf32>
    %753 = arith.index_cast %710 : i32 to index
    %c0_234 = arith.constant 0 : index
    %c0_235 = arith.constant 0 : index
    %754 = vector.load %arg15[%753, %c0_234, %c0_235] : memref<8x8x32xf32, #tpu.memory_space<vmem>>, vector<1x8x32xf32>
    %755 = vector.shape_cast %754 : vector<1x8x32xf32> to vector<8x32xf32>
    %756 = vector.shape_cast %752 : vector<8x32xf32> to vector<1x8x32xf32>
    tpu.vector_store %arg15[%753, %c0_234, %c0_235], %756 {strides = array<i32>} : memref<8x8x32xf32, #tpu.memory_space<vmem>>, vector<1x8x32xf32>,
    %c7_i32_236 = arith.constant 7 : i32
    %c7_i32_237 = arith.constant 7 : i32
    %757 = arith.subi %c7_i32_237, %c7_i32_236 : i32
    %758 = arith.index_cast %c7_i32_236 : i32 to index
    %c0_238 = arith.constant 0 : index
    %c0_239 = arith.constant 0 : index
    %759 = vector.load %arg13[%758, %c0_238, %c0_239] : memref<8x8x192xf32, #tpu.memory_space<vmem>>, vector<1x8x192xf32>
    %760 = vector.shape_cast %759 : vector<1x8x192xf32> to vector<8x192xf32>
    %761 = arith.index_cast %757 : i32 to index
    %c0_240 = arith.constant 0 : index
    %c0_241 = arith.constant 0 : index
    %762 = vector.load %arg13[%761, %c0_240, %c0_241] : memref<8x8x192xf32, #tpu.memory_space<vmem>>, vector<1x8x192xf32>
    %763 = vector.shape_cast %762 : vector<1x8x192xf32> to vector<8x192xf32>
    %764 = arith.select %14, %760, %763 : vector<8x192xi1>, vector<8x192xf32>
    %765 = arith.truncf %746 : vector<8x64xf32> to vector<8x64xbf16>
    %cst_242 = arith.constant dense<0.000000e+00> : vector<8x192xf32>
    %766 = tpu.matmul %765, %407, %cst_242 {dimension_numbers = #tpu.dot_dimension_numbers<[1], [0], [0], [1], [0, 0, 1, 1], [], []>} : vector<8x64xbf16>, vector<64x192xbf16>, vector<8x192xf32> -> vector<8x192xf32>
    %767 = vector.extract_strided_slice %764 {offsets = [0, 0], sizes = [8, 64], strides = [1, 1]} : vector<8x192xf32> to vector<8x64xf32>
    %768 = vector.extract_strided_slice %766 {offsets = [0, 0], sizes = [8, 64], strides = [1, 1]} : vector<8x192xf32> to vector<8x64xf32>
    %769 = arith.addf %767, %768 : vector<8x64xf32>
    %770 = arith.negf %769 : vector<8x64xf32>
    %771 = math.exp %770 : vector<8x64xf32>
    %cst_243 = arith.constant 1.000000e+00 : f32
    %772 = vector.broadcast %cst_243 : f32 to vector<8x64xf32>
    %773 = arith.addf %772, %771 : vector<8x64xf32>
    %774 = arith.divf %772, %773 : vector<8x64xf32>
    %775 = vector.extract_strided_slice %764 {offsets = [0, 64], sizes = [8, 64], strides = [1, 1]} : vector<8x192xf32> to vector<8x64xf32>
    %776 = vector.extract_strided_slice %766 {offsets = [0, 64], sizes = [8, 64], strides = [1, 1]} : vector<8x192xf32> to vector<8x64xf32>
    %777 = arith.addf %775, %776 : vector<8x64xf32>
    %778 = arith.negf %777 : vector<8x64xf32>
    %779 = math.exp %778 : vector<8x64xf32>
    %cst_244 = arith.constant 1.000000e+00 : f32
    %780 = vector.broadcast %cst_244 : f32 to vector<8x64xf32>
    %781 = arith.addf %780, %779 : vector<8x64xf32>
    %782 = arith.divf %780, %781 : vector<8x64xf32>
    %783 = vector.extract_strided_slice %764 {offsets = [0, 128], sizes = [8, 64], strides = [1, 1]} : vector<8x192xf32> to vector<8x64xf32>
    %784 = vector.extract_strided_slice %766 {offsets = [0, 128], sizes = [8, 64], strides = [1, 1]} : vector<8x192xf32> to vector<8x64xf32>
    %785 = arith.addf %784, %426 : vector<8x64xf32>
    %786 = arith.mulf %774, %785 : vector<8x64xf32>
    %787 = arith.addf %783, %786 : vector<8x64xf32>
    %788 = math.tanh %787 : vector<8x64xf32>
    %cst_245 = arith.constant 1.000000e+00 : f32
    %789 = vector.broadcast %cst_245 : f32 to vector<8x64xf32>
    %790 = arith.subf %789, %782 : vector<8x64xf32>
    %791 = arith.mulf %790, %788 : vector<8x64xf32>
    %792 = arith.mulf %782, %746 : vector<8x64xf32>
    %793 = arith.addf %791, %792 : vector<8x64xf32>
    %794 = vector.extract_strided_slice %793 {offsets = [0, 0], sizes = [8, 32], strides = [1, 1]} : vector<8x64xf32> to vector<8x32xf32>
    %795 = arith.index_cast %c7_i32_236 : i32 to index
    %c0_246 = arith.constant 0 : index
    %c0_247 = arith.constant 0 : index
    %796 = vector.load %arg14[%795, %c0_246, %c0_247] : memref<8x8x32xf32, #tpu.memory_space<vmem>>, vector<1x8x32xf32>
    %797 = vector.shape_cast %796 : vector<1x8x32xf32> to vector<8x32xf32>
    %798 = vector.shape_cast %794 : vector<8x32xf32> to vector<1x8x32xf32>
    tpu.vector_store %arg14[%795, %c0_246, %c0_247], %798 {strides = array<i32>} : memref<8x8x32xf32, #tpu.memory_space<vmem>>, vector<1x8x32xf32>,
    %799 = vector.extract_strided_slice %793 {offsets = [0, 32], sizes = [8, 32], strides = [1, 1]} : vector<8x64xf32> to vector<8x32xf32>
    %800 = arith.index_cast %757 : i32 to index
    %c0_248 = arith.constant 0 : index
    %c0_249 = arith.constant 0 : index
    %801 = vector.load %arg15[%800, %c0_248, %c0_249] : memref<8x8x32xf32, #tpu.memory_space<vmem>>, vector<1x8x32xf32>
    %802 = vector.shape_cast %801 : vector<1x8x32xf32> to vector<8x32xf32>
    %803 = vector.shape_cast %799 : vector<8x32xf32> to vector<1x8x32xf32>
    tpu.vector_store %arg15[%800, %c0_248, %c0_249], %803 {strides = array<i32>} : memref<8x8x32xf32, #tpu.memory_space<vmem>>, vector<1x8x32xf32>,
    %c8_i32_250 = arith.constant 8 : i32
    %c0_251 = arith.constant 0 : index
    %c0_252 = arith.constant 0 : index
    %c0_253 = arith.constant 0 : index
    %804 = vector.load %arg14[%c0_251, %c0_252, %c0_253] : memref<8x8x32xf32, #tpu.memory_space<vmem>>, vector<8x8x32xf32>
    %805 = vector.shape_cast %804 : vector<8x8x32xf32> to vector<64x32xf32>
    %806 = arith.truncf %805 : vector<64x32xf32> to vector<64x32xbf16>
    %c0_254 = arith.constant 0 : index
    %c0_255 = arith.constant 0 : index
    %c0_256 = arith.constant 0 : index
    %807 = vector.load %arg15[%c0_254, %c0_255, %c0_256] : memref<8x8x32xf32, #tpu.memory_space<vmem>>, vector<8x8x32xf32>
    %808 = vector.shape_cast %807 : vector<8x8x32xf32> to vector<64x32xf32>
    %809 = arith.truncf %808 : vector<64x32xf32> to vector<64x32xbf16>
    %c0_257 = arith.constant 0 : index
    %c0_258 = arith.constant 0 : index
    %810 = vector.load %arg10[%c0_257, %c0_258] : memref<64x8xbf16, #tpu.memory_space<vmem>>, vector<64x8xbf16>
    %811 = vector.extract_strided_slice %810 {offsets = [0, 0], sizes = [32, 8], strides = [1, 1]} : vector<64x8xbf16> to vector<32x8xbf16>
    %cst_259 = arith.constant dense<0.000000e+00> : vector<64x8xf32>
    %812 = tpu.matmul %806, %811, %cst_259 {dimension_numbers = #tpu.dot_dimension_numbers<[1], [0], [0], [1], [0, 0, 1, 1], [], []>} : vector<64x32xbf16>, vector<32x8xbf16>, vector<64x8xf32> -> vector<64x8xf32>
    %813 = vector.extract_strided_slice %810 {offsets = [32, 0], sizes = [32, 8], strides = [1, 1]} : vector<64x8xbf16> to vector<32x8xbf16>
    %cst_260 = arith.constant dense<0.000000e+00> : vector<64x8xf32>
    %814 = tpu.matmul %809, %813, %cst_260 {dimension_numbers = #tpu.dot_dimension_numbers<[1], [0], [0], [1], [0, 0, 1, 1], [], []>} : vector<64x32xbf16>, vector<32x8xbf16>, vector<64x8xf32> -> vector<64x8xf32>
    %815 = arith.addf %812, %814 : vector<64x8xf32>
    %c0_261 = arith.constant 0 : index
    %c0_262 = arith.constant 0 : index
    %816 = vector.load %arg11[%c0_261, %c0_262] : memref<1x8xf32, #tpu.memory_space<vmem>>, vector<1x8xf32>
    %817 = vector.broadcast %816 : vector<1x8xf32> to vector<64x8xf32>
    %818 = arith.addf %815, %817 : vector<64x8xf32>
    %819 = vector.shape_cast %818 : vector<64x8xf32> to vector<8x8x8xf32>
    %c0_263 = arith.constant 0 : index
    %c0_264 = arith.constant 0 : index
    %c0_265 = arith.constant 0 : index
    %820 = vector.load %arg12[%c0_263, %c0_264, %c0_265] : memref<8x8x8xf32, #tpu.memory_space<vmem>>, vector<8x8x8xf32>
    tpu.vector_store %arg12[%c0_263, %c0_264, %c0_265], %819 {strides = array<i32>} : memref<8x8x8xf32, #tpu.memory_space<vmem>>, vector<8x8x8xf32>,
    return
  }
  func.func @transform_0(%arg0: i32) -> (i32, i32, i32) {
    %c0_i32 = arith.constant 0 : i32
    %c0_i32_0 = arith.constant 0 : i32
    %c0_i32_1 = arith.constant 0 : i32
    %c0_i32_2 = arith.constant 0 : i32
    return %c0_i32, %c0_i32_0, %c0_i32_1 : i32, i32, i32
  }
  func.func @transform_1(%arg0: i32) -> (i32, i32) {
    %c0_i32 = arith.constant 0 : i32
    %c0_i32_0 = arith.constant 0 : i32
    %c0_i32_1 = arith.constant 0 : i32
    return %c0_i32, %c0_i32_0 : i32, i32
  }
  func.func @transform_2(%arg0: i32) -> (i32, i32) {
    %c0_i32 = arith.constant 0 : i32
    %c0_i32_0 = arith.constant 0 : i32
    %c0_i32_1 = arith.constant 0 : i32
    return %c0_i32, %c0_i32_0 : i32, i32
  }
  func.func @transform_3(%arg0: i32) -> (i32, i32) {
    %c0_i32 = arith.constant 0 : i32
    %c0_i32_0 = arith.constant 0 : i32
    %c0_i32_1 = arith.constant 0 : i32
    return %c0_i32, %c0_i32_0 : i32, i32
  }
  func.func @transform_4(%arg0: i32) -> (i32, i32) {
    %c0_i32 = arith.constant 0 : i32
    %c0_i32_0 = arith.constant 0 : i32
    %c0_i32_1 = arith.constant 0 : i32
    return %c0_i32, %c0_i32_0 : i32, i32
  }
  func.func @transform_5(%arg0: i32) -> (i32, i32) {
    %c0_i32 = arith.constant 0 : i32
    %c0_i32_0 = arith.constant 0 : i32
    %c0_i32_1 = arith.constant 0 : i32
    return %c0_i32, %c0_i32_0 : i32, i32
  }
  func.func @transform_6(%arg0: i32) -> (i32, i32) {
    %c0_i32 = arith.constant 0 : i32
    %c0_i32_0 = arith.constant 0 : i32
    %c0_i32_1 = arith.constant 0 : i32
    return %c0_i32, %c0_i32_0 : i32, i32
  }
  func.func @transform_7(%arg0: i32) -> (i32, i32) {
    %c0_i32 = arith.constant 0 : i32
    %c0_i32_0 = arith.constant 0 : i32
    %c0_i32_1 = arith.constant 0 : i32
    return %c0_i32, %c0_i32_0 : i32, i32
  }
  func.func @transform_8(%arg0: i32) -> (i32, i32) {
    %c0_i32 = arith.constant 0 : i32
    %c0_i32_0 = arith.constant 0 : i32
    %c0_i32_1 = arith.constant 0 : i32
    return %c0_i32, %c0_i32_0 : i32, i32
  }
  func.func @transform_9(%arg0: i32) -> (i32, i32) {
    %c0_i32 = arith.constant 0 : i32
    %c0_i32_0 = arith.constant 0 : i32
    %c0_i32_1 = arith.constant 0 : i32
    return %c0_i32, %c0_i32_0 : i32, i32
  }
  func.func @transform_10(%arg0: i32) -> (i32, i32) {
    %c0_i32 = arith.constant 0 : i32
    %c0_i32_0 = arith.constant 0 : i32
    %c0_i32_1 = arith.constant 0 : i32
    return %c0_i32, %c0_i32_0 : i32, i32
  }
  func.func @transform_11(%arg0: i32) -> (i32, i32, i32) {
    %c0_i32 = arith.constant 0 : i32
    %c0_i32_0 = arith.constant 0 : i32
    %c0_i32_1 = arith.constant 0 : i32
    %c0_i32_2 = arith.constant 0 : i32
    return %c0_i32, %c0_i32_0, %c0_i32_1 : i32, i32, i32
  }
}

</mosaic_0001>

<bundles_post_ra>
// kernel: tpu_custom_call.1
= control target key start
LH: loop header
LB: loop body
LE: loop exit
PB: predicated region body
PF: predicated region fallthrough
CT: control target
= control target key end

     0   :  { %16 = vsyncpa [#allocation6], 0  ;;  %s3472_s0 = inlined_call_operand.hbm [shape: f32[8,8,16], index: 0, kind: input, shape index: {}]   ;;  %s3473_s1 = inlined_call_operand.vmem [shape: bf16[16,192], index: 1, kind: input, shape index: {}]   ;;  %s3474_s2 = inlined_call_operand.hbm [shape: bf16[64,192], index: 2, kind: input, shape index: {}]   ;;  %s3475_s3 = inlined_call_operand.vmem [shape: f32[1,192], index: 3, kind: input, shape index: {}]   ;;  %s3476_s4 = inlined_call_operand.vmem [shape: f32[1,64], index: 4, kind: input, shape index: {}]   ;;  %s3477_s5 = inlined_call_operand.hbm [shape: bf16[64,192], index: 5, kind: input, shape index: {}]   ;;  %s3478_s6 = inlined_call_operand.hbm [shape: bf16[64,192], index: 6, kind: input, shape index: {}]   ;;  %s3479_s7 = inlined_call_operand.vmem [shape: f32[1,192], index: 7, kind: input, shape index: {}]   ;;  %s3480_s8 = inlined_call_operand.vmem [shape: f32[1,64], index: 8, kind: input, shape index: {}]   ;;  %s3481_s9 = inlined_call_operand.vmem [shape: bf16[64,8], index: 9, kind: input, shape index: {}]   ;;  %s3482_s10 = inlined_call_operand.vmem [shape: f32[1,8], index: 10, kind: input, shape index: {}]   ;;  %s3483_s11 = inlined_call_operand.hbm [shape: f32[8,8,8], index: 11, kind: output, shape index: {}]  }
   0x1   :  { %17 = vsyncpa [#allocation9], 0 }
   0x2   :  { %18 = vsyncpa [#allocation12], 0 }
   0x3   :  { %19 = vsyncpa [#allocation7], 0  ;;  %s2607_s17 = smov [#allocation8]   ;;  %s2608_s19 = smov [#allocation5]  }
   0x4   :  { %s39_s18 = sshll.u32 %s2607_s17, 4  ;;  %s25_s20 = sshll.u32 %s2608_s19, 4  ;;  %s40_s18 = int_to_ptr.vmem [resolvable:$true] %s39_s18  ;;  %s26_s20 = int_to_ptr.vmem [resolvable:$true] %s25_s20 }
   0x5   :  { %s2507_s21 = scalar_lea.vmem %s40_s18, 1024  ;;  %p2512_p1 = scmp.lt.s32.totalorder %s40_s18, %s40_s18 }
   0x6   :  { %p2508_p0 = scmp.ne.s32.totalorder %s40_s18, %s2507_s21  ;;  %p2513_p2 = scmp.lt.s32.totalorder %s2507_s21, %s2507_s21 }
   0x8   :  { %p2514_p3 = por %p2513_p2, %p2512_p1 }
   0xa   :  { %p2515_p4 = pnand %p2514_p3, %p2508_p0 }
   0xc   :  { %2518 = shalt.err (!%p2515_p4)
}
   0xd   :  { %s2609_s22 = smov 128   ;;  %s2610_s23 = smov 8  }
   0xe   :  { %45 = dma.hbm_to_vmem [thread:$0]  %s3474_s2, 1024, %s40_s18, [#allocation9], %s2609_s22, %s2609_s22, %s2610_s23  }
   0xf   :  { %s2527_s26 = scalar_lea.vmem %s26_s20, 1024  ;;  %p2532_p6 = scmp.lt.s32.totalorder %s26_s20, %s26_s20 }
  0x10   :  { %p2528_p5 = scmp.ne.s32.totalorder %s26_s20, %s2527_s26  ;;  %p2533_p7 = scmp.lt.s32.totalorder %s2527_s26, %s2527_s26 }
  0x12   :  { %p2534_p8 = por %p2533_p7, %p2532_p6 }
  0x14   :  { %p2535_p9 = pnand %p2534_p8, %p2528_p5 }
  0x16   :  { %2538 = shalt.err (!%p2535_p9)
}
  0x17   :  { %31 = dma.hbm_to_vmem [thread:$0]  %s3472_s0, 1024, %s26_s20, [#allocation6], %s2609_s22, %s2609_s22, %s2610_s23  }
  0x18   :  { %s2611_s29 = smov [#allocation10]   ;;  %s2612_s12 = smov [#allocation11]  }
  0x19   :  { %s55_s30 = sshll.u32 %s2611_s29, 4  ;;  %s67_s13 = sshll.u32 %s2612_s12, 4  ;;  %s56_s30 = int_to_ptr.vmem [resolvable:$true] %s55_s30  ;;  %s68_s13 = int_to_ptr.vmem [resolvable:$true] %s67_s13 }
  0x1a   :  { %s2547_s2 = scalar_lea.vmem %s56_s30, 1024  ;;  %p2552_p11 = scmp.lt.s32.totalorder %s56_s30, %s56_s30 }
  0x1b   :  { %p2548_p10 = scmp.ne.s32.totalorder %s56_s30, %s2547_s2  ;;  %p2553_p12 = scmp.lt.s32.totalorder %s2547_s2, %s2547_s2 }
  0x1d   :  { %p2554_p13 = por %p2553_p12, %p2552_p11 }
  0x1f   :  { %p2555_p0 = pnand %p2554_p13, %p2548_p10 }
  0x21   :  { %2558 = shalt.err (!%p2555_p0)
}
  0x22   :  { %61 = dma.hbm_to_vmem [thread:$0]  %s3477_s5, 1024, %s56_s30, [#allocation9], %s2609_s22, %s2609_s22, %s2610_s23  }
  0x23   :  { %s2567_s0 = scalar_lea.vmem %s68_s13, 1024  ;;  %p2572_p2 = scmp.lt.s32.totalorder %s68_s13, %s68_s13 }
  0x24   :  { %p2568_p1 = scmp.ne.s32.totalorder %s68_s13, %s2567_s0  ;;  %p2573_p3 = scmp.lt.s32.totalorder %s2567_s0, %s2567_s0 }
  0x26   :  { %p2574_p4 = por %p2573_p3, %p2572_p2 }
  0x28   :  { %p2575_p5 = pnand %p2574_p4, %p2568_p1 }
  0x2a   :  { %2578 = shalt.err (!%p2575_p5)
}
  0x2b   :  { %73 = dma.hbm_to_vmem [thread:$0]  %s3478_s6, 1024, %s68_s13, [#allocation12], %s2609_s22, %s2609_s22, %s2610_s23  }
  0x2c   :  { %2599 = dma.done.wait [#allocation6], 1024  }
  0x2d   :  { %2600 = vsyncadd [#allocation6], 4294966272 }
  0x2e   :  { %2601 = dma.done.wait [#allocation9], 2048  }
  0x2f   :  { %2602 = vsyncadd [#allocation9], 4294965248 }
  0x30   :  { %2603 = dma.done.wait [#allocation12], 1024  }
  0x31   :  { %2604 = vsyncadd [#allocation12], 4294966272  ;;  %v2613_v0 = vmov 0   ;;  %v2360_v1 = vld [vmem:[%s3473_s1 + $0x4] ss:$8 sps:$4 sm:$0xff]   ;;  %vm161_vm0 = vcmask 130048   ;;  %v95_v23 = vlaneseq }
  0x32   :  { %206 = vmatprep.mubr.bf16.mxu0 %v2613_v0  ;;  %352 = vmatprep.mubr.bf16.mxu1 %v2613_v0  ;;  %v2362_v2 = vld [vmem:[%s3473_s1] ss:$8 sps:$4 sm:$0xff]   ;;  %v2709_v6 = vld [vmem:[#allocation8 + $0x34] ss:$8 sps:$4 sm:$0xff]   ;;  %v2711_v7 = vld [vmem:[#allocation8 + $0x30] ss:$8 sps:$4 sm:$0xff]  }
  0x33   :  { %v128_v3 = vld [vmem:[#allocation5] sm:$0xff]  ;;  %v129_v4 = vld [vmem:[#allocation5 + $0x8] sm:$0xff]  ;;  %188 = vmatprep.subr.bf16.mxu0 %v2360_v1  ;;  %v130_v9 = vld [vmem:[#allocation5 + $0x10] sm:$0xff]  ;;  %328 = vmatprep.subr.bf16.mxu1 %v2709_v6  ;;  %v2761_v24 = vshrl.u32 %v95_v23, 7  ;;  %vm248_vm1 = vcmask 523264   ;;  %v96_v35 = vand.u32 127, %v95_v23 }
  0x34   :  { %v136_v5 = vpack.c.bf16 %v129_v4, %v128_v3  ;;  %189 = vmatpush1.bf16.msra.mxu0 %v2362_v2  ;;  %v2713_v8 = vld [vmem:[#allocation8 + $0x24] ss:$8 sps:$4 sm:$0xff]   ;;  %v131_v10 = vld [vmem:[#allocation5 + $0x18] sm:$0xff]  ;;  %329 = vmatpush1.bf16.msra.mxu1 %v2711_v7  ;;  %v2719_v11 = vld [vmem:[#allocation8 + $0x20] ss:$8 sps:$4 sm:$0xff]   ;;  %s2615_s24 = smov 32  }
  0x35   :  { %330 = vmatprep.subr.bf16.mxu1 %v2713_v8  ;;  %v2722_v12 = vld [vmem:[#allocation8 + $0x14] ss:$8 sps:$4 sm:$0xff]   ;;  %500 = vmatprep.subr.bf16.mxu0 %v2709_v6  ;;  %v2725_v13 = vld [vmem:[#allocation8 + $0x10] ss:$8 sps:$4 sm:$0xff]   ;;  %v137_v14 = vpack.c.bf16 %v131_v10, %v130_v9  ;;  %v2728_v15 = vld [vmem:[#allocation8 + $0x4] ss:$8 sps:$4 sm:$0xff]  }
  0x36   :  { %v132_v16 = vld [vmem:[#allocation5 + $0x20] sm:$0xff]  ;;  %v133_v17 = vld [vmem:[#allocation5 + $0x28] sm:$0xff]  ;;  %v134_v20 = vld [vmem:[#allocation5 + $0x30] sm:$0xff]  ;;  %v147_v25 = vsub.s32 1, %v2761_v24  ;;  %v143_v27 = vsub.s32 0, %v2761_v24  ;;  %vm100_vm2 = vcmp.ge.s32.totalorder %v96_v35, 64 }
  0x37   :  { %2229 = vmatmul.mubr.msk.bf16.vlgmr.msra.gmra.mxu0 %vm161_vm0, %v136_v5  ;;  %v2733_v18 = vld [vmem:[#allocation8] ss:$8 sps:$4 sm:$0xff]   ;;  %v138_v19 = vpack.c.bf16 %v133_v17, %v132_v16  ;;  %v135_v21 = vld [vmem:[#allocation5 + $0x38] sm:$0xff]  ;;  %vm102_vm3 = vcmp.lt.s32.totalorder %v96_v35, 96  ;;  %vm98_vm4 = vcmp.lt.s32.totalorder %v96_v35, 32  ;;  %vm384_vm8 = vcmask 261120  }
  0x38   :  { %216 = vmatprep.mubr.bf16.mxu0 %v2613_v0  ;;  %501 = vmatpush1.bf16.msra.mxu0 %v2711_v7  ;;  %v139_v22 = vpack.c.bf16 %v135_v21, %v134_v20  ;;  %v126_v26 = vld [vmem:[%s3475_s3] sm:$0x3]  ;;  %vm104_vm5 = vmand %vm100_vm2, %vm102_vm3  ;;  %vm2199_vm9 = vcmask 64512  }
  0x39   :  { %502 = vmatprep.subr.bf16.mxu0 %v2713_v8  ;;  %331 = vmatpush1.bf16.msra.mxu1 %v2719_v11  ;;  %v148_v28 = vrot.slane %v126_v26, %v147_v25  ;;  %v144_v31 = vrot.slane %v126_v26, %v143_v27  ;;  %vm2781_vm6 = vmor %vm98_vm4, %vm104_vm5 }
  0x3a   :  { %332 = vmatprep.subr.bf16.mxu1 %v2722_v12 }
  0x3c   :  { %503 = vmatpush1.bf16.msra.mxu0 %v2719_v11 }
  0x3d   :  { %504 = vmatprep.subr.bf16.mxu0 %v2722_v12  ;;  %333 = vmatpush1.bf16.msra.mxu1 %v2725_v13 }
  0x3e   :  { %334 = vmatprep.subr.bf16.mxu1 %v2728_v15 }
  0x3f   :  { %2230 = vmatmul.mubr.msk.bf16.gmra.mxu0 %vm161_vm0, %v137_v14 }
  0x40   :  { %226 = vmatprep.mubr.bf16.mxu0 %v2613_v0  ;;  %505 = vmatpush1.bf16.msra.mxu0 %v2725_v13 }
  0x41   :  { %506 = vmatprep.subr.bf16.mxu0 %v2728_v15  ;;  %335 = vmatpush1.bf16.msra.mxu1 %v2733_v18 }
  0x42   :  { %414 = vmatprep.subr.bf16.mxu1 %v2709_v6 }
  0x44   :  { %507 = vmatpush1.bf16.msra.mxu0 %v2733_v18  ;;  %353 = vmatmul.mubr.bf16.vlgmr.msra.gmra.mxu1 %v2613_v0 }
  0x45   :  { %415 = vmatpush1.bf16.msra.mxu1 %v2711_v7  ;;  %438 = vmatprep.mubr.bf16.mxu1 %v2613_v0 }
  0x46   :  { %416 = vmatprep.subr.bf16.mxu1 %v2713_v8  ;;  %670 = vmatprep.subr.bf16.mxu0 %v2709_v6 }
  0x47   :  { %2231 = vmatmul.mubr.msk.bf16.gmra.mxu0 %vm161_vm0, %v138_v19 }
  0x48   :  { %236 = vmatprep.mubr.bf16.mxu0 %v2613_v0 }
  0x49   :  { %417 = vmatpush1.bf16.msra.mxu1 %v2719_v11 }
  0x4a   :  { %418 = vmatprep.subr.bf16.mxu1 %v2722_v12 }
  0x4d   :  { %419 = vmatpush1.bf16.msra.mxu1 %v2725_v13 }
  0x4e   :  { %420 = vmatprep.subr.bf16.mxu1 %v2728_v15 }
  0x4f   :  { %2232 = vmatmul.mubr.msk.bf16.gmra.mxu0 %vm161_vm0, %v139_v22 }
  0x50   :  { %524 = vmatprep.mubr.bf16.mxu0 %v2613_v0 }
  0x51   :  { %421 = vmatpush1.bf16.msra.mxu1 %v2733_v18 }
  0x52   :  { %586 = vmatprep.subr.bf16.mxu1 %v2709_v6 }
  0xf7   :  { %v208_v29 = vpop.f32.mrf.mxu0 }
  0xf8   :  { %v2818_v10 = vadd.f32 %v208_v29, %v144_v31  ;;  %v2837_v29 = vadd.s32 128, %v96_v35 }
  0xf9   :  { %v210_v30 = vpop.f32.mrf.mxu0 }
  0xfa   :  { %v211_v32 = vadd.f32 %v210_v30, %v148_v28  ;;  %vm111_vm7 = vcmp.lt.s32.totalorder %v2837_v29, 160 }
  0xfb   :  { %v212_v33 = vpop.f32.mrf.mxu0 }
  0xfc   :  { %249 = vst.msk [vmem:[#allocation2 + $0x8] sm:$0xff] %vm248_vm1, %v211_v32  ;;  %v2773_v34 = vadd.f32 %v212_v33, %v144_v31 }
  0xfd   :  { %v214_v36 = vpop.f32.mrf.mxu0 }
  0xfe   :  { %v215_v37 = vadd.f32 %v214_v36, %v148_v28 }
  0xff   :  { %v218_v38 = vpop.f32.mrf.mxu0 }
 0x100   :  { %251 = vst.msk [vmem:[#allocation2 + $0x18] sm:$0xff] %vm248_vm1, %v215_v37  ;;  %v2776_v39 = vadd.f32 %v218_v38, %v144_v31 }
 0x101   :  { %v220_v40 = vpop.f32.mrf.mxu0 }
 0x102   :  { %v221_v41 = vadd.f32 %v220_v40, %v148_v28 }
 0x103   :  { %v222_v42 = vpop.f32.mrf.mxu0  ;;  %v2843_v33 = vld [vmem:[#allocation2 + $0x8] sm:$0xff] }
 0x104   :  { %253 = vst.msk [vmem:[#allocation2 + $0x28] sm:$0xff] %vm248_vm1, %v221_v41  ;;  %v2779_v43 = vadd.f32 %v222_v42, %v144_v31  ;;  %v354_v48 = vpop.f32.mrf.mxu1 }
 0x105   :  { %v224_v44 = vpop.f32.mrf.mxu0 }
 0x106   :  { %v225_v45 = vadd.f32 %v224_v44, %v148_v28  ;;  %v356_v51 = vpop.f32.mrf.mxu1 }
 0x107   :  { %v228_v47 = vpop.f32.mrf.mxu0 }
 0x108   :  { %255 = vst.msk [vmem:[#allocation2 + $0x38] sm:$0xff] %vm248_vm1, %v225_v45  ;;  %v2786_v49 = vadd.f32 %v228_v47, %v144_v31  ;;  %v358_v56 = vpop.f32.mrf.mxu1 }
 0x109   :  { %v230_v50 = vpop.f32.mrf.mxu0 }
 0x10a   :  { %v231_v52 = vadd.f32 %v230_v50, %v148_v28  ;;  %v569_v53 = vsel %vm2781_vm6, %v2779_v43, %v2786_v49  ;;  %v653_v54 = vsel %vm2781_vm6, %v2786_v49, %v2779_v43  ;;  %v359_v59 = vpop.f32.mrf.mxu1 }
 0x10b   :  { %v232_v55 = vpop.f32.mrf.mxu0 }
 0x10c   :  { %257 = vst.msk [vmem:[#allocation2 + $0x48] sm:$0xff] %vm248_vm1, %v231_v52  ;;  %v2797_v57 = vadd.f32 %v232_v55, %v144_v31 }
 0x10d   :  { %v234_v58 = vpop.f32.mrf.mxu0 }
 0x10e   :  { %v235_v60 = vadd.f32 %v234_v58, %v148_v28  ;;  %v483_v61 = vsel %vm2781_vm6, %v2776_v39, %v2797_v57  ;;  %v737_v62 = vsel %vm2781_vm6, %v2797_v57, %v2776_v39 }
 0x10f   :  { %v238_v63 = vpop.f32.mrf.mxu0 }
 0x110   :  { %259 = vst.msk [vmem:[#allocation2 + $0x58] sm:$0xff] %vm248_vm1, %v235_v60  ;;  %v2808_v1 = vadd.f32 %v238_v63, %v144_v31 }
 0x111   :  { %v240_v2 = vpop.f32.mrf.mxu0 }
 0x112   :  { %v241_v3 = vadd.f32 %v240_v2, %v148_v28  ;;  %v397_v4 = vsel %vm2781_vm6, %v2773_v34, %v2808_v1  ;;  %v821_v5 = vsel %vm2781_vm6, %v2808_v1, %v2773_v34 }
 0x113   :  { %v242_v9 = vpop.f32.mrf.mxu0 }
 0x114   :  { %261 = vst.msk [vmem:[#allocation2 + $0x68] sm:$0xff] %vm248_vm1, %v241_v3  ;;  %v2821_v14 = vadd.f32 %v242_v9, %v144_v31  ;;  %v2868_v9 = vld [vmem:[#allocation2 + $0x18] sm:$0xff] }
 0x115   :  { %v244_v16 = vpop.f32.mrf.mxu0 }
 0x116   :  { %v245_v17 = vadd.f32 %v244_v16, %v148_v28  ;;  %v275_v19 = vsel %vm2781_vm6, %v2818_v10, %v2821_v14  ;;  %v905_v20 = vsel %vm2781_vm6, %v2821_v14, %v2818_v10  ;;  %v2835_v28 = vld [vmem:[%s3476_s4] ss:$0 sm:$0xff]  ;;  %s2614_s4 = smov 64   ;;  %v2375_v10 = vld [vmem:[#allocation10 + $0x10] ss:$8 sps:$4 sm:$0xff]  }
 0x117   :  { %v361_v21 = vadd.f32 %v354_v48, %v275_v19  ;;  %v368_v31 = vadd.f32 %v2835_v28, %v356_v51  ;;  %v2377_v14 = vld [vmem:[#allocation10 + $0x14] ss:$8 sps:$4 sm:$0xff]  }
 0x118   :  { %263 = vst.msk [vmem:[#allocation2 + $0x78] sm:$0xff] %vm248_vm1, %v245_v17 }
 0x119   :  { %v2242_v22 = vmul.f32 -1.442695, %v361_v21 }
 0x11b   :  { %2403 = vpow2.f32 %v2242_v22  ;;  %v2865_v63 = vld [vmem:[#allocation2 + $0x68] sm:$0xff] }
 0x11f   :  { %v2839_v30 = vld [vmem:[#allocation2 + $0x78] sm:$0xff] }
 0x120   :  { %v276_v37 = vsel %vm111_vm7, %v2843_v33, %v2839_v30 }
 0x128   :  { %v2404_v23 = vpop.eup %2403 }
 0x129   :  { %v365_v26 = vadd.f32 1.0, %v2404_v23 }
 0x12b   :  { %2405 = vrcp.f32 %v365_v26 }
 0x138   :  { %v2406_v32 = vpop.eup %2405 }
 0x139   :  { %v369_v36 = vmul.f32 %v2406_v32, %v368_v31  ;;  %v372_v35 = vsub.f32 1.0, %v2406_v32  ;;  %v378_v42 = vmul.f32 0.0, %v2406_v32 }
 0x13b   :  { %v370_v38 = vadd.f32 %v369_v36, %v276_v37 }
 0x13d   :  { %2407 = vtanh.f32 %v370_v38 }
 0x14a   :  { %v2408_v40 = vpop.eup %2407 }
 0x14b   :  { %374 = vrot.lane.b32.xlu0 %v2408_v40, %s2614_s4 }
 0x1bd   :  { %v375_v41 = vpop.permute.xlu0 %374 }
 0x1be   :  { %v377_v44 = vmul.f32 %v375_v41, %v372_v35 }
 0x1c0   :  { %v2850_v45 = vadd.f32 %v378_v42, %v377_v44 }
 0x1c2   :  { %v399_v47 = vpack.c.bf16 %v2850_v45, %v2850_v45 }
 0x1c4   :  { %401 = vrot.lane.b32.xlu0 %v399_v47, %s2614_s4 }
 0x236   :  { %v402_v48 = vpop.permute.xlu0 %401 }
 0x237   :  { %2243 = vmatmul.mubr.msk.bf16.vlgmr.msra.gmra.mxu1 %vm248_vm1, %v402_v48  ;;  %v2896_v48 = vld [vmem:[#allocation2 + $0x58] sm:$0xff] }
 0x238   :  { %587 = vmatpush1.bf16.msra.mxu1 %v2711_v7  ;;  %610 = vmatprep.mubr.bf16.mxu1 %v2613_v0 }
 0x239   :  { %588 = vmatprep.subr.bf16.mxu1 %v2713_v8 }
 0x23c   :  { %589 = vmatpush1.bf16.msra.mxu1 %v2719_v11 }
 0x23d   :  { %590 = vmatprep.subr.bf16.mxu1 %v2722_v12 }
 0x240   :  { %591 = vmatpush1.bf16.msra.mxu1 %v2725_v13 }
 0x241   :  { %592 = vmatprep.subr.bf16.mxu1 %v2728_v15 }
 0x244   :  { %593 = vmatpush1.bf16.msra.mxu1 %v2733_v18 }
 0x245   :  { %754 = vmatprep.subr.bf16.mxu1 %v2709_v6 }
 0x2f7   :  { %v440_v50 = vpop.f32.mrf.mxu1 }
 0x2f8   :  { %v447_v51 = vadd.f32 %v440_v50, %v397_v4  ;;  %v398_v4 = vsel %vm111_vm7, %v2868_v9, %v2865_v63 }
 0x2f9   :  { %v442_v52 = vpop.f32.mrf.mxu1 }
 0x2fa   :  { %v2244_v55 = vmul.f32 -1.442695, %v447_v51  ;;  %v454_v2 = vadd.f32 %v2835_v28, %v442_v52  ;;  %v2899_v52 = vld [vmem:[#allocation2 + $0x28] sm:$0xff] }
 0x2fb   :  { %v444_v56 = vpop.f32.mrf.mxu1 }
 0x2fc   :  { %2409 = vpow2.f32 %v2244_v55 }
 0x2fd   :  { %v445_v58 = vpop.f32.mrf.mxu1 }
 0x309   :  { %v2410_v59 = vpop.eup %2409 }
 0x30a   :  { %v451_v60 = vadd.f32 1.0, %v2410_v59 }
 0x30c   :  { %2411 = vrcp.f32 %v451_v60 }
 0x319   :  { %v2412_v3 = vpop.eup %2411 }
 0x31a   :  { %v455_v16 = vmul.f32 %v2412_v3, %v454_v2  ;;  %v458_v21 = vsub.f32 1.0, %v2412_v3  ;;  %v464_v23 = vmul.f32 %v2412_v3, %v2850_v45 }
 0x31c   :  { %v456_v17 = vadd.f32 %v455_v16, %v398_v4 }
 0x31e   :  { %2413 = vtanh.f32 %v456_v17 }
 0x32b   :  { %v2414_v19 = vpop.eup %2413 }
 0x32c   :  { %460 = vrot.lane.b32.xlu1 %v2414_v19, %s2614_s4 }
 0x39e   :  { %v461_v22 = vpop.permute.xlu1 %460 }
 0x39f   :  { %v463_v26 = vmul.f32 %v461_v22, %v458_v21 }
 0x3a1   :  { %v2876_v31 = vadd.f32 %v464_v23, %v463_v26 }
 0x3a3   :  { %v485_v32 = vpack.c.bf16 %v2876_v31, %v2876_v31 }
 0x3a5   :  { %487 = vrot.lane.b32.xlu1 %v485_v32, %s2614_s4 }
 0x417   :  { %v488_v36 = vpop.permute.xlu1 %487 }
 0x418   :  { %2245 = vmatmul.mubr.msk.bf16.vlgmr.msra.gmra.mxu0 %vm248_vm1, %v488_v36 }
 0x419   :  { %671 = vmatpush1.bf16.msra.mxu0 %v2711_v7  ;;  %694 = vmatprep.mubr.bf16.mxu0 %v2613_v0 }
 0x41a   :  { %672 = vmatprep.subr.bf16.mxu0 %v2713_v8 }
 0x41d   :  { %673 = vmatpush1.bf16.msra.mxu0 %v2719_v11 }
 0x41e   :  { %674 = vmatprep.subr.bf16.mxu0 %v2722_v12 }
 0x421   :  { %675 = vmatpush1.bf16.msra.mxu0 %v2725_v13 }
 0x422   :  { %676 = vmatprep.subr.bf16.mxu0 %v2728_v15 }
 0x425   :  { %677 = vmatpush1.bf16.msra.mxu0 %v2733_v18 }
 0x426   :  { %838 = vmatprep.subr.bf16.mxu0 %v2709_v6 }
 0x4d8   :  { %v526_v37 = vpop.f32.mrf.mxu0 }
 0x4d9   :  { %v533_v38 = vadd.f32 %v526_v37, %v483_v61  ;;  %v484_v61 = vsel %vm111_vm7, %v2899_v52, %v2896_v48 }
 0x4da   :  { %v528_v40 = vpop.f32.mrf.mxu0 }
 0x4db   :  { %v2246_v35 = vmul.f32 -1.442695, %v533_v38  ;;  %v540_v50 = vadd.f32 %v2835_v28, %v528_v40  ;;  %v568_v38 = vld [vmem:[#allocation2 + $0x48] sm:$0xff] }
 0x4dc   :  { %v530_v41 = vpop.f32.mrf.mxu0 }
 0x4dd   :  { %2415 = vpow2.f32 %v2246_v35 }
 0x4de   :  { %v531_v42 = vpop.f32.mrf.mxu0 }
 0x4ea   :  { %v2416_v44 = vpop.eup %2415 }
 0x4eb   :  { %v537_v47 = vadd.f32 1.0, %v2416_v44 }
 0x4ed   :  { %2417 = vrcp.f32 %v537_v47 }
 0x4fa   :  { %v2418_v51 = vpop.eup %2417 }
 0x4fb   :  { %v541_v55 = vmul.f32 %v2418_v51, %v540_v50  ;;  %v544_v59 = vsub.f32 1.0, %v2418_v51  ;;  %v550_v2 = vmul.f32 %v2418_v51, %v2876_v31 }
 0x4fd   :  { %v542_v56 = vadd.f32 %v541_v55, %v484_v61 }
 0x4ff   :  { %2419 = vtanh.f32 %v542_v56 }
 0x50c   :  { %v2420_v58 = vpop.eup %2419 }
 0x50d   :  { %546 = vrot.lane.b32.xlu0 %v2420_v58, %s2614_s4 }
 0x57f   :  { %v547_v60 = vpop.permute.xlu0 %546 }
 0x580   :  { %v549_v3 = vmul.f32 %v547_v60, %v544_v59 }
 0x582   :  { %v2907_v16 = vadd.f32 %v550_v2, %v549_v3 }
 0x584   :  { %v571_v4 = vpack.c.bf16 %v2907_v16, %v2907_v16 }
 0x586   :  { %573 = vrot.lane.b32.xlu1 %v571_v4, %s2614_s4 }
 0x5f8   :  { %v574_v17 = vpop.permute.xlu1 %573 }
 0x5f9   :  { %2247 = vmatmul.mubr.msk.bf16.vlgmr.msra.gmra.mxu1 %vm248_vm1, %v574_v17 }
 0x5fa   :  { %755 = vmatpush1.bf16.msra.mxu1 %v2711_v7  ;;  %778 = vmatprep.mubr.bf16.mxu1 %v2613_v0 }
 0x5fb   :  { %756 = vmatprep.subr.bf16.mxu1 %v2713_v8 }
 0x5fe   :  { %757 = vmatpush1.bf16.msra.mxu1 %v2719_v11 }
 0x5ff   :  { %758 = vmatprep.subr.bf16.mxu1 %v2722_v12 }
 0x602   :  { %759 = vmatpush1.bf16.msra.mxu1 %v2725_v13 }
 0x603   :  { %760 = vmatprep.subr.bf16.mxu1 %v2728_v15 }
 0x606   :  { %761 = vmatpush1.bf16.msra.mxu1 %v2733_v18 }
 0x607   :  { %922 = vmatprep.subr.bf16.mxu1 %v2709_v6  ;;  %v565_v6 = vld [vmem:[#allocation2 + $0x38] sm:$0xff] }
 0x608   :  { %v570_v42 = vsel %vm111_vm7, %v565_v6, %v568_v38 }
 0x6b9   :  { %v612_v19 = vpop.f32.mrf.mxu1 }
 0x6ba   :  { %v619_v21 = vadd.f32 %v612_v19, %v569_v53 }
 0x6bb   :  { %v614_v22 = vpop.f32.mrf.mxu1 }
 0x6bc   :  { %v2248_v23 = vmul.f32 -1.442695, %v619_v21  ;;  %v626_v40 = vadd.f32 %v2835_v28, %v614_v22 }
 0x6bd   :  { %v616_v26 = vpop.f32.mrf.mxu1 }
 0x6be   :  { %2421 = vpow2.f32 %v2248_v23 }
 0x6bf   :  { %v617_v32 = vpop.f32.mrf.mxu1 }
 0x6c0   :  { %v654_v32 = vsel %vm111_vm7, %v568_v38, %v565_v6 }
 0x6cb   :  { %v2422_v36 = vpop.eup %2421 }
 0x6cc   :  { %v623_v37 = vadd.f32 1.0, %v2422_v36 }
 0x6ce   :  { %2423 = vrcp.f32 %v623_v37 }
 0x6db   :  { %v2424_v35 = vpop.eup %2423 }
 0x6dc   :  { %v627_v41 = vmul.f32 %v2424_v35, %v626_v40  ;;  %v630_v47 = vsub.f32 1.0, %v2424_v35  ;;  %v636_v51 = vmul.f32 %v2424_v35, %v2907_v16 }
 0x6de   :  { %v628_v44 = vadd.f32 %v627_v41, %v570_v42 }
 0x6e0   :  { %2425 = vtanh.f32 %v628_v44 }
 0x6ed   :  { %v2426_v53 = vpop.eup %2425 }
 0x6ee   :  { %632 = vrot.lane.b32.xlu0 %v2426_v53, %s2614_s4 }
 0x760   :  { %v633_v50 = vpop.permute.xlu0 %632 }
 0x761   :  { %v635_v55 = vmul.f32 %v633_v50, %v630_v47 }
 0x763   :  { %v2932_v61 = vadd.f32 %v636_v51, %v635_v55 }
 0x765   :  { %v655_v56 = vpack.c.bf16 %v2932_v61, %v2932_v61 }
 0x767   :  { %657 = vrot.lane.b32.xlu1 %v655_v56, %s2614_s4 }
 0x7d9   :  { %v658_v58 = vpop.permute.xlu1 %657 }
 0x7da   :  { %2249 = vmatmul.mubr.msk.bf16.vlgmr.msra.gmra.mxu0 %vm248_vm1, %v658_v58 }
 0x7db   :  { %839 = vmatpush1.bf16.msra.mxu0 %v2711_v7  ;;  %862 = vmatprep.mubr.bf16.mxu0 %v2613_v0 }
 0x7dc   :  { %840 = vmatprep.subr.bf16.mxu0 %v2713_v8 }
 0x7df   :  { %841 = vmatpush1.bf16.msra.mxu0 %v2719_v11 }
 0x7e0   :  { %842 = vmatprep.subr.bf16.mxu0 %v2722_v12 }
 0x7e3   :  { %843 = vmatpush1.bf16.msra.mxu0 %v2725_v13 }
 0x7e4   :  { %844 = vmatprep.subr.bf16.mxu0 %v2728_v15 }
 0x7e7   :  { %845 = vmatpush1.bf16.msra.mxu0 %v2733_v18 }
 0x89a   :  { %v696_v59 = vpop.f32.mrf.mxu0 }
 0x89b   :  { %v703_v60 = vadd.f32 %v696_v59, %v653_v54 }
 0x89c   :  { %v698_v2 = vpop.f32.mrf.mxu0 }
 0x89d   :  { %v2250_v3 = vmul.f32 -1.442695, %v703_v60  ;;  %v710_v22 = vadd.f32 %v2835_v28, %v698_v2 }
 0x89e   :  { %v700_v4 = vpop.f32.mrf.mxu0 }
 0x89f   :  { %2427 = vpow2.f32 %v2250_v3 }
 0x8a0   :  { %v701_v17 = vpop.f32.mrf.mxu0 }
 0x8ac   :  { %v2428_v19 = vpop.eup %2427 }
 0x8ad   :  { %v707_v21 = vadd.f32 1.0, %v2428_v19 }
 0x8af   :  { %2429 = vrcp.f32 %v707_v21 }
 0x8bc   :  { %v2430_v23 = vpop.eup %2429 }
 0x8bd   :  { %v711_v26 = vmul.f32 %v2430_v23, %v710_v22  ;;  %v714_v43 = vsub.f32 1.0, %v2430_v23  ;;  %v720_v54 = vmul.f32 %v2430_v23, %v2932_v61 }
 0x8bf   :  { %v712_v36 = vadd.f32 %v711_v26, %v654_v32  ;;  %v822_v26 = vsel %vm111_vm7, %v2865_v63, %v2868_v9 }
 0x8c1   :  { %2431 = vtanh.f32 %v712_v36 }
 0x8ce   :  { %v2432_v37 = vpop.eup %2431 }
 0x8cf   :  { %716 = vrot.lane.b32.xlu0 %v2432_v37, %s2614_s4 }
 0x941   :  { %v717_v49 = vpop.permute.xlu0 %716 }
 0x942   :  { %v719_v40 = vmul.f32 %v717_v49, %v714_v43 }
 0x944   :  { %v2956_v35 = vadd.f32 %v720_v54, %v719_v40 }
 0x946   :  { %v739_v41 = vpack.c.bf16 %v2956_v35, %v2956_v35 }
 0x948   :  { %741 = vrot.lane.b32.xlu1 %v739_v41, %s2614_s4 }
 0x9ba   :  { %v742_v42 = vpop.permute.xlu1 %741 }
 0x9bb   :  { %2251 = vmatmul.mubr.msk.bf16.vlgmr.msra.gmra.mxu1 %vm248_vm1, %v742_v42 }
 0x9bc   :  { %923 = vmatpush1.bf16.msra.mxu1 %v2711_v7  ;;  %946 = vmatprep.mubr.bf16.mxu1 %v2613_v0 }
 0x9bd   :  { %924 = vmatprep.subr.bf16.mxu1 %v2713_v8 }
 0x9c0   :  { %925 = vmatpush1.bf16.msra.mxu1 %v2719_v11 }
 0x9c1   :  { %926 = vmatprep.subr.bf16.mxu1 %v2722_v12 }
 0x9c4   :  { %927 = vmatpush1.bf16.msra.mxu1 %v2725_v13 }
 0x9c5   :  { %928 = vmatprep.subr.bf16.mxu1 %v2728_v15 }
 0x9c8   :  { %929 = vmatpush1.bf16.msra.mxu1 %v2733_v18  ;;  %v738_v18 = vsel %vm111_vm7, %v2896_v48, %v2899_v52 }
 0x9c9   :  { %1175 = vmatprep.subr.bf16.mxu1 %v2377_v14 }
 0xa7b   :  { %v780_v38 = vpop.f32.mrf.mxu1 }
 0xa7c   :  { %v787_v7 = vadd.f32 %v780_v38, %v737_v62 }
 0xa7d   :  { %v782_v6 = vpop.f32.mrf.mxu1 }
 0xa7e   :  { %v2252_v44 = vmul.f32 -1.442695, %v787_v7  ;;  %v794_v13 = vadd.f32 %v2835_v28, %v782_v6 }
 0xa7f   :  { %v784_v8 = vpop.f32.mrf.mxu1 }
 0xa80   :  { %2433 = vpow2.f32 %v2252_v44 }
 0xa81   :  { %v785_v11 = vpop.f32.mrf.mxu1 }
 0xa8d   :  { %v2434_v53 = vpop.eup %2433 }
 0xa8e   :  { %v791_v12 = vadd.f32 1.0, %v2434_v53 }
 0xa90   :  { %2435 = vrcp.f32 %v791_v12 }
 0xa9d   :  { %v2436_v15 = vpop.eup %2435 }
 0xa9e   :  { %v795_v47 = vmul.f32 %v2436_v15, %v794_v13  ;;  %v798_v57 = vsub.f32 1.0, %v2436_v15  ;;  %v804_v51 = vmul.f32 %v2436_v15, %v2956_v35 }
 0xaa0   :  { %v796_v50 = vadd.f32 %v795_v47, %v738_v18  ;;  %v906_v18 = vsel %vm111_vm7, %v2839_v30, %v2843_v33  ;;  %v2384_v30 = vld [vmem:[#allocation10 + $0x20] ss:$8 sps:$4 sm:$0xff]   ;;  %v2386_v33 = vld [vmem:[#allocation10 + $0x24] ss:$8 sps:$4 sm:$0xff]  }
 0xaa2   :  { %2437 = vtanh.f32 %v796_v50 }
 0xaaf   :  { %v2438_v39 = vpop.eup %2437 }
 0xab0   :  { %800 = vrot.lane.b32.xlu0 %v2438_v39, %s2614_s4  ;;  %v2380_v39 = vld [vmem:[#allocation10 + $0x4] ss:$8 sps:$4 sm:$0xff]  }
 0xb22   :  { %v801_v62 = vpop.permute.xlu0 %800 }
 0xb23   :  { %v803_v55 = vmul.f32 %v801_v62, %v798_v57  ;;  %v2383_v62 = vld [vmem:[#allocation10 + $0x34] ss:$8 sps:$4 sm:$0xff]  }
 0xb24   :  { %1070 = vmatprep.subr.bf16.mxu0 %v2383_v62 }
 0xb25   :  { %v2982_v56 = vadd.f32 %v804_v51, %v803_v55 }
 0xb27   :  { %v823_v58 = vpack.c.bf16 %v2982_v56, %v2982_v56 }
 0xb29   :  { %825 = vrot.lane.b32.xlu1 %v823_v58, %s2614_s4 }
 0xb9b   :  { %v826_v59 = vpop.permute.xlu1 %825 }
 0xb9c   :  { %2253 = vmatmul.mubr.msk.bf16.vlgmr.msra.gmra.mxu0 %vm248_vm1, %v826_v59 }
 0xb9d   :  { %1090 = vmatprep.mubr.bf16.mxu0 %v2613_v0 }
 0xc5c   :  { %v864_v48 = vpop.f32.mrf.mxu0 }
 0xc5d   :  { %v871_v52 = vadd.f32 %v864_v48, %v821_v5 }
 0xc5e   :  { %v866_v60 = vpop.f32.mrf.mxu0 }
 0xc5f   :  { %v2254_v2 = vmul.f32 -1.442695, %v871_v52  ;;  %v878_v21 = vadd.f32 %v2835_v28, %v866_v60  ;;  %v3050_v60 = vld [vmem:[#allocation11 + $0x34] ss:$8 sps:$4 sm:$0xff]  }
 0xc60   :  { %v868_v3 = vpop.f32.mrf.mxu0 }
 0xc61   :  { %2439 = vpow2.f32 %v2254_v2 }
 0xc62   :  { %v869_v4 = vpop.f32.mrf.mxu0 }
 0xc6e   :  { %v2440_v17 = vpop.eup %2439 }
 0xc6f   :  { %v875_v19 = vadd.f32 1.0, %v2440_v17  ;;  %v3056_v17 = vld [vmem:[#allocation11 + $0x30] ss:$8 sps:$4 sm:$0xff]  }
 0xc71   :  { %2441 = vrcp.f32 %v875_v19  ;;  %v3063_v19 = vld [vmem:[#allocation11 + $0x24] ss:$8 sps:$4 sm:$0xff]  }
 0xc7e   :  { %v2442_v22 = vpop.eup %2441 }
 0xc7f   :  { %v879_v23 = vmul.f32 %v2442_v22, %v878_v21  ;;  %v882_v1 = vsub.f32 1.0, %v2442_v22  ;;  %v888_v36 = vmul.f32 %v2442_v22, %v2982_v56  ;;  %v3065_v21 = vld [vmem:[#allocation11 + $0x20] ss:$8 sps:$4 sm:$0xff]   ;;  %v3071_v22 = vld [vmem:[#allocation11 + $0x14] ss:$8 sps:$4 sm:$0xff]  }
 0xc81   :  { %v880_v32 = vadd.f32 %v879_v23, %v822_v26  ;;  %v3075_v23 = vld [vmem:[#allocation11 + $0x10] ss:$8 sps:$4 sm:$0xff]   ;;  %v3077_v26 = vld [vmem:[#allocation11 + $0x4] ss:$8 sps:$4 sm:$0xff]  }
 0xc83   :  { %2443 = vtanh.f32 %v880_v32 }
 0xc90   :  { %v2444_v34 = vpop.eup %2443 }
 0xc91   :  { %884 = vrot.lane.b32.xlu0 %v2444_v34, %s2614_s4 }
 0xd03   :  { %v885_v5 = vpop.permute.xlu0 %884 }
 0xd04   :  { %v887_v37 = vmul.f32 %v885_v5, %v882_v1 }
 0xd06   :  { %v3001_v43 = vadd.f32 %v888_v36, %v887_v37 }
 0xd08   :  { %v907_v49 = vpack.c.bf16 %v3001_v43, %v3001_v43 }
 0xd0a   :  { %909 = vrot.lane.b32.xlu1 %v907_v49, %s2614_s4 }
 0xd0e   :  { %381 = vrot.lane.b32.xlu1 %v2850_v45, %s2614_s4 }
 0xd12   :  { %896 = vrot.lane.b32.xlu1 %v3001_v43, %s2615_s24 }
 0xd16   :  { %553 = vrot.lane.b32.xlu1 %v2907_v16, %s2614_s4 }
 0xd1a   :  { %728 = vrot.lane.b32.xlu1 %v2956_v35, %s2615_s24 }
 0xd1e   :  { %558 = vrot.lane.b32.xlu1 %v2907_v16, %s2615_s24 }
 0xd22   :  { %723 = vrot.lane.b32.xlu1 %v2956_v35, %s2614_s4 }
 0xd26   :  { %386 = vrot.lane.b32.xlu1 %v2850_v45, %s2615_s24 }
 0xd2a   :  { %891 = vrot.lane.b32.xlu1 %v3001_v43, %s2614_s4 }
 0xd7c   :  { %v910_v63 = vpop.permute.xlu1 %909 }
 0xd7d   :  { %2255 = vmatmul.mubr.msk.bf16.vlgmr.msra.gmra.mxu1 %vm248_vm1, %v910_v63 }
 0xd7e   :  { %1195 = vmatprep.mubr.bf16.mxu1 %v2613_v0  ;;  %1176 = vmatpush1.bf16.msra.mxu1 %v2375_v10 }
 0xd7f   :  { %1177 = vmatprep.subr.bf16.mxu1 %v2380_v39 }
 0xd80   :  { %v382_v9 = vpop.permute.xlu1 %381 }
 0xd81   :  { %385 = vst.msk [vmem:[#allocation3] sm:$0xff] %vm384_vm8, %v382_v9 }
 0xd84   :  { %v897_v54 = vpop.permute.xlu1 %896 }
 0xd85   :  { %900 = vst.msk [vmem:[#allocation4 + $0x8] sm:$0xff] %vm384_vm8, %v897_v54 }
 0xd88   :  { %v554_v16 = vpop.permute.xlu1 %553  ;;  %v1002_v2 = vld [vmem:[#allocation3] sm:$0xff] }
 0xd89   :  { %557 = vst.msk [vmem:[#allocation3 + $0x10] sm:$0xff] %vm384_vm8, %v554_v16 }
 0xd8c   :  { %v729_v40 = vpop.permute.xlu1 %728  ;;  %v1015_v1 = vld [vmem:[#allocation4 + $0x8] sm:$0xff] }
 0xd8d   :  { %732 = vst.msk [vmem:[#allocation4 + $0x18] sm:$0xff] %vm384_vm8, %v729_v40 }
 0xd90   :  { %v559_v45 = vpop.permute.xlu1 %558  ;;  %v1004_v37 = vld [vmem:[#allocation3 + $0x10] sm:$0xff] }
 0xd91   :  { %562 = vst.msk [vmem:[#allocation4 + $0x28] sm:$0xff] %vm384_vm8, %v559_v45 }
 0xd94   :  { %v724_v35 = vpop.permute.xlu1 %723  ;;  %v1017_v54 = vld [vmem:[#allocation4 + $0x18] sm:$0xff] }
 0xd95   :  { %727 = vst.msk [vmem:[#allocation3 + $0x20] sm:$0xff] %vm384_vm8, %v724_v35 }
 0xd98   :  { %v387_v41 = vpop.permute.xlu1 %386 }
 0xd99   :  { %390 = vst.msk [vmem:[#allocation4 + $0x38] sm:$0xff] %vm384_vm8, %v387_v41  ;;  %v1019_v41 = vld [vmem:[#allocation4 + $0x28] sm:$0xff] }
 0xd9c   :  { %v892_v42 = vpop.permute.xlu1 %891 }
 0xd9d   :  { %895 = vst.msk [vmem:[#allocation3 + $0x30] sm:$0xff] %vm384_vm8, %v892_v42  ;;  %v1006_v42 = vld [vmem:[#allocation3 + $0x20] sm:$0xff] }
 0xe3d   :  { %v948_v38 = vpop.f32.mrf.mxu1 }
 0xe3e   :  { %v955_v7 = vadd.f32 %v948_v38, %v905_v20  ;;  %v2378_v20 = vld [vmem:[#allocation10] ss:$8 sps:$4 sm:$0xff]  }
 0xe3f   :  { %v950_v6 = vpop.f32.mrf.mxu1  ;;  %1178 = vmatpush1.bf16.msra.mxu1 %v2378_v20 }
 0xe40   :  { %v2256_v44 = vmul.f32 -1.442695, %v955_v7  ;;  %v962_v13 = vadd.f32 %v2835_v28, %v950_v6  ;;  %v2381_v28 = vld [vmem:[#allocation10 + $0x30] ss:$8 sps:$4 sm:$0xff]   ;;  %1421 = vmatprep.subr.bf16.mxu1 %v3050_v60 }
 0xe41   :  { %v952_v8 = vpop.f32.mrf.mxu1  ;;  %1071 = vmatpush1.bf16.msra.mxu0 %v2381_v28 }
 0xe42   :  { %2445 = vpow2.f32 %v2256_v44  ;;  %1072 = vmatprep.subr.bf16.mxu0 %v2386_v33  ;;  %v1021_v8 = vld [vmem:[#allocation4 + $0x38] sm:$0xff] }
 0xe43   :  { %v953_v11 = vpop.f32.mrf.mxu1 }
 0xe44   :  { %v1008_v11 = vld [vmem:[#allocation3 + $0x30] sm:$0xff] }
 0xe45   :  { %1073 = vmatpush1.bf16.msra.mxu0 %v2384_v30 }
 0xe46   :  { %1339 = vmatprep.subr.bf16.mxu0 %v3050_v60 }
 0xe4f   :  { %v2446_v53 = vpop.eup %2445 }
 0xe50   :  { %v959_v12 = vadd.f32 1.0, %v2446_v53 }
 0xe52   :  { %2447 = vrcp.f32 %v959_v12 }
 0xe5f   :  { %v2448_v15 = vpop.eup %2447 }
 0xe60   :  { %v963_v47 = vmul.f32 %v2448_v15, %v962_v13  ;;  %v966_v51 = vsub.f32 1.0, %v2448_v15  ;;  %v972_v58 = vmul.f32 %v2448_v15, %v3001_v43 }
 0xe62   :  { %v964_v50 = vadd.f32 %v963_v47, %v906_v18  ;;  %v1000_v18 = vld [vmem:[%s3479_s7] sm:$0x3] }
 0xe63   :  { %v3131_v10 = vrot.slane %v1000_v18, %v143_v27  ;;  %v3135_v39 = vrot.slane %v1000_v18, %v147_v25 }
 0xe64   :  { %2449 = vtanh.f32 %v964_v50 }
 0xe71   :  { %v2450_v57 = vpop.eup %2449 }
 0xe72   :  { %968 = vrot.lane.b32.xlu0 %v2450_v57, %s2614_s4 }
 0xe76   :  { %467 = vrot.lane.b32.xlu0 %v2876_v31, %s2614_s4 }
 0xee4   :  { %v969_v55 = vpop.permute.xlu0 %968 }
 0xee5   :  { %v971_v59 = vmul.f32 %v969_v55, %v966_v51 }
 0xee7   :  { %v973_v48 = vadd.f32 %v972_v58, %v971_v59 }
 0xee8   :  { %v468_v52 = vpop.permute.xlu0 %467 }
 0xee9   :  { %471 = vst.msk [vmem:[#allocation3 + $0x8] sm:$0xff] %vm384_vm8, %v468_v52  ;;  %980 = vrot.lane.b32.xlu0 %v973_v48, %s2615_s24 }
 0xeed   :  { %639 = vrot.lane.b32.xlu0 %v2932_v61, %s2614_s4 }
 0xef0   :  { %v1003_v3 = vld [vmem:[#allocation3 + $0x8] sm:$0xff] }
 0xef1   :  { %812 = vrot.lane.b32.xlu0 %v2982_v56, %s2615_s24  ;;  %v1010_v4 = vpack.c.bf16 %v1003_v3, %v1002_v2 }
 0xef3   :  { %2269 = vmatmul.mubr.msk.bf16.vlgmr.msra.gmra.mxu1 %vm384_vm8, %v1010_v4 }
 0xef4   :  { %1205 = vmatprep.mubr.bf16.mxu1 %v2613_v0  ;;  %1422 = vmatpush1.bf16.msra.mxu1 %v3056_v17 }
 0xef5   :  { %644 = vrot.lane.b32.xlu0 %v2932_v61, %s2615_s24  ;;  %1423 = vmatprep.subr.bf16.mxu1 %v3063_v19  ;;  %v3083_v61 = vld [vmem:[#allocation11] ss:$8 sps:$4 sm:$0xff]  }
 0xef8   :  { %1424 = vmatpush1.bf16.msra.mxu1 %v3065_v21 }
 0xef9   :  { %807 = vrot.lane.b32.xlu0 %v2982_v56, %s2614_s4  ;;  %1425 = vmatprep.subr.bf16.mxu1 %v3071_v22 }
 0xefc   :  { %1426 = vmatpush1.bf16.msra.mxu1 %v3075_v23 }
 0xefd   :  { %472 = vrot.lane.b32.xlu0 %v2876_v31, %s2615_s24  ;;  %1427 = vmatprep.subr.bf16.mxu1 %v3077_v26 }
 0xf00   :  { %1428 = vmatpush1.bf16.msra.mxu1 %v3083_v61 }
 0xf01   :  { %975 = vrot.lane.b32.xlu0 %v973_v48, %s2614_s4  ;;  %1585 = vmatprep.subr.bf16.mxu1 %v3050_v60 }
 0xf5b   :  { %v981_v56 = vpop.permute.xlu0 %980 }
 0xf5c   :  { %983 = vst.msk [vmem:[#allocation4] sm:$0xff] %vm384_vm8, %v981_v56 }
 0xf5f   :  { %v640_v31 = vpop.permute.xlu0 %639 }
 0xf60   :  { %643 = vst.msk [vmem:[#allocation3 + $0x18] sm:$0xff] %vm384_vm8, %v640_v31 }
 0xf63   :  { %v813_v32 = vpop.permute.xlu0 %812  ;;  %v1014_v34 = vld [vmem:[#allocation4] sm:$0xff] }
 0xf64   :  { %816 = vst.msk [vmem:[#allocation4 + $0x10] sm:$0xff] %vm384_vm8, %v813_v32  ;;  %v1022_v5 = vpack.c.bf16 %v1015_v1, %v1014_v34 }
 0xf66   :  { %2261 = vmatmul.mubr.msk.bf16.vlgmr.msra.gmra.mxu0 %vm384_vm8, %v1022_v5 }
 0xf67   :  { %v645_v36 = vpop.permute.xlu0 %644  ;;  %v1005_v43 = vld [vmem:[#allocation3 + $0x18] sm:$0xff]  ;;  %1100 = vmatprep.mubr.bf16.mxu0 %v2613_v0  ;;  %1340 = vmatpush1.bf16.msra.mxu0 %v3056_v17 }
 0xf68   :  { %648 = vst.msk [vmem:[#allocation4 + $0x20] sm:$0xff] %vm384_vm8, %v645_v36  ;;  %v1011_v49 = vpack.c.bf16 %v1005_v43, %v1004_v37  ;;  %1341 = vmatprep.subr.bf16.mxu0 %v3063_v19 }
 0xf6a   :  { %2270 = vmatmul.mubr.msk.bf16.gmra.mxu1 %vm384_vm8, %v1011_v49 }
 0xf6b   :  { %v808_v63 = vpop.permute.xlu0 %807  ;;  %v1016_v9 = vld [vmem:[#allocation4 + $0x10] sm:$0xff]  ;;  %1215 = vmatprep.mubr.bf16.mxu1 %v2613_v0  ;;  %1342 = vmatpush1.bf16.msra.mxu0 %v3065_v21 }
 0xf6c   :  { %811 = vst.msk [vmem:[#allocation3 + $0x28] sm:$0xff] %vm384_vm8, %v808_v63  ;;  %v1023_v16 = vpack.c.bf16 %v1017_v54, %v1016_v9  ;;  %1343 = vmatprep.subr.bf16.mxu0 %v3071_v22 }
 0xf6e   :  { %2262 = vmatmul.mubr.msk.bf16.gmra.mxu0 %vm384_vm8, %v1023_v16 }
 0xf6f   :  { %v473_v40 = vpop.permute.xlu0 %472  ;;  %1110 = vmatprep.mubr.bf16.mxu0 %v2613_v0  ;;  %1344 = vmatpush1.bf16.msra.mxu0 %v3075_v23  ;;  %v1018_v45 = vld [vmem:[#allocation4 + $0x20] sm:$0xff] }
 0xf70   :  { %476 = vst.msk [vmem:[#allocation4 + $0x30] sm:$0xff] %vm384_vm8, %v473_v40  ;;  %1345 = vmatprep.subr.bf16.mxu0 %v3077_v26  ;;  %v1024_v7 = vpack.c.bf16 %v1019_v41, %v1018_v45 }
 0xf73   :  { %v976_v35 = vpop.permute.xlu0 %975  ;;  %v1007_v38 = vld [vmem:[#allocation3 + $0x28] sm:$0xff]  ;;  %1346 = vmatpush1.bf16.msra.mxu0 %v3083_v61 }
 0xf74   :  { %979 = vst.msk [vmem:[#allocation3 + $0x38] sm:$0xff] %vm384_vm8, %v976_v35  ;;  %v1012_v6 = vpack.c.bf16 %v1007_v38, %v1006_v42  ;;  %1503 = vmatprep.subr.bf16.mxu0 %v3050_v60 }
 0xf76   :  { %2263 = vmatmul.mubr.msk.bf16.gmra.mxu0 %vm384_vm8, %v1024_v7  ;;  %2271 = vmatmul.mubr.msk.bf16.gmra.mxu1 %vm384_vm8, %v1012_v6 }
 0xf77   :  { %1120 = vmatprep.mubr.bf16.mxu0 %v2613_v0  ;;  %1225 = vmatprep.mubr.bf16.mxu1 %v2613_v0  ;;  %v1020_v44 = vld [vmem:[#allocation4 + $0x30] sm:$0xff] }
 0xf78   :  { %v1025_v12 = vpack.c.bf16 %v1021_v8, %v1020_v44 }
 0xf7b   :  { %v1009_v53 = vld [vmem:[#allocation3 + $0x38] sm:$0xff] }
 0xf7c   :  { %v1013_v13 = vpack.c.bf16 %v1009_v53, %v1008_v11 }
 0xf7e   :  { %2264 = vmatmul.mubr.msk.bf16.gmra.mxu0 %vm384_vm8, %v1025_v12  ;;  %2272 = vmatmul.mubr.msk.bf16.gmra.mxu1 %vm384_vm8, %v1013_v13 }
 0xf7f   :  { %1363 = vmatprep.mubr.bf16.mxu0 %v2613_v0  ;;  %1445 = vmatprep.mubr.bf16.mxu1 %v2613_v0 }
 0xf86   :  { %1364 = vmatmul.mubr.bf16.vlgmr.msra.gmra.mxu0 %v2613_v0 }
 0xf87   :  { %1504 = vmatpush1.bf16.msra.mxu0 %v3056_v17  ;;  %1527 = vmatprep.mubr.bf16.mxu0 %v2613_v0 }
 0xf88   :  { %1505 = vmatprep.subr.bf16.mxu0 %v3063_v19 }
 0xf8b   :  { %1506 = vmatpush1.bf16.msra.mxu0 %v3065_v21 }
 0xf8c   :  { %1507 = vmatprep.subr.bf16.mxu0 %v3071_v22 }
 0xf8f   :  { %1508 = vmatpush1.bf16.msra.mxu0 %v3075_v23 }
 0xf90   :  { %1509 = vmatprep.subr.bf16.mxu0 %v3077_v26 }
 0xf93   :  { %1510 = vmatpush1.bf16.msra.mxu0 %v3083_v61 }
 0xf94   :  { %1667 = vmatprep.subr.bf16.mxu0 %v3050_v60 }
 0xfb3   :  { %v1197_v15 = vpop.f32.mrf.mxu1 }
 0xfb5   :  { %v1199_v47 = vpop.f32.mrf.mxu1 }
 0xfb7   :  { %v1201_v50 = vpop.f32.mrf.mxu1 }
 0xfb9   :  { %v1203_v57 = vpop.f32.mrf.mxu1 }
0x1026   :  { %v1092_v14 = vpop.f32.mrf.mxu0 }
0x1027   :  { %v1198_v20 = vadd.f32 %v1197_v15, %v1092_v14 }
0x1028   :  { %v1094_v28 = vpop.f32.mrf.mxu0 }
0x1029   :  { %v3138_v62 = vadd.f32 %v3131_v10, %v1198_v20  ;;  %v1200_v30 = vadd.f32 %v1199_v47, %v1094_v28 }
0x102a   :  { %v1096_v33 = vpop.f32.mrf.mxu0  ;;  %v1207_v51 = vpop.f32.mrf.mxu1 }
0x102b   :  { %v1248_v55 = vadd.f32 %v3135_v39, %v1200_v30  ;;  %v1202_v58 = vadd.f32 %v1201_v50, %v1096_v33 }
0x102c   :  { %v1098_v59 = vpop.f32.mrf.mxu0  ;;  %v1209_v27 = vpop.f32.mrf.mxu1 }
0x102d   :  { %1264 = vst.msk [vmem:[#allocation2 + $0x8] sm:$0xff] %vm248_vm1, %v1248_v55  ;;  %v3143_v48 = vadd.f32 %v3131_v10, %v1202_v58  ;;  %v1204_v24 = vadd.f32 %v1203_v57, %v1098_v59 }
0x102e   :  { %v1102_v25 = vpop.f32.mrf.mxu0  ;;  %v1211_v3 = vpop.f32.mrf.mxu1 }
0x102f   :  { %v1250_v52 = vadd.f32 %v3135_v39, %v1204_v24  ;;  %v1208_v2 = vadd.f32 %v1207_v51, %v1102_v25 }
0x1030   :  { %v1104_v4 = vpop.f32.mrf.mxu0  ;;  %v1213_v5 = vpop.f32.mrf.mxu1 }
0x1031   :  { %1266 = vst.msk [vmem:[#allocation2 + $0x18] sm:$0xff] %vm248_vm1, %v1250_v52  ;;  %v3148_v56 = vadd.f32 %v3131_v10, %v1208_v2  ;;  %v1210_v31 = vadd.f32 %v1209_v27, %v1104_v4 }
0x1032   :  { %v1106_v32 = vpop.f32.mrf.mxu0 }
0x1033   :  { %v1252_v34 = vadd.f32 %v3135_v39, %v1210_v31  ;;  %v1212_v1 = vadd.f32 %v1211_v3, %v1106_v32 }
0x1034   :  { %v1108_v36 = vpop.f32.mrf.mxu0 }
0x1035   :  { %1268 = vst.msk [vmem:[#allocation2 + $0x28] sm:$0xff] %vm248_vm1, %v1252_v34  ;;  %v3153_v37 = vadd.f32 %v3131_v10, %v1212_v1  ;;  %v1214_v43 = vadd.f32 %v1213_v5, %v1108_v36 }
0x1036   :  { %v1112_v49 = vpop.f32.mrf.mxu0  ;;  %v1217_v63 = vpop.f32.mrf.mxu1 }
0x1037   :  { %v1254_v9 = vadd.f32 %v3135_v39, %v1214_v43  ;;  %v1218_v54 = vadd.f32 %v1217_v63, %v1112_v49 }
0x1038   :  { %v1114_v16 = vpop.f32.mrf.mxu0  ;;  %v1219_v40 = vpop.f32.mrf.mxu1 }
0x1039   :  { %1270 = vst.msk [vmem:[#allocation2 + $0x38] sm:$0xff] %vm248_vm1, %v1254_v9  ;;  %v3158_v45 = vadd.f32 %v3131_v10, %v1218_v54  ;;  %v1220_v35 = vadd.f32 %v1219_v40, %v1114_v16  ;;  %v1401_v16 = vld [vmem:[#allocation2 + $0x18] sm:$0xff] }
0x103a   :  { %v1116_v41 = vpop.f32.mrf.mxu0  ;;  %v1221_v42 = vpop.f32.mrf.mxu1 }
0x103b   :  { %v1256_v38 = vadd.f32 %v3135_v39, %v1220_v35  ;;  %v1222_v7 = vadd.f32 %v1221_v42, %v1116_v41  ;;  %v1568_v6 = vsel %vm2781_vm6, %v3153_v37, %v3158_v45  ;;  %v1650_v44 = vsel %vm2781_vm6, %v3158_v45, %v3153_v37  ;;  %v1286_v41 = vld [vmem:[#allocation2 + $0x8] sm:$0xff] }
0x103c   :  { %v1118_v8 = vpop.f32.mrf.mxu0  ;;  %v1223_v11 = vpop.f32.mrf.mxu1  ;;  %v3218_v43 = vld [vmem:[#allocation2 + $0x28] sm:$0xff] }
0x103d   :  { %1272 = vst.msk [vmem:[#allocation2 + $0x48] sm:$0xff] %vm248_vm1, %v1256_v38  ;;  %v3171_v53 = vadd.f32 %v3131_v10, %v1222_v7  ;;  %v1224_v12 = vadd.f32 %v1223_v11, %v1118_v8  ;;  %v3240_v11 = vld [vmem:[%s3480_s8] ss:$0 sm:$0xff] }
0x103e   :  { %v1122_v13 = vpop.f32.mrf.mxu0  ;;  %v1227_v15 = vpop.f32.mrf.mxu1 }
0x103f   :  { %v1258_v47 = vadd.f32 %v3135_v39, %v1224_v12  ;;  %v1228_v18 = vadd.f32 %v1227_v15, %v1122_v13  ;;  %v1486_v50 = vsel %vm2781_vm6, %v3148_v56, %v3171_v53  ;;  %v1732_v14 = vsel %vm2781_vm6, %v3171_v53, %v3148_v56 }
0x1040   :  { %v1124_v20 = vpop.f32.mrf.mxu0  ;;  %v1229_v57 = vpop.f32.mrf.mxu1  ;;  %v3195_v52 = vld [vmem:[#allocation2 + $0x38] sm:$0xff] }
0x1041   :  { %1274 = vst.msk [vmem:[#allocation2 + $0x58] sm:$0xff] %vm248_vm1, %v1258_v47  ;;  %v3184_v28 = vadd.f32 %v3131_v10, %v1228_v18  ;;  %v1230_v30 = vadd.f32 %v1229_v57, %v1124_v20 }
0x1042   :  { %v1126_v33 = vpop.f32.mrf.mxu0  ;;  %v1231_v51 = vpop.f32.mrf.mxu1 }
0x1043   :  { %v1260_v55 = vadd.f32 %v3135_v39, %v1230_v30  ;;  %v1232_v58 = vadd.f32 %v1231_v51, %v1126_v33  ;;  %v1404_v59 = vsel %vm2781_vm6, %v3143_v48, %v3184_v28  ;;  %v1814_v27 = vsel %vm2781_vm6, %v3184_v28, %v3143_v48 }
0x1044   :  { %v1128_v24 = vpop.f32.mrf.mxu0  ;;  %v1233_v25 = vpop.f32.mrf.mxu1  ;;  %v3197_v2 = vld [vmem:[#allocation2 + $0x48] sm:$0xff] }
0x1045   :  { %1276 = vst.msk [vmem:[#allocation2 + $0x68] sm:$0xff] %vm248_vm1, %v1260_v55  ;;  %v3201_v3 = vadd.f32 %v3131_v10, %v1232_v58  ;;  %v1234_v4 = vadd.f32 %v1233_v25, %v1128_v24  ;;  %v3207_v31 = vsel %vm111_vm7, %v3197_v2, %v3195_v52 }
0x1046   :  { %v1365_v32 = vpop.f32.mrf.mxu0 }
0x1047   :  { %v1262_v34 = vadd.f32 %v3135_v39, %v1234_v4  ;;  %v1289_v1 = vsel %vm2781_vm6, %v3138_v62, %v3201_v3  ;;  %v1896_v10 = vsel %vm2781_vm6, %v3201_v3, %v3138_v62  ;;  %v2399_v62 = vld [vmem:[%s3481_s9 + $0x18] sm:$0xff]   ;;  %v2400_v3 = vld [vmem:[%s3481_s9 + $0x10] sm:$0xff]  }
0x1048   :  { %v1372_v5 = vadd.f32 %v1365_v32, %v1289_v1  ;;  %v1367_v36 = vpop.f32.mrf.mxu0  ;;  %v3220_v49 = vld [vmem:[#allocation2 + $0x58] sm:$0xff] }
0x1049   :  { %1278 = vst.msk [vmem:[#allocation2 + $0x78] sm:$0xff] %vm248_vm1, %v1262_v34  ;;  %v3227_v39 = vsel %vm111_vm7, %v3220_v49, %v3218_v43  ;;  %v1379_v12 = vadd.f32 %v3240_v11, %v1367_v36 }
0x104a   :  { %v2282_v63 = vmul.f32 -1.442695, %v1372_v5  ;;  %v1369_v9 = vpop.f32.mrf.mxu0 }
0x104c   :  { %2451 = vpow2.f32 %v2282_v63  ;;  %v1370_v54 = vpop.f32.mrf.mxu0  ;;  %v1403_v40 = vld [vmem:[#allocation2 + $0x68] sm:$0xff] }
0x104d   :  { %v3231_v35 = vsel %vm111_vm7, %v1403_v40, %v1401_v16 }
0x1050   :  { %v1288_v42 = vld [vmem:[#allocation2 + $0x78] sm:$0xff] }
0x1051   :  { %v3235_v38 = vsel %vm111_vm7, %v1288_v42, %v1286_v41  ;;  %v1290_v47 = vsel %vm111_vm7, %v1286_v41, %v1288_v42  ;;  %v1405_v42 = vsel %vm111_vm7, %v1401_v16, %v1403_v40 }
0x1059   :  { %v2452_v7 = vpop.eup %2451 }
0x105a   :  { %v1376_v8 = vadd.f32 1.0, %v2452_v7 }
0x105c   :  { %2453 = vrcp.f32 %v1376_v8 }
0x1069   :  { %v2454_v13 = vpop.eup %2453 }
0x106a   :  { %v1380_v15 = vmul.f32 %v2454_v13, %v1379_v12  ;;  %v1383_v57 = vsub.f32 1.0, %v2454_v13  ;;  %v1389_v33 = vmul.f32 0.0, %v2454_v13 }
0x106c   :  { %v1381_v18 = vadd.f32 %v1380_v15, %v1290_v47 }
0x106e   :  { %2455 = vtanh.f32 %v1381_v18 }
0x107b   :  { %v2456_v20 = vpop.eup %2455 }
0x107c   :  { %1385 = vrot.lane.b32.xlu1 %v2456_v20, %s2614_s4 }
0x10ee   :  { %v1386_v30 = vpop.permute.xlu1 %1385 }
0x10ef   :  { %v1388_v51 = vmul.f32 %v1386_v30, %v1383_v57 }
0x10f1   :  { %v3246_v55 = vadd.f32 %v1389_v33, %v1388_v51 }
0x10f3   :  { %v1406_v58 = vpack.c.bf16 %v3246_v55, %v3246_v55 }
0x10f5   :  { %1408 = vrot.lane.b32.xlu0 %v1406_v58, %s2614_s4 }
0x1167   :  { %v1409_v24 = vpop.permute.xlu0 %1408 }
0x1168   :  { %2283 = vmatmul.mubr.msk.bf16.vlgmr.msra.gmra.mxu1 %vm248_vm1, %v1409_v24 }
0x1169   :  { %1586 = vmatpush1.bf16.msra.mxu1 %v3056_v17  ;;  %1609 = vmatprep.mubr.bf16.mxu1 %v2613_v0 }
0x116a   :  { %1587 = vmatprep.subr.bf16.mxu1 %v3063_v19 }
0x116d   :  { %1588 = vmatpush1.bf16.msra.mxu1 %v3065_v21 }
0x116e   :  { %1589 = vmatprep.subr.bf16.mxu1 %v3071_v22 }
0x1171   :  { %1590 = vmatpush1.bf16.msra.mxu1 %v3075_v23 }
0x1172   :  { %1591 = vmatprep.subr.bf16.mxu1 %v3077_v26 }
0x1175   :  { %1592 = vmatpush1.bf16.msra.mxu1 %v3083_v61 }
0x1176   :  { %1749 = vmatprep.subr.bf16.mxu1 %v3050_v60 }
0x1228   :  { %v1447_v25 = vpop.f32.mrf.mxu1 }
0x1229   :  { %v1454_v4 = vadd.f32 %v1447_v25, %v1404_v59 }
0x122a   :  { %v1449_v32 = vpop.f32.mrf.mxu1 }
0x122b   :  { %v2284_v34 = vmul.f32 -1.442695, %v1454_v4  ;;  %v1461_v9 = vadd.f32 %v3240_v11, %v1449_v32 }
0x122c   :  { %v1451_v1 = vpop.f32.mrf.mxu1 }
0x122d   :  { %2457 = vpow2.f32 %v2284_v34  ;;  %v1487_v34 = vsel %vm111_vm7, %v3218_v43, %v3220_v49 }
0x122e   :  { %v1452_v5 = vpop.f32.mrf.mxu1 }
0x123a   :  { %v2458_v36 = vpop.eup %2457 }
0x123b   :  { %v1458_v63 = vadd.f32 1.0, %v2458_v36 }
0x123d   :  { %2459 = vrcp.f32 %v1458_v63 }
0x124a   :  { %v2460_v54 = vpop.eup %2459 }
0x124b   :  { %v1462_v41 = vmul.f32 %v2460_v54, %v1461_v9  ;;  %v1465_v59 = vsub.f32 1.0, %v2460_v54  ;;  %v1471_v13 = vmul.f32 %v2460_v54, %v3246_v55 }
0x124d   :  { %v1463_v7 = vadd.f32 %v1462_v41, %v1405_v42 }
0x124f   :  { %2461 = vtanh.f32 %v1463_v7 }
0x125c   :  { %v2462_v8 = vpop.eup %2461 }
0x125d   :  { %1467 = vrot.lane.b32.xlu1 %v2462_v8, %s2614_s4 }
0x12cf   :  { %v1468_v12 = vpop.permute.xlu1 %1467 }
0x12d0   :  { %v1470_v15 = vmul.f32 %v1468_v12, %v1465_v59 }
0x12d2   :  { %v3266_v47 = vadd.f32 %v1471_v13, %v1470_v15 }
0x12d4   :  { %v1488_v18 = vpack.c.bf16 %v3266_v47, %v3266_v47 }
0x12d6   :  { %1490 = vrot.lane.b32.xlu0 %v1488_v18, %s2614_s4 }
0x1348   :  { %v1491_v20 = vpop.permute.xlu0 %1490 }
0x1349   :  { %2285 = vmatmul.mubr.msk.bf16.vlgmr.msra.gmra.mxu0 %vm248_vm1, %v1491_v20 }
0x134a   :  { %1668 = vmatpush1.bf16.msra.mxu0 %v3056_v17  ;;  %1691 = vmatprep.mubr.bf16.mxu0 %v2613_v0 }
0x134b   :  { %1669 = vmatprep.subr.bf16.mxu0 %v3063_v19 }
0x134e   :  { %1670 = vmatpush1.bf16.msra.mxu0 %v3065_v21 }
0x134f   :  { %1671 = vmatprep.subr.bf16.mxu0 %v3071_v22 }
0x1352   :  { %1672 = vmatpush1.bf16.msra.mxu0 %v3075_v23 }
0x1353   :  { %1673 = vmatprep.subr.bf16.mxu0 %v3077_v26 }
0x1356   :  { %1674 = vmatpush1.bf16.msra.mxu0 %v3083_v61 }
0x1357   :  { %1831 = vmatprep.subr.bf16.mxu0 %v3050_v60 }
0x1409   :  { %v1529_v16 = vpop.f32.mrf.mxu0 }
0x140a   :  { %v1536_v40 = vadd.f32 %v1529_v16, %v1486_v50 }
0x140b   :  { %v1531_v57 = vpop.f32.mrf.mxu0 }
0x140c   :  { %v2286_v30 = vmul.f32 -1.442695, %v1536_v40  ;;  %v1543_v25 = vadd.f32 %v3240_v11, %v1531_v57 }
0x140d   :  { %v1533_v33 = vpop.f32.mrf.mxu0 }
0x140e   :  { %2463 = vpow2.f32 %v2286_v30 }
0x140f   :  { %v1534_v51 = vpop.f32.mrf.mxu0 }
0x141b   :  { %v2464_v58 = vpop.eup %2463 }
0x141c   :  { %v1540_v24 = vadd.f32 1.0, %v2464_v58 }
0x141e   :  { %2465 = vrcp.f32 %v1540_v24 }
0x142b   :  { %v2466_v4 = vpop.eup %2465 }
0x142c   :  { %v1544_v32 = vmul.f32 %v2466_v4, %v1543_v25  ;;  %v1547_v5 = vsub.f32 1.0, %v2466_v4  ;;  %v1553_v63 = vmul.f32 %v2466_v4, %v3266_v47 }
0x142e   :  { %v1545_v1 = vadd.f32 %v1544_v32, %v1487_v34 }
0x1430   :  { %2467 = vtanh.f32 %v1545_v1 }
0x143d   :  { %v2468_v50 = vpop.eup %2467 }
0x143e   :  { %1549 = vrot.lane.b32.xlu1 %v2468_v50, %s2614_s4 }
0x14b0   :  { %v1550_v36 = vpop.permute.xlu1 %1549 }
0x14b1   :  { %v1552_v9 = vmul.f32 %v1550_v36, %v1547_v5 }
0x14b3   :  { %v3293_v54 = vadd.f32 %v1553_v63, %v1552_v9 }
0x14b5   :  { %v1570_v41 = vpack.c.bf16 %v3293_v54, %v3293_v54 }
0x14b7   :  { %1572 = vrot.lane.b32.xlu0 %v1570_v41, %s2614_s4 }
0x1529   :  { %v1573_v42 = vpop.permute.xlu0 %1572 }
0x152a   :  { %2287 = vmatmul.mubr.msk.bf16.vlgmr.msra.gmra.mxu1 %vm248_vm1, %v1573_v42 }
0x152b   :  { %1750 = vmatpush1.bf16.msra.mxu1 %v3056_v17  ;;  %1773 = vmatprep.mubr.bf16.mxu1 %v2613_v0 }
0x152c   :  { %1751 = vmatprep.subr.bf16.mxu1 %v3063_v19 }
0x152f   :  { %1752 = vmatpush1.bf16.msra.mxu1 %v3065_v21 }
0x1530   :  { %1753 = vmatprep.subr.bf16.mxu1 %v3071_v22 }
0x1533   :  { %1754 = vmatpush1.bf16.msra.mxu1 %v3075_v23 }
0x1534   :  { %1755 = vmatprep.subr.bf16.mxu1 %v3077_v26 }
0x1537   :  { %1756 = vmatpush1.bf16.msra.mxu1 %v3083_v61 }
0x1538   :  { %1913 = vmatprep.subr.bf16.mxu1 %v3050_v60  ;;  %v1569_v60 = vsel %vm111_vm7, %v3195_v52, %v3197_v2 }
0x15ea   :  { %v1611_v43 = vpop.f32.mrf.mxu1 }
0x15eb   :  { %v1618_v49 = vadd.f32 %v1611_v43, %v1568_v6 }
0x15ec   :  { %v1613_v7 = vpop.f32.mrf.mxu1 }
0x15ed   :  { %v2288_v8 = vmul.f32 -1.442695, %v1618_v49  ;;  %v1625_v18 = vadd.f32 %v3240_v11, %v1613_v7 }
0x15ee   :  { %v1615_v59 = vpop.f32.mrf.mxu1 }
0x15ef   :  { %2469 = vpow2.f32 %v2288_v8 }
0x15f0   :  { %v1616_v12 = vpop.f32.mrf.mxu1 }
0x15fc   :  { %v2470_v13 = vpop.eup %2469 }
0x15fd   :  { %v1622_v15 = vadd.f32 1.0, %v2470_v13 }
0x15ff   :  { %2471 = vrcp.f32 %v1622_v15 }
0x160c   :  { %v2472_v20 = vpop.eup %2471 }
0x160d   :  { %v1626_v16 = vmul.f32 %v2472_v20, %v1625_v18  ;;  %v1629_v57 = vsub.f32 1.0, %v2472_v20  ;;  %v1635_v33 = vmul.f32 %v2472_v20, %v3293_v54 }
0x160f   :  { %v1627_v40 = vadd.f32 %v1626_v16, %v1569_v60 }
0x1611   :  { %2473 = vtanh.f32 %v1627_v40 }
0x161e   :  { %v2474_v6 = vpop.eup %2473 }
0x161f   :  { %1631 = vrot.lane.b32.xlu1 %v2474_v6, %s2614_s4 }
0x1691   :  { %v1632_v30 = vpop.permute.xlu1 %1631 }
0x1692   :  { %v1634_v51 = vmul.f32 %v1632_v30, %v1629_v57 }
0x1694   :  { %v3320_v58 = vadd.f32 %v1635_v33, %v1634_v51 }
0x1696   :  { %v1652_v24 = vpack.c.bf16 %v3320_v58, %v3320_v58 }
0x1698   :  { %1654 = vrot.lane.b32.xlu0 %v1652_v24, %s2614_s4 }
0x170a   :  { %v1655_v25 = vpop.permute.xlu0 %1654 }
0x170b   :  { %2289 = vmatmul.mubr.msk.bf16.vlgmr.msra.gmra.mxu0 %vm248_vm1, %v1655_v25 }
0x170c   :  { %1832 = vmatpush1.bf16.msra.mxu0 %v3056_v17  ;;  %1855 = vmatprep.mubr.bf16.mxu0 %v2613_v0 }
0x170d   :  { %1833 = vmatprep.subr.bf16.mxu0 %v3063_v19 }
0x1710   :  { %1834 = vmatpush1.bf16.msra.mxu0 %v3065_v21 }
0x1711   :  { %1835 = vmatprep.subr.bf16.mxu0 %v3071_v22 }
0x1714   :  { %1836 = vmatpush1.bf16.msra.mxu0 %v3075_v23 }
0x1715   :  { %1837 = vmatprep.subr.bf16.mxu0 %v3077_v26 }
0x1718   :  { %1838 = vmatpush1.bf16.msra.mxu0 %v3083_v61 }
0x1719   :  { %2322 = vmatprep.subr.bf16.mxu0 %v2399_v62 }
0x17cb   :  { %v1693_v29 = vpop.f32.mrf.mxu0 }
0x17cc   :  { %v1700_v52 = vadd.f32 %v1693_v29, %v1650_v44 }
0x17cd   :  { %v1695_v2 = vpop.f32.mrf.mxu0 }
0x17ce   :  { %v2290_v4 = vmul.f32 -1.442695, %v1700_v52  ;;  %v1707_v5 = vadd.f32 %v3240_v11, %v1695_v2 }
0x17cf   :  { %v1697_v32 = vpop.f32.mrf.mxu0 }
0x17d0   :  { %2475 = vpow2.f32 %v2290_v4 }
0x17d1   :  { %v1698_v34 = vpop.f32.mrf.mxu0 }
0x17dd   :  { %v2476_v1 = vpop.eup %2475 }
0x17de   :  { %v1704_v50 = vadd.f32 1.0, %v2476_v1 }
0x17e0   :  { %2477 = vrcp.f32 %v1704_v50 }
0x17ed   :  { %v2478_v36 = vpop.eup %2477 }
0x17ee   :  { %v1708_v63 = vmul.f32 %v2478_v36, %v1707_v5  ;;  %v1711_v37 = vsub.f32 1.0, %v2478_v36  ;;  %v1717_v44 = vmul.f32 %v2478_v36, %v3320_v58 }
0x17f0   :  { %v1709_v9 = vadd.f32 %v1708_v63, %v3207_v31 }
0x17f2   :  { %2479 = vtanh.f32 %v1709_v9 }
0x17ff   :  { %v2480_v41 = vpop.eup %2479 }
0x1800   :  { %1713 = vrot.lane.b32.xlu1 %v2480_v41, %s2614_s4 }
0x1872   :  { %v1714_v45 = vpop.permute.xlu1 %1713 }
0x1873   :  { %v1716_v42 = vmul.f32 %v1714_v45, %v1711_v37 }
0x1875   :  { %v3343_v43 = vadd.f32 %v1717_v44, %v1716_v42 }
0x1877   :  { %v1734_v49 = vpack.c.bf16 %v3343_v43, %v3343_v43 }
0x1879   :  { %1736 = vrot.lane.b32.xlu0 %v1734_v49, %s2614_s4 }
0x18eb   :  { %v1737_v7 = vpop.permute.xlu0 %1736 }
0x18ec   :  { %2291 = vmatmul.mubr.msk.bf16.vlgmr.msra.gmra.mxu1 %vm248_vm1, %v1737_v7 }
0x18ed   :  { %1914 = vmatpush1.bf16.msra.mxu1 %v3056_v17  ;;  %1937 = vmatprep.mubr.bf16.mxu1 %v2613_v0 }
0x18ee   :  { %1915 = vmatprep.subr.bf16.mxu1 %v3063_v19 }
0x18f1   :  { %1916 = vmatpush1.bf16.msra.mxu1 %v3065_v21 }
0x18f2   :  { %1917 = vmatprep.subr.bf16.mxu1 %v3071_v22 }
0x18f5   :  { %1918 = vmatpush1.bf16.msra.mxu1 %v3075_v23 }
0x18f6   :  { %1919 = vmatprep.subr.bf16.mxu1 %v3077_v26 }
0x18f9   :  { %1920 = vmatpush1.bf16.msra.mxu1 %v3083_v61 }
0x19ac   :  { %v1775_v31 = vpop.f32.mrf.mxu1 }
0x19ad   :  { %v1782_v17 = vadd.f32 %v1775_v31, %v1732_v14 }
0x19ae   :  { %v1777_v0 = vpop.f32.mrf.mxu1 }
0x19af   :  { %v2292_v8 = vmul.f32 -1.442695, %v1782_v17  ;;  %v1789_v23 = vadd.f32 %v3240_v11, %v1777_v0 }
0x19b0   :  { %v1779_v19 = vpop.f32.mrf.mxu1 }
0x19b1   :  { %2481 = vpow2.f32 %v2292_v8 }
0x19b2   :  { %v1780_v21 = vpop.f32.mrf.mxu1 }
0x19be   :  { %v2482_v59 = vpop.eup %2481 }
0x19bf   :  { %v1786_v22 = vadd.f32 1.0, %v2482_v59 }
0x19c1   :  { %2483 = vrcp.f32 %v1786_v22  ;;  %v2401_v22 = vld [vmem:[%s3481_s9 + $0x8] sm:$0xff]  }
0x19c2   :  { %2346 = vmatprep.subr.bf16.mxu1 %v2401_v22 }
0x19ce   :  { %v2484_v26 = vpop.eup %2483 }
0x19cf   :  { %v1790_v12 = vmul.f32 %v2484_v26, %v1789_v23  ;;  %v1793_v56 = vsub.f32 1.0, %v2484_v26  ;;  %v1799_v14 = vmul.f32 %v2484_v26, %v3343_v43  ;;  %v2402_v26 = vld [vmem:[%s3481_s9] sm:$0xff]  }
0x19d1   :  { %v1791_v61 = vadd.f32 %v1790_v12, %v3227_v39 }
0x19d3   :  { %2485 = vtanh.f32 %v1791_v61 }
0x19e0   :  { %v2486_v13 = vpop.eup %2485 }
0x19e1   :  { %1795 = vrot.lane.b32.xlu1 %v2486_v13, %s2614_s4 }
0x1a53   :  { %v1796_v53 = vpop.permute.xlu1 %1795 }
0x1a54   :  { %v1798_v15 = vmul.f32 %v1796_v53, %v1793_v56 }
0x1a56   :  { %v3366_v18 = vadd.f32 %v1799_v14, %v1798_v15 }
0x1a58   :  { %v1816_v20 = vpack.c.bf16 %v3366_v18, %v3366_v18 }
0x1a5a   :  { %1818 = vrot.lane.b32.xlu0 %v1816_v20, %s2614_s4 }
0x1acc   :  { %v1819_v16 = vpop.permute.xlu0 %1818 }
0x1acd   :  { %2293 = vmatmul.mubr.msk.bf16.vlgmr.msra.gmra.mxu0 %vm248_vm1, %v1819_v16 }
0x1ace   :  { %2323 = vmatpush3.bf16.msra.mxu0 %v2399_v62 }
0x1acf   :  { %2324 = vmatprep.subr.bf16.mxu0 %v2400_v3 }
0x1ad2   :  { %2325 = vmatpush3.bf16.msra.mxu0 %v2400_v3 }
0x1ad3   :  { %2334 = vmatprep.subr.bf16.mxu0 %v2401_v22 }
0x1b8d   :  { %v1857_v39 = vpop.f32.mrf.mxu0 }
0x1b8e   :  { %v1864_v60 = vadd.f32 %v1857_v39, %v1814_v27 }
0x1b8f   :  { %v1859_v40 = vpop.f32.mrf.mxu0 }
0x1b90   :  { %v2294_v6 = vmul.f32 -1.442695, %v1864_v60  ;;  %v1871_v24 = vadd.f32 %v3240_v11, %v1859_v40 }
0x1b91   :  { %v1861_v57 = vpop.f32.mrf.mxu0 }
0x1b92   :  { %2487 = vpow2.f32 %v2294_v6 }
0x1b93   :  { %v1862_v30 = vpop.f32.mrf.mxu0 }
0x1b9f   :  { %v2488_v33 = vpop.eup %2487 }
0x1ba0   :  { %v1868_v51 = vadd.f32 1.0, %v2488_v33 }
0x1ba2   :  { %2489 = vrcp.f32 %v1868_v51 }
0x1baf   :  { %v2490_v25 = vpop.eup %2489 }
0x1bb0   :  { %v1872_v29 = vmul.f32 %v2490_v25, %v1871_v24  ;;  %v1875_v48 = vsub.f32 1.0, %v2490_v25  ;;  %v1881_v27 = vmul.f32 %v2490_v25, %v3366_v18 }
0x1bb2   :  { %v1873_v52 = vadd.f32 %v1872_v29, %v3231_v35 }
0x1bb4   :  { %2491 = vtanh.f32 %v1873_v52 }
0x1bc1   :  { %v2492_v2 = vpop.eup %2491 }
0x1bc2   :  { %1877 = vrot.lane.b32.xlu1 %v2492_v2, %s2614_s4 }
0x1c34   :  { %v1878_v28 = vpop.permute.xlu1 %1877 }
0x1c35   :  { %v1880_v4 = vmul.f32 %v1878_v28, %v1875_v48 }
0x1c37   :  { %v1882_v32 = vadd.f32 %v1881_v27, %v1880_v4 }
0x1c39   :  { %v1898_v34 = vpack.c.bf16 %v1882_v32, %v1882_v32 }
0x1c3b   :  { %1900 = vrot.lane.b32.xlu0 %v1898_v34, %s2614_s4 }
0x1c3f   :  { %1888 = vrot.lane.b32.xlu0 %v1882_v32, %s2615_s24 }
0x1c43   :  { %1724 = vrot.lane.b32.xlu0 %v3343_v43, %s2615_s24 }
0x1c47   :  { %1560 = vrot.lane.b32.xlu0 %v3293_v54, %s2615_s24 }
0x1c4b   :  { %1396 = vrot.lane.b32.xlu0 %v3246_v55, %s2615_s24 }
0x1c4f   :  { %1392 = vrot.lane.b32.xlu0 %v3246_v55, %s2614_s4 }
0x1c53   :  { %1720 = vrot.lane.b32.xlu0 %v3343_v43, %s2614_s4 }
0x1c57   :  { %1556 = vrot.lane.b32.xlu0 %v3293_v54, %s2614_s4 }
0x1c5b   :  { %1884 = vrot.lane.b32.xlu0 %v1882_v32, %s2614_s4 }
0x1cad   :  { %v1901_v35 = vpop.permute.xlu0 %1900 }
0x1cae   :  { %2295 = vmatmul.mubr.msk.bf16.vlgmr.msra.gmra.mxu1 %vm248_vm1, %v1901_v35 }
0x1caf   :  { %2348 = vmatpush3.bf16.msra.mxu1 %v2401_v22 }
0x1cb0   :  { %2347 = vmatprep.subr.bf16.mxu1 %v2402_v26 }
0x1cb1   :  { %v1889_v1 = vpop.permute.xlu0 %1888 }
0x1cb2   :  { %1891 = vst.msk [vmem:[#allocation4 + $0x8] sm:$0xff] %vm384_vm8, %v1889_v1 }
0x1cb3   :  { %2349 = vmatpush3.bf16.msra.mxu1 %v2402_v26 }
0x1cb5   :  { %v1725_v50 = vpop.permute.xlu0 %1724 }
0x1cb6   :  { %1727 = vst.msk [vmem:[#allocation4 + $0x18] sm:$0xff] %vm384_vm8, %v1725_v50 }
0x1cb9   :  { %v1561_v5 = vpop.permute.xlu0 %1560 }
0x1cba   :  { %1563 = vst.msk [vmem:[#allocation4 + $0x28] sm:$0xff] %vm384_vm8, %v1561_v5 }
0x1cbd   :  { %v1397_v55 = vpop.permute.xlu0 %1396 }
0x1cbe   :  { %1399 = vst.msk [vmem:[#allocation4 + $0x38] sm:$0xff] %vm384_vm8, %v1397_v55 }
0x1cc1   :  { %v1393_v36 = vpop.permute.xlu0 %1392  ;;  %v1991_v16 = vld [vmem:[#allocation4 + $0x28] sm:$0xff] }
0x1cc2   :  { %1395 = vst.msk [vmem:[#allocation3] sm:$0xff] %vm384_vm8, %v1393_v36 }
0x1cc5   :  { %v1721_v54 = vpop.permute.xlu0 %1720  ;;  %v1993_v57 = vld [vmem:[#allocation4 + $0x38] sm:$0xff] }
0x1cc6   :  { %1723 = vst.msk [vmem:[#allocation3 + $0x20] sm:$0xff] %vm384_vm8, %v1721_v54 }
0x1cc9   :  { %v1557_v63 = vpop.permute.xlu0 %1556  ;;  %v1974_v33 = vld [vmem:[#allocation3] sm:$0xff] }
0x1cca   :  { %1559 = vst.msk [vmem:[#allocation3 + $0x10] sm:$0xff] %vm384_vm8, %v1557_v63 }
0x1ccd   :  { %v1885_v9 = vpop.permute.xlu0 %1884  ;;  %v1978_v25 = vld [vmem:[#allocation3 + $0x20] sm:$0xff] }
0x1cce   :  { %1887 = vst.msk [vmem:[#allocation3 + $0x30] sm:$0xff] %vm384_vm8, %v1885_v9  ;;  %v2309_v9 = vld [vmem:[%s3482_s10] ss:$0 sm:$0xff]  ;;  %s2616_s10 = smov [#allocation13]  }
0x1ccf   :  { %s2213_s0 = sshll.u32 %s2616_s10, 4  ;;  %s2214_s0 = int_to_ptr.vmem [resolvable:$true] %s2213_s0 }
0x1cd0   :  { %s2579_s16 = scalar_lea.vmem %s2214_s0, 1024  ;;  %p2584_p7 = scmp.lt.s32.totalorder %s2214_s0, %s2214_s0 }
0x1cd1   :  { %v1976_v2 = vld [vmem:[#allocation3 + $0x10] sm:$0xff]  ;;  %p2580_p6 = scmp.ne.s32.totalorder %s2214_s0, %s2579_s16  ;;  %p2585_p8 = scmp.lt.s32.totalorder %s2579_s16, %s2579_s16 }
0x1cd3   :  { %p2586_p9 = por %p2585_p8, %p2584_p7 }
0x1cd5   :  { %v1980_v27 = vld [vmem:[#allocation3 + $0x30] sm:$0xff]  ;;  %p2587_p10 = pnand %p2586_p9, %p2580_p6 }
0x1d6e   :  { %v1939_v41 = vpop.f32.mrf.mxu1 }
0x1d6f   :  { %v1946_v37 = vadd.f32 %v1939_v41, %v1896_v10 }
0x1d70   :  { %v1941_v45 = vpop.f32.mrf.mxu1 }
0x1d71   :  { %v2296_v44 = vmul.f32 -1.442695, %v1946_v37  ;;  %v1953_v31 = vadd.f32 %v3240_v11, %v1941_v45 }
0x1d72   :  { %v1943_v42 = vpop.f32.mrf.mxu1 }
0x1d73   :  { %2493 = vpow2.f32 %v2296_v44 }
0x1d74   :  { %v1944_v43 = vpop.f32.mrf.mxu1 }
0x1d80   :  { %v2494_v49 = vpop.eup %2493 }
0x1d81   :  { %v1950_v7 = vadd.f32 1.0, %v2494_v49 }
0x1d83   :  { %2495 = vrcp.f32 %v1950_v7 }
0x1d90   :  { %v2496_v17 = vpop.eup %2495 }
0x1d91   :  { %v1954_v0 = vmul.f32 %v2496_v17, %v1953_v31  ;;  %v1957_v10 = vsub.f32 1.0, %v2496_v17  ;;  %v1963_v11 = vmul.f32 %v2496_v17, %v1882_v32 }
0x1d93   :  { %v1955_v8 = vadd.f32 %v1954_v0, %v3235_v38 }
0x1d95   :  { %2497 = vtanh.f32 %v1955_v8 }
0x1da2   :  { %v2498_v46 = vpop.eup %2497 }
0x1da3   :  { %1959 = vrot.lane.b32.xlu1 %v2498_v46, %s2614_s4 }
0x1da7   :  { %1806 = vrot.lane.b32.xlu1 %v3366_v18, %s2615_s24 }
0x1dab   :  { %1642 = vrot.lane.b32.xlu1 %v3320_v58, %s2615_s24 }
0x1e15   :  { %v1960_v38 = vpop.permute.xlu1 %1959 }
0x1e16   :  { %v1962_v19 = vmul.f32 %v1960_v38, %v1957_v10 }
0x1e18   :  { %v1964_v21 = vadd.f32 %v1963_v11, %v1962_v19 }
0x1e19   :  { %v1807_v59 = vpop.permute.xlu1 %1806 }
0x1e1a   :  { %1809 = vst.msk [vmem:[#allocation4 + $0x10] sm:$0xff] %vm384_vm8, %v1807_v59  ;;  %1970 = vrot.lane.b32.xlu1 %v1964_v21, %s2615_s24 }
0x1e1d   :  { %v1643_v23 = vpop.permute.xlu1 %1642 }
0x1e1e   :  { %1645 = vst.msk [vmem:[#allocation4 + $0x20] sm:$0xff] %vm384_vm8, %v1643_v23  ;;  %1478 = vrot.lane.b32.xlu1 %v3266_v47, %s2615_s24 }
0x1e21   :  { %v1988_v13 = vld [vmem:[#allocation4 + $0x10] sm:$0xff] }
0x1e22   :  { %1474 = vrot.lane.b32.xlu1 %v3266_v47, %s2614_s4  ;;  %v1987_v47 = vld [vmem:[#allocation4 + $0x8] sm:$0xff] }
0x1e25   :  { %v1990_v14 = vld [vmem:[#allocation4 + $0x20] sm:$0xff] }
0x1e26   :  { %1802 = vrot.lane.b32.xlu1 %v3366_v18, %s2614_s4  ;;  %v1989_v18 = vld [vmem:[#allocation4 + $0x18] sm:$0xff] }
0x1e27   :  { %v1995_v20 = vpack.c.bf16 %v1989_v18, %v1988_v13 }
0x1e2a   :  { %1638 = vrot.lane.b32.xlu1 %v3320_v58, %s2614_s4  ;;  %v1996_v58 = vpack.c.bf16 %v1991_v16, %v1990_v14 }
0x1e2e   :  { %1966 = vrot.lane.b32.xlu1 %v1964_v21, %s2614_s4 }
0x1e8c   :  { %v1971_v12 = vpop.permute.xlu1 %1970 }
0x1e8d   :  { %1973 = vst.msk [vmem:[#allocation4] sm:$0xff] %vm384_vm8, %v1971_v12 }
0x1e90   :  { %v1479_v61 = vpop.permute.xlu1 %1478 }
0x1e91   :  { %1481 = vst.msk [vmem:[#allocation4 + $0x30] sm:$0xff] %vm384_vm8, %v1479_v61 }
0x1e94   :  { %v1475_v56 = vpop.permute.xlu1 %1474  ;;  %v1986_v53 = vld [vmem:[#allocation4] sm:$0xff] }
0x1e95   :  { %1477 = vst.msk [vmem:[#allocation3 + $0x8] sm:$0xff] %vm384_vm8, %v1475_v56  ;;  %v1994_v15 = vpack.c.bf16 %v1987_v47, %v1986_v53 }
0x1e97   :  { %2326 = vmatprep.mubr.msk.bf16.mxu0 %vm384_vm8, %v1994_v15 }
0x1e98   :  { %2327 = vmatmul.mubr.msk.bf16.vlgmr.msra.gmra.mxu0 %vm384_vm8, %v1995_v20  ;;  %v1803_v39 = vpop.permute.xlu1 %1802  ;;  %v1992_v60 = vld [vmem:[#allocation4 + $0x30] sm:$0xff] }
0x1e99   :  { %1805 = vst.msk [vmem:[#allocation3 + $0x28] sm:$0xff] %vm384_vm8, %v1803_v39  ;;  %2330 = vmatprep.mubr.msk.bf16.mxu0 %vm384_vm8, %v1996_v58  ;;  %2335 = vmatpush3.bf16.msra.mxu0 %v2401_v22  ;;  %v1997_v30 = vpack.c.bf16 %v1993_v57, %v1992_v60 }
0x1e9a   :  { %2336 = vmatprep.subr.bf16.mxu0 %v2402_v26 }
0x1e9c   :  { %v1639_v40 = vpop.permute.xlu1 %1638  ;;  %v1975_v6 = vld [vmem:[#allocation3 + $0x8] sm:$0xff] }
0x1e9d   :  { %1641 = vst.msk [vmem:[#allocation3 + $0x18] sm:$0xff] %vm384_vm8, %v1639_v40  ;;  %2337 = vmatpush3.bf16.msra.mxu0 %v2402_v26  ;;  %v1982_v51 = vpack.c.bf16 %v1975_v6, %v1974_v33 }
0x1ea0   :  { %2331 = vmatmul.mubr.msk.bf16.gmra.mxu0 %vm384_vm8, %v1997_v30  ;;  %v1967_v24 = vpop.permute.xlu1 %1966  ;;  %v1979_v29 = vld [vmem:[#allocation3 + $0x28] sm:$0xff] }
0x1ea1   :  { %1969 = vst.msk [vmem:[#allocation3 + $0x38] sm:$0xff] %vm384_vm8, %v1967_v24  ;;  %2338 = vmatprep.mubr.msk.bf16.mxu0 %vm384_vm8, %v1982_v51  ;;  %v1984_v52 = vpack.c.bf16 %v1979_v29, %v1978_v25 }
0x1ea3   :  { %2342 = vmatprep.mubr.msk.bf16.mxu1 %vm384_vm8, %v1984_v52 }
0x1ea4   :  { %v1977_v48 = vld [vmem:[#allocation3 + $0x18] sm:$0xff] }
0x1ea5   :  { %v1983_v28 = vpack.c.bf16 %v1977_v48, %v1976_v2 }
0x1ea8   :  { %2339 = vmatmul.mubr.msk.bf16.vlgmr.msra.gmra.mxu0 %vm384_vm8, %v1983_v28  ;;  %v1981_v4 = vld [vmem:[#allocation3 + $0x38] sm:$0xff] }
0x1ea9   :  { %v1985_v32 = vpack.c.bf16 %v1981_v4, %v1980_v27 }
0x1eab   :  { %2343 = vmatmul.mubr.msk.bf16.vlgmr.msra.gmra.mxu1 %vm384_vm8, %v1985_v32 }
0x1f58   :  { %v2328_v34 = vpop.f32.mrf.mxu0 }
0x1f5a   :  { %v2064_v35 = vpop.f32.mrf.mxu0 }
0x1f5c   :  { %v2329_v1 = vpop.f32.mrf.mxu0 }
0x1f5e   :  { %v2067_v50 = vpop.f32.mrf.mxu0 }
0x1f60   :  { %v2332_v5 = vpop.f32.mrf.mxu0 }
0x1f62   :  { %v2080_v55 = vpop.f32.mrf.mxu0 }
0x1f64   :  { %v2333_v36 = vpop.f32.mrf.mxu0 }
0x1f66   :  { %v2083_v54 = vpop.f32.mrf.mxu0 }
0x1f68   :  { %v2340_v63 = vpop.f32.mrf.mxu0 }
0x1f69   :  { %v2162_v41 = vadd.f32 %v2340_v63, %v2328_v34 }
0x1f6a   :  { %v2153_v37 = vpop.f32.mrf.mxu0 }
0x1f6b   :  { %v2193_v45 = vadd.f32 %v2309_v9, %v2162_v41  ;;  %v2154_v44 = vadd.f32 %v2153_v37, %v2064_v35  ;;  %v2344_v42 = vpop.f32.mrf.mxu1 }
0x1f6c   :  { %v2178_v43 = vadd.f32 %v2344_v42, %v2332_v5  ;;  %v2341_v49 = vpop.f32.mrf.mxu0 }
0x1f6d   :  { %2202 = vst.msk [vmem:[#allocation13 + $0x10] sm:$0xff] %vm2199_vm9, %v2193_v45  ;;  %v2191_v7 = vadd.f32 %v2309_v9, %v2154_v44  ;;  %v2165_v31 = vadd.f32 %v2341_v49, %v2329_v1  ;;  %v2169_v17 = vpop.f32.mrf.mxu1 }
0x1f6e   :  { %v2197_v0 = vadd.f32 %v2309_v9, %v2178_v43  ;;  %v2170_v8 = vadd.f32 %v2169_v17, %v2080_v55  ;;  %v2156_v46 = vpop.f32.mrf.mxu0 }
0x1f6f   :  { %2200 = vst.msk [vmem:[#allocation13] sm:$0xff] %vm2199_vm9, %v2191_v7  ;;  %v2194_v62 = vadd.f32 %v2309_v9, %v2165_v31  ;;  %v2157_v3 = vadd.f32 %v2156_v46, %v2067_v50  ;;  %v2345_v10 = vpop.f32.mrf.mxu1 }
0x1f70   :  { %2206 = vst.msk [vmem:[#allocation13 + $0x30] sm:$0xff] %vm2199_vm9, %v2197_v0  ;;  %v2195_v38 = vadd.f32 %v2309_v9, %v2170_v8  ;;  %v2181_v11 = vadd.f32 %v2345_v10, %v2333_v36 }
0x1f71   :  { %2203 = vst.msk [vmem:[#allocation13 + $0x18] sm:$0xff] %vm2199_vm9, %v2194_v62  ;;  %v2192_v19 = vadd.f32 %v2309_v9, %v2157_v3  ;;  %v2172_v21 = vpop.f32.mrf.mxu1 }
0x1f72   :  { %2204 = vst.msk [vmem:[#allocation13 + $0x20] sm:$0xff] %vm2199_vm9, %v2195_v38  ;;  %v2198_v59 = vadd.f32 %v2309_v9, %v2181_v11  ;;  %v2173_v22 = vadd.f32 %v2172_v21, %v2083_v54 }
0x1f73   :  { %2201 = vst.msk [vmem:[#allocation13 + $0x8] sm:$0xff] %vm2199_vm9, %v2192_v19 }
0x1f74   :  { %2207 = vst.msk [vmem:[#allocation13 + $0x38] sm:$0xff] %vm2199_vm9, %v2198_v59  ;;  %v2196_v23 = vadd.f32 %v2309_v9, %v2173_v22 }
0x1f76   :  { %2205 = vst.msk [vmem:[#allocation13 + $0x28] sm:$0xff] %vm2199_vm9, %v2196_v23 }
0x1f77   :  { %2590 = shalt.err (!%p2587_p10)
}
0x1f78   :  { %2219 = dma.vmem_to_hbm [thread:$0]  %s2214_s0, 1024, %s3483_s11, [#allocation7], %s2609_s22, %s2609_s22, %s2610_s23  }
0x1f79   :  { %2605 = dma.done.wait [#allocation7], 1024  }
0x1f7a   :  { %2606 = vsyncadd [#allocation7], 4294966272 }
0x1f7b   :  { %2223 = vsyncpa [#allocation6], 1 }
0x1f7c   :  { %2224 = vsyncpa [#allocation9], 1 }
0x1f7d   :  { %2225 = vsyncpa [#allocation12], 1 }
0x1f7e   :  { %2226 = vsyncpa [#allocation7], 1 }

</bundles_post_ra>
